<compile_context>
chip_gen: v5e
topology: v5e:2x2
jax: 0.10.0
libtpu: 0.0.40
codegen_flags: <defaults>
</compile_context>

<pallas_src>
import numpy as np
import jax
import jax.numpy as jnp
from jax import lax
from jax.experimental import pallas as pl
from jax.experimental.pallas import tpu as pltpu

BN_EPS = 1e-5


def _round_up(v, m):
    return -(-v // m) * m


def _vmem_physical_bytes():
    """Rough per-core physical VMEM by device generation (conservative default)."""
    try:
        kind = jax.devices()[0].device_kind.lower()
    except Exception:
        return 64 << 20
    if any(t in kind for t in ("v4", "v5", "v6")):
        return 128 << 20
    return 64 << 20          # v7x / unknown: be conservative


def _aux_head_kernel(x_ref, w1_ref, bnb_ref, w2_ref, wfc_ref, bfc_ref,
                     out_ref, hcat_ref):
    """One batch tile of the full forward pass.

    x_ref    : (H, W, NT, C)      bf16 input tile, spatial-major (streamed)
    w1_ref   : (C, 128)    bf16   1x1 conv weight with 1/25 and BN scale folded in
    bnb_ref  : (1, 128)    f32    folded BN shift = beta - mean * scale
    w2_ref   : (512, 768)  bf16   2x2 conv weight flattened, row = (kh*2+kw)*128 + cin
    wfc_ref  : (768, NCp)  bf16   classifier weight (transposed, lane-padded)
    bfc_ref  : (1, NCp)    f32    classifier bias (lane-padded)
    out_ref  : (NT, NCp)   f32
    hcat_ref : (NT, 512)   bf16   VMEM scratch holding the 4 pooled windows' features
    """
    f32 = jnp.float32
    bf16 = jnp.bfloat16
    cm = w1_ref.shape[1]                         # 128

    # ---- ReLU + AvgPool2d(5, stride=2): dedup'd, separable, row-streamed ------
    # Each of the 49 taps is loaded + ReLU'd exactly once; only the current row's
    # 7 taps plus the 14 horizontal strip sums are live at a time (f32 accum).
    strips = []
    for h in range(7):
        row = [jnp.maximum(x_ref[h, w], 0).astype(f32) for w in range(7)]
        mid = row[2] + row[3] + row[4]
        strips.append((mid + row[0] + row[1],      # output column 0
                       mid + row[5] + row[6]))     # output column 1

    # Vertical 5-tap sums for output rows h0 in {0, 2}, sharing rows 2..4.
    vmid = [strips[2][wo] + strips[3][wo] + strips[4][wo] for wo in range(2)]

    # ---- 1x1 conv (1/25 and BN scale pre-folded into w1), per pooled window ---
    # Write each window's features straight into its 128-lane slice of the
    # (NT, 512) scratch -- no concatenate/slice round-trips.
    s = 0
    for (ra, rb) in ((0, 1), (5, 6)):            # ho = 0, 1
        for wo in range(2):                      # wo = 0, 1  -> s = ho*2 + wo
            pooled = (vmid[wo] + strips[ra][wo] + strips[rb][wo]).astype(bf16)
            h1 = jnp.dot(pooled, w1_ref[...], preferred_element_type=f32)
            h1 = jnp.maximum(h1 + bnb_ref[...], 0.0)          # BN shift + ReLU
            hcat_ref[:, s * cm:(s + 1) * cm] = h1.astype(bf16)
            s += 1

    # ---- 2x2 conv fused into a single K=512 bf16 matmul ------------------------
    h2 = jnp.maximum(
        jnp.dot(hcat_ref[...], w2_ref[...], preferred_element_type=f32), 0.0)

    # ---- classifier -------------------------------------------------------------
    out_ref[...] = (jnp.dot(h2.astype(bf16), wfc_ref[...],
                            preferred_element_type=f32) + bfc_ref[...])


def auxiliary_head_imagenet(x_nchw, params, *, batch_tile=None):
    """Pallas implementation of AuxiliaryHeadImageNet.forward (inference mode)."""
    N, C, H, W = x_nchw.shape
    HO = (H - 5) // 2 + 1
    WO = (W - 5) // 2 + 1
    assert (HO, WO) == (2, 2), "AuxiliaryHeadImageNet needs 7x7 (or 8x8) input spatial"

    c_mid = params["conv1_w"].shape[0]       # 128
    c_out = params["conv2_w"].shape[0]       # 768
    num_classes = params["fc_w"].shape[0]
    nc_pad = _round_up(max(num_classes, 128), 128)   # lane-dense output stores

    # ---- parameter folding (weight-only transforms, done once) -----------------
    # TODO(synk): BatchNorm is folded in inference mode (running stats); train-mode
    # batch statistics are not reproduced.
    scale = params["bn_gamma"] / jnp.sqrt(params["bn_var"] + BN_EPS)
    shift = params["bn_beta"] - params["bn_mean"] * scale
    # Fold the 1/25 avg-pool divisor and the BN scale into the 1x1 conv weight.
    w1 = (params["conv1_w"][:, :, 0, 0].T.astype(jnp.float32)
          * scale[None, :] * (1.0 / 25.0)).astype(jnp.bfloat16)          # (C, 128)
    bnb = shift.reshape(1, c_mid).astype(jnp.float32)                    # (1, 128)
    # (768,128,2,2) -> (kh,kw,cin,cout) -> (512, 768); row = (kh*2+kw)*128 + cin.
    w2 = jnp.transpose(params["conv2_w"], (2, 3, 1, 0)).reshape(4 * c_mid, c_out)
    w2 = w2.astype(jnp.bfloat16)
    wfc = jnp.zeros((c_out, nc_pad), jnp.bfloat16).at[:, :num_classes].set(
        params["fc_w"].T.astype(jnp.bfloat16))
    bfc = jnp.zeros((1, nc_pad), jnp.float32).at[:, :num_classes].set(
        params["fc_b"].astype(jnp.float32)[None, :])

    # ---- input layout: bf16 cast FIRST, then spatial-major (H, W, N, C) --------
    # TODO(synk): this transpose is still an extra HBM pass over x; a producer
    # that can emit channels-last / spatial-major activations should pass them
    # directly. Casting to bf16 before transposing halves the bytes moved.
    x = jnp.transpose(x_nchw.astype(jnp.bfloat16), (2, 3, 0, 1))         # (H, W, N, C)

    # ---- generation-aware batch tiling ------------------------------------------
    vmem_phys = _vmem_physical_bytes()
    if vmem_phys >= (128 << 20):            # v5e / v6e: plenty of VMEM
        x_blk_cap, budget, ceiling = 20 << 20, 80 << 20, 96 << 20
        default_bt = 256
    else:                                   # v7x (64 MiB physical) / unknown
        x_blk_cap, budget, ceiling = 6 << 20, 36 << 20, 44 << 20
        default_bt = 128
    if batch_tile is None:
        batch_tile = default_bt

    row_bytes = H * W * C * 2                      # bf16 bytes of x per batch row
    nt = max(16, _round_up(min(batch_tile, _round_up(N, 16)), 16))
    nt = min(nt, max(16, (x_blk_cap // row_bytes) // 16 * 16))

    def _est(ntv):
        """VMEM estimate incl. double-buffered I/O, weights and kernel intermediates."""
        x_blk = ntv * row_bytes
        wts = ((C * c_mid + 4 * c_mid * c_out + c_out * nc_pad) * 2
               + (c_mid + nc_pad) * 4)
        inter = 30 * ntv * C * 4 + ntv * (4 * c_mid) * 4 + ntv * c_out * 8
        scratch = ntv * 4 * c_mid * 2
        out_blk = ntv * nc_pad * 4
        return 2 * x_blk + 2 * wts + 2 * out_blk + inter + scratch

    while nt > 16 and _est(nt) > budget:
        nt -= 16

    # v7x has 2 TensorCores sharing the parallel grid axis: make sure the grid
    # has at least 2 tiles when the batch allows it.
    if vmem_phys < (128 << 20) and N > 16:
        nt = min(nt, max(16, _round_up(-(-N // 2), 16)))

    n_pad = _round_up(N, nt)
    if n_pad != N:
        x = jnp.pad(x, ((0, 0), (0, 0), (0, n_pad - N), (0, 0)))
    grid = (pl.cdiv(n_pad, nt),)

    vmem_limit = int(min(ceiling, max(32 << 20, int(1.4 * _est(nt)))))

    out = pl.pallas_call(
        _aux_head_kernel,
        out_shape=jax.ShapeDtypeStruct((n_pad, nc_pad), jnp.float32),
        grid=grid,
        in_specs=[
            pl.BlockSpec((H, W, nt, C), lambda i: (0, 0, i, 0)),   # x: streamed per tile
            pl.BlockSpec((C, c_mid), lambda i: (0, 0)),            # w1 (bf16, VMEM-resident)
            pl.BlockSpec((1, c_mid), lambda i: (0, 0)),            # BN shift (f32)
            pl.BlockSpec((4 * c_mid, c_out), lambda i: (0, 0)),    # fused 2x2 conv weight
            pl.BlockSpec((c_out, nc_pad), lambda i: (0, 0)),       # fc weight
            pl.BlockSpec((1, nc_pad), lambda i: (0, 0)),           # fc bias
        ],
        out_specs=pl.BlockSpec((nt, nc_pad), lambda i: (i, 0)),
        scratch_shapes=[pltpu.VMEM((nt, 4 * c_mid), jnp.bfloat16)],
        compiler_params=pltpu.CompilerParams(
            dimension_semantics=("parallel",),
            vmem_limit_bytes=vmem_limit),
    )(x, w1, bnb, w2, wfc, bfc)

    return out[:N, :num_classes]


def ref_forward(x, params):
    """Pure-JAX reference (mirrors the PyTorch forward, eval-mode BN).

    x is quantized to bf16 first and weights are quantized bf16->f32, matching
    the kernel's stored precision; all accumulation stays f32, as in the kernel.
    """
    q = lambda a: a.astype(jnp.bfloat16).astype(jnp.float32)
    x = q(x)
    xr = jnp.maximum(x, 0.0)
    pooled = lax.reduce_window(xr, 0.0, lax.add,
                               (1, 1, 5, 5), (1, 1, 2, 2), "VALID") / 25.0
    dn = ("NCHW", "OIHW", "NCHW")
    h = lax.conv_general_dilated(pooled, q(params["conv1_w"]), (1, 1), "VALID",
                                 dimension_numbers=dn)
    g = params["bn_gamma"][None, :, None, None]
    b = params["bn_beta"][None, :, None, None]
    m = params["bn_mean"][None, :, None, None]
    v = params["bn_var"][None, :, None, None]
    h = (h - m) / jnp.sqrt(v + BN_EPS) * g + b
    h = jnp.maximum(h, 0.0)
    h2 = lax.conv_general_dilated(h, q(params["conv2_w"]), (1, 1), "VALID",
                                  dimension_numbers=dn)
    h2 = jnp.maximum(h2, 0.0)
    flat = h2.reshape(h2.shape[0], -1)
    return flat @ q(params["fc_w"]).T + params["fc_b"]


if __name__ == "__main__":
    key = jax.random.PRNGKey(0)
    N, C, H, W, NC = 2, 8, 7, 7, 10
    ks = jax.random.split(key, 9)
    x = jax.random.normal(ks[0], (N, C, H, W), jnp.float32)
    params = {
        "conv1_w": 0.1 * jax.random.normal(ks[1], (128, C, 1, 1), jnp.float32),
        "bn_gamma": 1.0 + 0.1 * jax.random.normal(ks[2], (128,), jnp.float32),
        "bn_beta": 0.1 * jax.random.normal(ks[3], (128,), jnp.float32),
        "bn_mean": 0.1 * jax.random.normal(ks[4], (128,), jnp.float32),
        "bn_var": jnp.abs(jax.random.normal(ks[5], (128,), jnp.float32)) + 0.5,
        "conv2_w": 0.05 * jax.random.normal(ks[6], (768, 128, 2, 2), jnp.float32),
        "fc_w": 0.05 * jax.random.normal(ks[7], (NC, 768), jnp.float32),
        "fc_b": 0.05 * jax.random.normal(ks[8], (NC,), jnp.float32),
    }

    out = jax.block_until_ready(auxiliary_head_imagenet(x, params))
    ref = ref_forward(x, params)
    np.testing.assert_allclose(np.asarray(out), np.asarray(ref), rtol=2e-2, atol=2e-2)
    print("KERNEL_OK")
</pallas_src>

<mosaic_0001>
module attributes {stable_mosaic.version = 11 : i64} {
  func.func @_aux_head_kernel(%arg0: i32, %arg1: memref<7x7x16x8xbf16, #tpu.memory_space<vmem>>, %arg2: memref<8x128xbf16, #tpu.memory_space<vmem>>, %arg3: memref<1x128xf32, #tpu.memory_space<vmem>>, %arg4: memref<512x768xbf16, #tpu.memory_space<vmem>>, %arg5: memref<768x128xbf16, #tpu.memory_space<vmem>>, %arg6: memref<1x128xf32, #tpu.memory_space<vmem>>, %arg7: memref<16x128xf32, #tpu.memory_space<vmem>>, %arg8: memref<16x512xbf16, #tpu.memory_space<vmem>>) attributes {dimension_semantics = [#tpu.dimension_semantics<parallel>], iteration_bounds = array<i64: 1>, scalar_prefetch = 0 : i64, scratch_operands = 1 : i64, tpu.core_type = #tpu.core_type<tc>, window_params = [{transform_indices = @transform_0, window_bounds = array<i64: 7, 7, 16, 8>}, {pipeline_mode = #tpu.pipeline_mode<synchronous>, transform_indices = @transform_1, window_bounds = array<i64: 8, 128>}, {pipeline_mode = #tpu.pipeline_mode<synchronous>, transform_indices = @transform_2, window_bounds = array<i64: 1, 128>}, {pipeline_mode = #tpu.pipeline_mode<synchronous>, transform_indices = @transform_3, window_bounds = array<i64: 512, 768>}, {pipeline_mode = #tpu.pipeline_mode<synchronous>, transform_indices = @transform_4, window_bounds = array<i64: 768, 128>}, {pipeline_mode = #tpu.pipeline_mode<synchronous>, transform_indices = @transform_5, window_bounds = array<i64: 1, 128>}, {transform_indices = @transform_6, window_bounds = array<i64: 16, 128>}]} {
    %c0 = arith.constant 0 : index
    %c0_0 = arith.constant 0 : index
    %c0_1 = arith.constant 0 : index
    %c0_2 = arith.constant 0 : index
    %0 = vector.load %arg1[%c0, %c0_0, %c0_1, %c0_2] : memref<7x7x16x8xbf16, #tpu.memory_space<vmem>>, vector<1x1x16x8xbf16>
    %1 = vector.shape_cast %0 : vector<1x1x16x8xbf16> to vector<16x8xbf16>
    %cst = arith.constant 0.000000e+00 : bf16
    %2 = vector.broadcast %cst : bf16 to vector<16x8xbf16>
    %3 = arith.maximumf %1, %2 : vector<16x8xbf16>
    %4 = arith.extf %3 : vector<16x8xbf16> to vector<16x8xf32>
    %c0_3 = arith.constant 0 : index
    %c1 = arith.constant 1 : index
    %c0_4 = arith.constant 0 : index
    %c0_5 = arith.constant 0 : index
    %5 = vector.load %arg1[%c0_3, %c1, %c0_4, %c0_5] : memref<7x7x16x8xbf16, #tpu.memory_space<vmem>>, vector<1x1x16x8xbf16>
    %6 = vector.shape_cast %5 : vector<1x1x16x8xbf16> to vector<16x8xbf16>
    %cst_6 = arith.constant 0.000000e+00 : bf16
    %7 = vector.broadcast %cst_6 : bf16 to vector<16x8xbf16>
    %8 = arith.maximumf %6, %7 : vector<16x8xbf16>
    %9 = arith.extf %8 : vector<16x8xbf16> to vector<16x8xf32>
    %c0_7 = arith.constant 0 : index
    %c2 = arith.constant 2 : index
    %c0_8 = arith.constant 0 : index
    %c0_9 = arith.constant 0 : index
    %10 = vector.load %arg1[%c0_7, %c2, %c0_8, %c0_9] : memref<7x7x16x8xbf16, #tpu.memory_space<vmem>>, vector<1x1x16x8xbf16>
    %11 = vector.shape_cast %10 : vector<1x1x16x8xbf16> to vector<16x8xbf16>
    %cst_10 = arith.constant 0.000000e+00 : bf16
    %12 = vector.broadcast %cst_10 : bf16 to vector<16x8xbf16>
    %13 = arith.maximumf %11, %12 : vector<16x8xbf16>
    %14 = arith.extf %13 : vector<16x8xbf16> to vector<16x8xf32>
    %c0_11 = arith.constant 0 : index
    %c3 = arith.constant 3 : index
    %c0_12 = arith.constant 0 : index
    %c0_13 = arith.constant 0 : index
    %15 = vector.load %arg1[%c0_11, %c3, %c0_12, %c0_13] : memref<7x7x16x8xbf16, #tpu.memory_space<vmem>>, vector<1x1x16x8xbf16>
    %16 = vector.shape_cast %15 : vector<1x1x16x8xbf16> to vector<16x8xbf16>
    %cst_14 = arith.constant 0.000000e+00 : bf16
    %17 = vector.broadcast %cst_14 : bf16 to vector<16x8xbf16>
    %18 = arith.maximumf %16, %17 : vector<16x8xbf16>
    %19 = arith.extf %18 : vector<16x8xbf16> to vector<16x8xf32>
    %c0_15 = arith.constant 0 : index
    %c4 = arith.constant 4 : index
    %c0_16 = arith.constant 0 : index
    %c0_17 = arith.constant 0 : index
    %20 = vector.load %arg1[%c0_15, %c4, %c0_16, %c0_17] : memref<7x7x16x8xbf16, #tpu.memory_space<vmem>>, vector<1x1x16x8xbf16>
    %21 = vector.shape_cast %20 : vector<1x1x16x8xbf16> to vector<16x8xbf16>
    %cst_18 = arith.constant 0.000000e+00 : bf16
    %22 = vector.broadcast %cst_18 : bf16 to vector<16x8xbf16>
    %23 = arith.maximumf %21, %22 : vector<16x8xbf16>
    %24 = arith.extf %23 : vector<16x8xbf16> to vector<16x8xf32>
    %c0_19 = arith.constant 0 : index
    %c5 = arith.constant 5 : index
    %c0_20 = arith.constant 0 : index
    %c0_21 = arith.constant 0 : index
    %25 = vector.load %arg1[%c0_19, %c5, %c0_20, %c0_21] : memref<7x7x16x8xbf16, #tpu.memory_space<vmem>>, vector<1x1x16x8xbf16>
    %26 = vector.shape_cast %25 : vector<1x1x16x8xbf16> to vector<16x8xbf16>
    %cst_22 = arith.constant 0.000000e+00 : bf16
    %27 = vector.broadcast %cst_22 : bf16 to vector<16x8xbf16>
    %28 = arith.maximumf %26, %27 : vector<16x8xbf16>
    %29 = arith.extf %28 : vector<16x8xbf16> to vector<16x8xf32>
    %c0_23 = arith.constant 0 : index
    %c6 = arith.constant 6 : index
    %c0_24 = arith.constant 0 : index
    %c0_25 = arith.constant 0 : index
    %30 = vector.load %arg1[%c0_23, %c6, %c0_24, %c0_25] : memref<7x7x16x8xbf16, #tpu.memory_space<vmem>>, vector<1x1x16x8xbf16>
    %31 = vector.shape_cast %30 : vector<1x1x16x8xbf16> to vector<16x8xbf16>
    %cst_26 = arith.constant 0.000000e+00 : bf16
    %32 = vector.broadcast %cst_26 : bf16 to vector<16x8xbf16>
    %33 = arith.maximumf %31, %32 : vector<16x8xbf16>
    %34 = arith.extf %33 : vector<16x8xbf16> to vector<16x8xf32>
    %35 = arith.addf %14, %19 : vector<16x8xf32>
    %36 = arith.addf %35, %24 : vector<16x8xf32>
    %37 = arith.addf %36, %4 : vector<16x8xf32>
    %38 = arith.addf %37, %9 : vector<16x8xf32>
    %39 = arith.addf %36, %29 : vector<16x8xf32>
    %40 = arith.addf %39, %34 : vector<16x8xf32>
    %c1_27 = arith.constant 1 : index
    %c0_28 = arith.constant 0 : index
    %c0_29 = arith.constant 0 : index
    %c0_30 = arith.constant 0 : index
    %41 = vector.load %arg1[%c1_27, %c0_28, %c0_29, %c0_30] : memref<7x7x16x8xbf16, #tpu.memory_space<vmem>>, vector<1x1x16x8xbf16>
    %42 = vector.shape_cast %41 : vector<1x1x16x8xbf16> to vector<16x8xbf16>
    %cst_31 = arith.constant 0.000000e+00 : bf16
    %43 = vector.broadcast %cst_31 : bf16 to vector<16x8xbf16>
    %44 = arith.maximumf %42, %43 : vector<16x8xbf16>
    %45 = arith.extf %44 : vector<16x8xbf16> to vector<16x8xf32>
    %c1_32 = arith.constant 1 : index
    %c1_33 = arith.constant 1 : index
    %c0_34 = arith.constant 0 : index
    %c0_35 = arith.constant 0 : index
    %46 = vector.load %arg1[%c1_32, %c1_33, %c0_34, %c0_35] : memref<7x7x16x8xbf16, #tpu.memory_space<vmem>>, vector<1x1x16x8xbf16>
    %47 = vector.shape_cast %46 : vector<1x1x16x8xbf16> to vector<16x8xbf16>
    %cst_36 = arith.constant 0.000000e+00 : bf16
    %48 = vector.broadcast %cst_36 : bf16 to vector<16x8xbf16>
    %49 = arith.maximumf %47, %48 : vector<16x8xbf16>
    %50 = arith.extf %49 : vector<16x8xbf16> to vector<16x8xf32>
    %c1_37 = arith.constant 1 : index
    %c2_38 = arith.constant 2 : index
    %c0_39 = arith.constant 0 : index
    %c0_40 = arith.constant 0 : index
    %51 = vector.load %arg1[%c1_37, %c2_38, %c0_39, %c0_40] : memref<7x7x16x8xbf16, #tpu.memory_space<vmem>>, vector<1x1x16x8xbf16>
    %52 = vector.shape_cast %51 : vector<1x1x16x8xbf16> to vector<16x8xbf16>
    %cst_41 = arith.constant 0.000000e+00 : bf16
    %53 = vector.broadcast %cst_41 : bf16 to vector<16x8xbf16>
    %54 = arith.maximumf %52, %53 : vector<16x8xbf16>
    %55 = arith.extf %54 : vector<16x8xbf16> to vector<16x8xf32>
    %c1_42 = arith.constant 1 : index
    %c3_43 = arith.constant 3 : index
    %c0_44 = arith.constant 0 : index
    %c0_45 = arith.constant 0 : index
    %56 = vector.load %arg1[%c1_42, %c3_43, %c0_44, %c0_45] : memref<7x7x16x8xbf16, #tpu.memory_space<vmem>>, vector<1x1x16x8xbf16>
    %57 = vector.shape_cast %56 : vector<1x1x16x8xbf16> to vector<16x8xbf16>
    %cst_46 = arith.constant 0.000000e+00 : bf16
    %58 = vector.broadcast %cst_46 : bf16 to vector<16x8xbf16>
    %59 = arith.maximumf %57, %58 : vector<16x8xbf16>
    %60 = arith.extf %59 : vector<16x8xbf16> to vector<16x8xf32>
    %c1_47 = arith.constant 1 : index
    %c4_48 = arith.constant 4 : index
    %c0_49 = arith.constant 0 : index
    %c0_50 = arith.constant 0 : index
    %61 = vector.load %arg1[%c1_47, %c4_48, %c0_49, %c0_50] : memref<7x7x16x8xbf16, #tpu.memory_space<vmem>>, vector<1x1x16x8xbf16>
    %62 = vector.shape_cast %61 : vector<1x1x16x8xbf16> to vector<16x8xbf16>
    %cst_51 = arith.constant 0.000000e+00 : bf16
    %63 = vector.broadcast %cst_51 : bf16 to vector<16x8xbf16>
    %64 = arith.maximumf %62, %63 : vector<16x8xbf16>
    %65 = arith.extf %64 : vector<16x8xbf16> to vector<16x8xf32>
    %c1_52 = arith.constant 1 : index
    %c5_53 = arith.constant 5 : index
    %c0_54 = arith.constant 0 : index
    %c0_55 = arith.constant 0 : index
    %66 = vector.load %arg1[%c1_52, %c5_53, %c0_54, %c0_55] : memref<7x7x16x8xbf16, #tpu.memory_space<vmem>>, vector<1x1x16x8xbf16>
    %67 = vector.shape_cast %66 : vector<1x1x16x8xbf16> to vector<16x8xbf16>
    %cst_56 = arith.constant 0.000000e+00 : bf16
    %68 = vector.broadcast %cst_56 : bf16 to vector<16x8xbf16>
    %69 = arith.maximumf %67, %68 : vector<16x8xbf16>
    %70 = arith.extf %69 : vector<16x8xbf16> to vector<16x8xf32>
    %c1_57 = arith.constant 1 : index
    %c6_58 = arith.constant 6 : index
    %c0_59 = arith.constant 0 : index
    %c0_60 = arith.constant 0 : index
    %71 = vector.load %arg1[%c1_57, %c6_58, %c0_59, %c0_60] : memref<7x7x16x8xbf16, #tpu.memory_space<vmem>>, vector<1x1x16x8xbf16>
    %72 = vector.shape_cast %71 : vector<1x1x16x8xbf16> to vector<16x8xbf16>
    %cst_61 = arith.constant 0.000000e+00 : bf16
    %73 = vector.broadcast %cst_61 : bf16 to vector<16x8xbf16>
    %74 = arith.maximumf %72, %73 : vector<16x8xbf16>
    %75 = arith.extf %74 : vector<16x8xbf16> to vector<16x8xf32>
    %76 = arith.addf %55, %60 : vector<16x8xf32>
    %77 = arith.addf %76, %65 : vector<16x8xf32>
    %78 = arith.addf %77, %45 : vector<16x8xf32>
    %79 = arith.addf %78, %50 : vector<16x8xf32>
    %80 = arith.addf %77, %70 : vector<16x8xf32>
    %81 = arith.addf %80, %75 : vector<16x8xf32>
    %c2_62 = arith.constant 2 : index
    %c0_63 = arith.constant 0 : index
    %c0_64 = arith.constant 0 : index
    %c0_65 = arith.constant 0 : index
    %82 = vector.load %arg1[%c2_62, %c0_63, %c0_64, %c0_65] : memref<7x7x16x8xbf16, #tpu.memory_space<vmem>>, vector<1x1x16x8xbf16>
    %83 = vector.shape_cast %82 : vector<1x1x16x8xbf16> to vector<16x8xbf16>
    %cst_66 = arith.constant 0.000000e+00 : bf16
    %84 = vector.broadcast %cst_66 : bf16 to vector<16x8xbf16>
    %85 = arith.maximumf %83, %84 : vector<16x8xbf16>
    %86 = arith.extf %85 : vector<16x8xbf16> to vector<16x8xf32>
    %c2_67 = arith.constant 2 : index
    %c1_68 = arith.constant 1 : index
    %c0_69 = arith.constant 0 : index
    %c0_70 = arith.constant 0 : index
    %87 = vector.load %arg1[%c2_67, %c1_68, %c0_69, %c0_70] : memref<7x7x16x8xbf16, #tpu.memory_space<vmem>>, vector<1x1x16x8xbf16>
    %88 = vector.shape_cast %87 : vector<1x1x16x8xbf16> to vector<16x8xbf16>
    %cst_71 = arith.constant 0.000000e+00 : bf16
    %89 = vector.broadcast %cst_71 : bf16 to vector<16x8xbf16>
    %90 = arith.maximumf %88, %89 : vector<16x8xbf16>
    %91 = arith.extf %90 : vector<16x8xbf16> to vector<16x8xf32>
    %c2_72 = arith.constant 2 : index
    %c2_73 = arith.constant 2 : index
    %c0_74 = arith.constant 0 : index
    %c0_75 = arith.constant 0 : index
    %92 = vector.load %arg1[%c2_72, %c2_73, %c0_74, %c0_75] : memref<7x7x16x8xbf16, #tpu.memory_space<vmem>>, vector<1x1x16x8xbf16>
    %93 = vector.shape_cast %92 : vector<1x1x16x8xbf16> to vector<16x8xbf16>
    %cst_76 = arith.constant 0.000000e+00 : bf16
    %94 = vector.broadcast %cst_76 : bf16 to vector<16x8xbf16>
    %95 = arith.maximumf %93, %94 : vector<16x8xbf16>
    %96 = arith.extf %95 : vector<16x8xbf16> to vector<16x8xf32>
    %c2_77 = arith.constant 2 : index
    %c3_78 = arith.constant 3 : index
    %c0_79 = arith.constant 0 : index
    %c0_80 = arith.constant 0 : index
    %97 = vector.load %arg1[%c2_77, %c3_78, %c0_79, %c0_80] : memref<7x7x16x8xbf16, #tpu.memory_space<vmem>>, vector<1x1x16x8xbf16>
    %98 = vector.shape_cast %97 : vector<1x1x16x8xbf16> to vector<16x8xbf16>
    %cst_81 = arith.constant 0.000000e+00 : bf16
    %99 = vector.broadcast %cst_81 : bf16 to vector<16x8xbf16>
    %100 = arith.maximumf %98, %99 : vector<16x8xbf16>
    %101 = arith.extf %100 : vector<16x8xbf16> to vector<16x8xf32>
    %c2_82 = arith.constant 2 : index
    %c4_83 = arith.constant 4 : index
    %c0_84 = arith.constant 0 : index
    %c0_85 = arith.constant 0 : index
    %102 = vector.load %arg1[%c2_82, %c4_83, %c0_84, %c0_85] : memref<7x7x16x8xbf16, #tpu.memory_space<vmem>>, vector<1x1x16x8xbf16>
    %103 = vector.shape_cast %102 : vector<1x1x16x8xbf16> to vector<16x8xbf16>
    %cst_86 = arith.constant 0.000000e+00 : bf16
    %104 = vector.broadcast %cst_86 : bf16 to vector<16x8xbf16>
    %105 = arith.maximumf %103, %104 : vector<16x8xbf16>
    %106 = arith.extf %105 : vector<16x8xbf16> to vector<16x8xf32>
    %c2_87 = arith.constant 2 : index
    %c5_88 = arith.constant 5 : index
    %c0_89 = arith.constant 0 : index
    %c0_90 = arith.constant 0 : index
    %107 = vector.load %arg1[%c2_87, %c5_88, %c0_89, %c0_90] : memref<7x7x16x8xbf16, #tpu.memory_space<vmem>>, vector<1x1x16x8xbf16>
    %108 = vector.shape_cast %107 : vector<1x1x16x8xbf16> to vector<16x8xbf16>
    %cst_91 = arith.constant 0.000000e+00 : bf16
    %109 = vector.broadcast %cst_91 : bf16 to vector<16x8xbf16>
    %110 = arith.maximumf %108, %109 : vector<16x8xbf16>
    %111 = arith.extf %110 : vector<16x8xbf16> to vector<16x8xf32>
    %c2_92 = arith.constant 2 : index
    %c6_93 = arith.constant 6 : index
    %c0_94 = arith.constant 0 : index
    %c0_95 = arith.constant 0 : index
    %112 = vector.load %arg1[%c2_92, %c6_93, %c0_94, %c0_95] : memref<7x7x16x8xbf16, #tpu.memory_space<vmem>>, vector<1x1x16x8xbf16>
    %113 = vector.shape_cast %112 : vector<1x1x16x8xbf16> to vector<16x8xbf16>
    %cst_96 = arith.constant 0.000000e+00 : bf16
    %114 = vector.broadcast %cst_96 : bf16 to vector<16x8xbf16>
    %115 = arith.maximumf %113, %114 : vector<16x8xbf16>
    %116 = arith.extf %115 : vector<16x8xbf16> to vector<16x8xf32>
    %117 = arith.addf %96, %101 : vector<16x8xf32>
    %118 = arith.addf %117, %106 : vector<16x8xf32>
    %119 = arith.addf %118, %86 : vector<16x8xf32>
    %120 = arith.addf %119, %91 : vector<16x8xf32>
    %121 = arith.addf %118, %111 : vector<16x8xf32>
    %122 = arith.addf %121, %116 : vector<16x8xf32>
    %c3_97 = arith.constant 3 : index
    %c0_98 = arith.constant 0 : index
    %c0_99 = arith.constant 0 : index
    %c0_100 = arith.constant 0 : index
    %123 = vector.load %arg1[%c3_97, %c0_98, %c0_99, %c0_100] : memref<7x7x16x8xbf16, #tpu.memory_space<vmem>>, vector<1x1x16x8xbf16>
    %124 = vector.shape_cast %123 : vector<1x1x16x8xbf16> to vector<16x8xbf16>
    %cst_101 = arith.constant 0.000000e+00 : bf16
    %125 = vector.broadcast %cst_101 : bf16 to vector<16x8xbf16>
    %126 = arith.maximumf %124, %125 : vector<16x8xbf16>
    %127 = arith.extf %126 : vector<16x8xbf16> to vector<16x8xf32>
    %c3_102 = arith.constant 3 : index
    %c1_103 = arith.constant 1 : index
    %c0_104 = arith.constant 0 : index
    %c0_105 = arith.constant 0 : index
    %128 = vector.load %arg1[%c3_102, %c1_103, %c0_104, %c0_105] : memref<7x7x16x8xbf16, #tpu.memory_space<vmem>>, vector<1x1x16x8xbf16>
    %129 = vector.shape_cast %128 : vector<1x1x16x8xbf16> to vector<16x8xbf16>
    %cst_106 = arith.constant 0.000000e+00 : bf16
    %130 = vector.broadcast %cst_106 : bf16 to vector<16x8xbf16>
    %131 = arith.maximumf %129, %130 : vector<16x8xbf16>
    %132 = arith.extf %131 : vector<16x8xbf16> to vector<16x8xf32>
    %c3_107 = arith.constant 3 : index
    %c2_108 = arith.constant 2 : index
    %c0_109 = arith.constant 0 : index
    %c0_110 = arith.constant 0 : index
    %133 = vector.load %arg1[%c3_107, %c2_108, %c0_109, %c0_110] : memref<7x7x16x8xbf16, #tpu.memory_space<vmem>>, vector<1x1x16x8xbf16>
    %134 = vector.shape_cast %133 : vector<1x1x16x8xbf16> to vector<16x8xbf16>
    %cst_111 = arith.constant 0.000000e+00 : bf16
    %135 = vector.broadcast %cst_111 : bf16 to vector<16x8xbf16>
    %136 = arith.maximumf %134, %135 : vector<16x8xbf16>
    %137 = arith.extf %136 : vector<16x8xbf16> to vector<16x8xf32>
    %c3_112 = arith.constant 3 : index
    %c3_113 = arith.constant 3 : index
    %c0_114 = arith.constant 0 : index
    %c0_115 = arith.constant 0 : index
    %138 = vector.load %arg1[%c3_112, %c3_113, %c0_114, %c0_115] : memref<7x7x16x8xbf16, #tpu.memory_space<vmem>>, vector<1x1x16x8xbf16>
    %139 = vector.shape_cast %138 : vector<1x1x16x8xbf16> to vector<16x8xbf16>
    %cst_116 = arith.constant 0.000000e+00 : bf16
    %140 = vector.broadcast %cst_116 : bf16 to vector<16x8xbf16>
    %141 = arith.maximumf %139, %140 : vector<16x8xbf16>
    %142 = arith.extf %141 : vector<16x8xbf16> to vector<16x8xf32>
    %c3_117 = arith.constant 3 : index
    %c4_118 = arith.constant 4 : index
    %c0_119 = arith.constant 0 : index
    %c0_120 = arith.constant 0 : index
    %143 = vector.load %arg1[%c3_117, %c4_118, %c0_119, %c0_120] : memref<7x7x16x8xbf16, #tpu.memory_space<vmem>>, vector<1x1x16x8xbf16>
    %144 = vector.shape_cast %143 : vector<1x1x16x8xbf16> to vector<16x8xbf16>
    %cst_121 = arith.constant 0.000000e+00 : bf16
    %145 = vector.broadcast %cst_121 : bf16 to vector<16x8xbf16>
    %146 = arith.maximumf %144, %145 : vector<16x8xbf16>
    %147 = arith.extf %146 : vector<16x8xbf16> to vector<16x8xf32>
    %c3_122 = arith.constant 3 : index
    %c5_123 = arith.constant 5 : index
    %c0_124 = arith.constant 0 : index
    %c0_125 = arith.constant 0 : index
    %148 = vector.load %arg1[%c3_122, %c5_123, %c0_124, %c0_125] : memref<7x7x16x8xbf16, #tpu.memory_space<vmem>>, vector<1x1x16x8xbf16>
    %149 = vector.shape_cast %148 : vector<1x1x16x8xbf16> to vector<16x8xbf16>
    %cst_126 = arith.constant 0.000000e+00 : bf16
    %150 = vector.broadcast %cst_126 : bf16 to vector<16x8xbf16>
    %151 = arith.maximumf %149, %150 : vector<16x8xbf16>
    %152 = arith.extf %151 : vector<16x8xbf16> to vector<16x8xf32>
    %c3_127 = arith.constant 3 : index
    %c6_128 = arith.constant 6 : index
    %c0_129 = arith.constant 0 : index
    %c0_130 = arith.constant 0 : index
    %153 = vector.load %arg1[%c3_127, %c6_128, %c0_129, %c0_130] : memref<7x7x16x8xbf16, #tpu.memory_space<vmem>>, vector<1x1x16x8xbf16>
    %154 = vector.shape_cast %153 : vector<1x1x16x8xbf16> to vector<16x8xbf16>
    %cst_131 = arith.constant 0.000000e+00 : bf16
    %155 = vector.broadcast %cst_131 : bf16 to vector<16x8xbf16>
    %156 = arith.maximumf %154, %155 : vector<16x8xbf16>
    %157 = arith.extf %156 : vector<16x8xbf16> to vector<16x8xf32>
    %158 = arith.addf %137, %142 : vector<16x8xf32>
    %159 = arith.addf %158, %147 : vector<16x8xf32>
    %160 = arith.addf %159, %127 : vector<16x8xf32>
    %161 = arith.addf %160, %132 : vector<16x8xf32>
    %162 = arith.addf %159, %152 : vector<16x8xf32>
    %163 = arith.addf %162, %157 : vector<16x8xf32>
    %c4_132 = arith.constant 4 : index
    %c0_133 = arith.constant 0 : index
    %c0_134 = arith.constant 0 : index
    %c0_135 = arith.constant 0 : index
    %164 = vector.load %arg1[%c4_132, %c0_133, %c0_134, %c0_135] : memref<7x7x16x8xbf16, #tpu.memory_space<vmem>>, vector<1x1x16x8xbf16>
    %165 = vector.shape_cast %164 : vector<1x1x16x8xbf16> to vector<16x8xbf16>
    %cst_136 = arith.constant 0.000000e+00 : bf16
    %166 = vector.broadcast %cst_136 : bf16 to vector<16x8xbf16>
    %167 = arith.maximumf %165, %166 : vector<16x8xbf16>
    %168 = arith.extf %167 : vector<16x8xbf16> to vector<16x8xf32>
    %c4_137 = arith.constant 4 : index
    %c1_138 = arith.constant 1 : index
    %c0_139 = arith.constant 0 : index
    %c0_140 = arith.constant 0 : index
    %169 = vector.load %arg1[%c4_137, %c1_138, %c0_139, %c0_140] : memref<7x7x16x8xbf16, #tpu.memory_space<vmem>>, vector<1x1x16x8xbf16>
    %170 = vector.shape_cast %169 : vector<1x1x16x8xbf16> to vector<16x8xbf16>
    %cst_141 = arith.constant 0.000000e+00 : bf16
    %171 = vector.broadcast %cst_141 : bf16 to vector<16x8xbf16>
    %172 = arith.maximumf %170, %171 : vector<16x8xbf16>
    %173 = arith.extf %172 : vector<16x8xbf16> to vector<16x8xf32>
    %c4_142 = arith.constant 4 : index
    %c2_143 = arith.constant 2 : index
    %c0_144 = arith.constant 0 : index
    %c0_145 = arith.constant 0 : index
    %174 = vector.load %arg1[%c4_142, %c2_143, %c0_144, %c0_145] : memref<7x7x16x8xbf16, #tpu.memory_space<vmem>>, vector<1x1x16x8xbf16>
    %175 = vector.shape_cast %174 : vector<1x1x16x8xbf16> to vector<16x8xbf16>
    %cst_146 = arith.constant 0.000000e+00 : bf16
    %176 = vector.broadcast %cst_146 : bf16 to vector<16x8xbf16>
    %177 = arith.maximumf %175, %176 : vector<16x8xbf16>
    %178 = arith.extf %177 : vector<16x8xbf16> to vector<16x8xf32>
    %c4_147 = arith.constant 4 : index
    %c3_148 = arith.constant 3 : index
    %c0_149 = arith.constant 0 : index
    %c0_150 = arith.constant 0 : index
    %179 = vector.load %arg1[%c4_147, %c3_148, %c0_149, %c0_150] : memref<7x7x16x8xbf16, #tpu.memory_space<vmem>>, vector<1x1x16x8xbf16>
    %180 = vector.shape_cast %179 : vector<1x1x16x8xbf16> to vector<16x8xbf16>
    %cst_151 = arith.constant 0.000000e+00 : bf16
    %181 = vector.broadcast %cst_151 : bf16 to vector<16x8xbf16>
    %182 = arith.maximumf %180, %181 : vector<16x8xbf16>
    %183 = arith.extf %182 : vector<16x8xbf16> to vector<16x8xf32>
    %c4_152 = arith.constant 4 : index
    %c4_153 = arith.constant 4 : index
    %c0_154 = arith.constant 0 : index
    %c0_155 = arith.constant 0 : index
    %184 = vector.load %arg1[%c4_152, %c4_153, %c0_154, %c0_155] : memref<7x7x16x8xbf16, #tpu.memory_space<vmem>>, vector<1x1x16x8xbf16>
    %185 = vector.shape_cast %184 : vector<1x1x16x8xbf16> to vector<16x8xbf16>
    %cst_156 = arith.constant 0.000000e+00 : bf16
    %186 = vector.broadcast %cst_156 : bf16 to vector<16x8xbf16>
    %187 = arith.maximumf %185, %186 : vector<16x8xbf16>
    %188 = arith.extf %187 : vector<16x8xbf16> to vector<16x8xf32>
    %c4_157 = arith.constant 4 : index
    %c5_158 = arith.constant 5 : index
    %c0_159 = arith.constant 0 : index
    %c0_160 = arith.constant 0 : index
    %189 = vector.load %arg1[%c4_157, %c5_158, %c0_159, %c0_160] : memref<7x7x16x8xbf16, #tpu.memory_space<vmem>>, vector<1x1x16x8xbf16>
    %190 = vector.shape_cast %189 : vector<1x1x16x8xbf16> to vector<16x8xbf16>
    %cst_161 = arith.constant 0.000000e+00 : bf16
    %191 = vector.broadcast %cst_161 : bf16 to vector<16x8xbf16>
    %192 = arith.maximumf %190, %191 : vector<16x8xbf16>
    %193 = arith.extf %192 : vector<16x8xbf16> to vector<16x8xf32>
    %c4_162 = arith.constant 4 : index
    %c6_163 = arith.constant 6 : index
    %c0_164 = arith.constant 0 : index
    %c0_165 = arith.constant 0 : index
    %194 = vector.load %arg1[%c4_162, %c6_163, %c0_164, %c0_165] : memref<7x7x16x8xbf16, #tpu.memory_space<vmem>>, vector<1x1x16x8xbf16>
    %195 = vector.shape_cast %194 : vector<1x1x16x8xbf16> to vector<16x8xbf16>
    %cst_166 = arith.constant 0.000000e+00 : bf16
    %196 = vector.broadcast %cst_166 : bf16 to vector<16x8xbf16>
    %197 = arith.maximumf %195, %196 : vector<16x8xbf16>
    %198 = arith.extf %197 : vector<16x8xbf16> to vector<16x8xf32>
    %199 = arith.addf %178, %183 : vector<16x8xf32>
    %200 = arith.addf %199, %188 : vector<16x8xf32>
    %201 = arith.addf %200, %168 : vector<16x8xf32>
    %202 = arith.addf %201, %173 : vector<16x8xf32>
    %203 = arith.addf %200, %193 : vector<16x8xf32>
    %204 = arith.addf %203, %198 : vector<16x8xf32>
    %c5_167 = arith.constant 5 : index
    %c0_168 = arith.constant 0 : index
    %c0_169 = arith.constant 0 : index
    %c0_170 = arith.constant 0 : index
    %205 = vector.load %arg1[%c5_167, %c0_168, %c0_169, %c0_170] : memref<7x7x16x8xbf16, #tpu.memory_space<vmem>>, vector<1x1x16x8xbf16>
    %206 = vector.shape_cast %205 : vector<1x1x16x8xbf16> to vector<16x8xbf16>
    %cst_171 = arith.constant 0.000000e+00 : bf16
    %207 = vector.broadcast %cst_171 : bf16 to vector<16x8xbf16>
    %208 = arith.maximumf %206, %207 : vector<16x8xbf16>
    %209 = arith.extf %208 : vector<16x8xbf16> to vector<16x8xf32>
    %c5_172 = arith.constant 5 : index
    %c1_173 = arith.constant 1 : index
    %c0_174 = arith.constant 0 : index
    %c0_175 = arith.constant 0 : index
    %210 = vector.load %arg1[%c5_172, %c1_173, %c0_174, %c0_175] : memref<7x7x16x8xbf16, #tpu.memory_space<vmem>>, vector<1x1x16x8xbf16>
    %211 = vector.shape_cast %210 : vector<1x1x16x8xbf16> to vector<16x8xbf16>
    %cst_176 = arith.constant 0.000000e+00 : bf16
    %212 = vector.broadcast %cst_176 : bf16 to vector<16x8xbf16>
    %213 = arith.maximumf %211, %212 : vector<16x8xbf16>
    %214 = arith.extf %213 : vector<16x8xbf16> to vector<16x8xf32>
    %c5_177 = arith.constant 5 : index
    %c2_178 = arith.constant 2 : index
    %c0_179 = arith.constant 0 : index
    %c0_180 = arith.constant 0 : index
    %215 = vector.load %arg1[%c5_177, %c2_178, %c0_179, %c0_180] : memref<7x7x16x8xbf16, #tpu.memory_space<vmem>>, vector<1x1x16x8xbf16>
    %216 = vector.shape_cast %215 : vector<1x1x16x8xbf16> to vector<16x8xbf16>
    %cst_181 = arith.constant 0.000000e+00 : bf16
    %217 = vector.broadcast %cst_181 : bf16 to vector<16x8xbf16>
    %218 = arith.maximumf %216, %217 : vector<16x8xbf16>
    %219 = arith.extf %218 : vector<16x8xbf16> to vector<16x8xf32>
    %c5_182 = arith.constant 5 : index
    %c3_183 = arith.constant 3 : index
    %c0_184 = arith.constant 0 : index
    %c0_185 = arith.constant 0 : index
    %220 = vector.load %arg1[%c5_182, %c3_183, %c0_184, %c0_185] : memref<7x7x16x8xbf16, #tpu.memory_space<vmem>>, vector<1x1x16x8xbf16>
    %221 = vector.shape_cast %220 : vector<1x1x16x8xbf16> to vector<16x8xbf16>
    %cst_186 = arith.constant 0.000000e+00 : bf16
    %222 = vector.broadcast %cst_186 : bf16 to vector<16x8xbf16>
    %223 = arith.maximumf %221, %222 : vector<16x8xbf16>
    %224 = arith.extf %223 : vector<16x8xbf16> to vector<16x8xf32>
    %c5_187 = arith.constant 5 : index
    %c4_188 = arith.constant 4 : index
    %c0_189 = arith.constant 0 : index
    %c0_190 = arith.constant 0 : index
    %225 = vector.load %arg1[%c5_187, %c4_188, %c0_189, %c0_190] : memref<7x7x16x8xbf16, #tpu.memory_space<vmem>>, vector<1x1x16x8xbf16>
    %226 = vector.shape_cast %225 : vector<1x1x16x8xbf16> to vector<16x8xbf16>
    %cst_191 = arith.constant 0.000000e+00 : bf16
    %227 = vector.broadcast %cst_191 : bf16 to vector<16x8xbf16>
    %228 = arith.maximumf %226, %227 : vector<16x8xbf16>
    %229 = arith.extf %228 : vector<16x8xbf16> to vector<16x8xf32>
    %c5_192 = arith.constant 5 : index
    %c5_193 = arith.constant 5 : index
    %c0_194 = arith.constant 0 : index
    %c0_195 = arith.constant 0 : index
    %230 = vector.load %arg1[%c5_192, %c5_193, %c0_194, %c0_195] : memref<7x7x16x8xbf16, #tpu.memory_space<vmem>>, vector<1x1x16x8xbf16>
    %231 = vector.shape_cast %230 : vector<1x1x16x8xbf16> to vector<16x8xbf16>
    %cst_196 = arith.constant 0.000000e+00 : bf16
    %232 = vector.broadcast %cst_196 : bf16 to vector<16x8xbf16>
    %233 = arith.maximumf %231, %232 : vector<16x8xbf16>
    %234 = arith.extf %233 : vector<16x8xbf16> to vector<16x8xf32>
    %c5_197 = arith.constant 5 : index
    %c6_198 = arith.constant 6 : index
    %c0_199 = arith.constant 0 : index
    %c0_200 = arith.constant 0 : index
    %235 = vector.load %arg1[%c5_197, %c6_198, %c0_199, %c0_200] : memref<7x7x16x8xbf16, #tpu.memory_space<vmem>>, vector<1x1x16x8xbf16>
    %236 = vector.shape_cast %235 : vector<1x1x16x8xbf16> to vector<16x8xbf16>
    %cst_201 = arith.constant 0.000000e+00 : bf16
    %237 = vector.broadcast %cst_201 : bf16 to vector<16x8xbf16>
    %238 = arith.maximumf %236, %237 : vector<16x8xbf16>
    %239 = arith.extf %238 : vector<16x8xbf16> to vector<16x8xf32>
    %240 = arith.addf %219, %224 : vector<16x8xf32>
    %241 = arith.addf %240, %229 : vector<16x8xf32>
    %242 = arith.addf %241, %209 : vector<16x8xf32>
    %243 = arith.addf %242, %214 : vector<16x8xf32>
    %244 = arith.addf %241, %234 : vector<16x8xf32>
    %245 = arith.addf %244, %239 : vector<16x8xf32>
    %c6_202 = arith.constant 6 : index
    %c0_203 = arith.constant 0 : index
    %c0_204 = arith.constant 0 : index
    %c0_205 = arith.constant 0 : index
    %246 = vector.load %arg1[%c6_202, %c0_203, %c0_204, %c0_205] : memref<7x7x16x8xbf16, #tpu.memory_space<vmem>>, vector<1x1x16x8xbf16>
    %247 = vector.shape_cast %246 : vector<1x1x16x8xbf16> to vector<16x8xbf16>
    %cst_206 = arith.constant 0.000000e+00 : bf16
    %248 = vector.broadcast %cst_206 : bf16 to vector<16x8xbf16>
    %249 = arith.maximumf %247, %248 : vector<16x8xbf16>
    %250 = arith.extf %249 : vector<16x8xbf16> to vector<16x8xf32>
    %c6_207 = arith.constant 6 : index
    %c1_208 = arith.constant 1 : index
    %c0_209 = arith.constant 0 : index
    %c0_210 = arith.constant 0 : index
    %251 = vector.load %arg1[%c6_207, %c1_208, %c0_209, %c0_210] : memref<7x7x16x8xbf16, #tpu.memory_space<vmem>>, vector<1x1x16x8xbf16>
    %252 = vector.shape_cast %251 : vector<1x1x16x8xbf16> to vector<16x8xbf16>
    %cst_211 = arith.constant 0.000000e+00 : bf16
    %253 = vector.broadcast %cst_211 : bf16 to vector<16x8xbf16>
    %254 = arith.maximumf %252, %253 : vector<16x8xbf16>
    %255 = arith.extf %254 : vector<16x8xbf16> to vector<16x8xf32>
    %c6_212 = arith.constant 6 : index
    %c2_213 = arith.constant 2 : index
    %c0_214 = arith.constant 0 : index
    %c0_215 = arith.constant 0 : index
    %256 = vector.load %arg1[%c6_212, %c2_213, %c0_214, %c0_215] : memref<7x7x16x8xbf16, #tpu.memory_space<vmem>>, vector<1x1x16x8xbf16>
    %257 = vector.shape_cast %256 : vector<1x1x16x8xbf16> to vector<16x8xbf16>
    %cst_216 = arith.constant 0.000000e+00 : bf16
    %258 = vector.broadcast %cst_216 : bf16 to vector<16x8xbf16>
    %259 = arith.maximumf %257, %258 : vector<16x8xbf16>
    %260 = arith.extf %259 : vector<16x8xbf16> to vector<16x8xf32>
    %c6_217 = arith.constant 6 : index
    %c3_218 = arith.constant 3 : index
    %c0_219 = arith.constant 0 : index
    %c0_220 = arith.constant 0 : index
    %261 = vector.load %arg1[%c6_217, %c3_218, %c0_219, %c0_220] : memref<7x7x16x8xbf16, #tpu.memory_space<vmem>>, vector<1x1x16x8xbf16>
    %262 = vector.shape_cast %261 : vector<1x1x16x8xbf16> to vector<16x8xbf16>
    %cst_221 = arith.constant 0.000000e+00 : bf16
    %263 = vector.broadcast %cst_221 : bf16 to vector<16x8xbf16>
    %264 = arith.maximumf %262, %263 : vector<16x8xbf16>
    %265 = arith.extf %264 : vector<16x8xbf16> to vector<16x8xf32>
    %c6_222 = arith.constant 6 : index
    %c4_223 = arith.constant 4 : index
    %c0_224 = arith.constant 0 : index
    %c0_225 = arith.constant 0 : index
    %266 = vector.load %arg1[%c6_222, %c4_223, %c0_224, %c0_225] : memref<7x7x16x8xbf16, #tpu.memory_space<vmem>>, vector<1x1x16x8xbf16>
    %267 = vector.shape_cast %266 : vector<1x1x16x8xbf16> to vector<16x8xbf16>
    %cst_226 = arith.constant 0.000000e+00 : bf16
    %268 = vector.broadcast %cst_226 : bf16 to vector<16x8xbf16>
    %269 = arith.maximumf %267, %268 : vector<16x8xbf16>
    %270 = arith.extf %269 : vector<16x8xbf16> to vector<16x8xf32>
    %c6_227 = arith.constant 6 : index
    %c5_228 = arith.constant 5 : index
    %c0_229 = arith.constant 0 : index
    %c0_230 = arith.constant 0 : index
    %271 = vector.load %arg1[%c6_227, %c5_228, %c0_229, %c0_230] : memref<7x7x16x8xbf16, #tpu.memory_space<vmem>>, vector<1x1x16x8xbf16>
    %272 = vector.shape_cast %271 : vector<1x1x16x8xbf16> to vector<16x8xbf16>
    %cst_231 = arith.constant 0.000000e+00 : bf16
    %273 = vector.broadcast %cst_231 : bf16 to vector<16x8xbf16>
    %274 = arith.maximumf %272, %273 : vector<16x8xbf16>
    %275 = arith.extf %274 : vector<16x8xbf16> to vector<16x8xf32>
    %c6_232 = arith.constant 6 : index
    %c6_233 = arith.constant 6 : index
    %c0_234 = arith.constant 0 : index
    %c0_235 = arith.constant 0 : index
    %276 = vector.load %arg1[%c6_232, %c6_233, %c0_234, %c0_235] : memref<7x7x16x8xbf16, #tpu.memory_space<vmem>>, vector<1x1x16x8xbf16>
    %277 = vector.shape_cast %276 : vector<1x1x16x8xbf16> to vector<16x8xbf16>
    %cst_236 = arith.constant 0.000000e+00 : bf16
    %278 = vector.broadcast %cst_236 : bf16 to vector<16x8xbf16>
    %279 = arith.maximumf %277, %278 : vector<16x8xbf16>
    %280 = arith.extf %279 : vector<16x8xbf16> to vector<16x8xf32>
    %281 = arith.addf %260, %265 : vector<16x8xf32>
    %282 = arith.addf %281, %270 : vector<16x8xf32>
    %283 = arith.addf %282, %250 : vector<16x8xf32>
    %284 = arith.addf %283, %255 : vector<16x8xf32>
    %285 = arith.addf %282, %275 : vector<16x8xf32>
    %286 = arith.addf %285, %280 : vector<16x8xf32>
    %287 = arith.addf %120, %161 : vector<16x8xf32>
    %288 = arith.addf %287, %202 : vector<16x8xf32>
    %289 = arith.addf %122, %163 : vector<16x8xf32>
    %290 = arith.addf %289, %204 : vector<16x8xf32>
    %291 = arith.addf %288, %38 : vector<16x8xf32>
    %292 = arith.addf %291, %79 : vector<16x8xf32>
    %293 = arith.truncf %292 : vector<16x8xf32> to vector<16x8xbf16>
    %c0_237 = arith.constant 0 : index
    %c0_238 = arith.constant 0 : index
    %294 = vector.load %arg2[%c0_237, %c0_238] : memref<8x128xbf16, #tpu.memory_space<vmem>>, vector<8x128xbf16>
    %cst_239 = arith.constant dense<0.000000e+00> : vector<16x128xf32>
    %295 = tpu.matmul %293, %294, %cst_239 {dimension_numbers = #tpu.dot_dimension_numbers<[1], [0], [0], [1], [0, 0, 1, 1], [], []>} : vector<16x8xbf16>, vector<8x128xbf16>, vector<16x128xf32> -> vector<16x128xf32>
    %c0_240 = arith.constant 0 : index
    %c0_241 = arith.constant 0 : index
    %296 = vector.load %arg3[%c0_240, %c0_241] : memref<1x128xf32, #tpu.memory_space<vmem>>, vector<1x128xf32>
    %297 = vector.broadcast %296 : vector<1x128xf32> to vector<16x128xf32>
    %298 = arith.addf %295, %297 : vector<16x128xf32>
    %cst_242 = arith.constant 0.000000e+00 : f32
    %299 = vector.broadcast %cst_242 : f32 to vector<16x128xf32>
    %300 = arith.maximumf %298, %299 : vector<16x128xf32>
    %301 = arith.truncf %300 : vector<16x128xf32> to vector<16x128xbf16>
    %c0_243 = arith.constant 0 : index
    %c0_244 = arith.constant 0 : index
    %302 = vector.load %arg8[%c0_243, %c0_244] : memref<16x512xbf16, #tpu.memory_space<vmem>>, vector<16x128xbf16>
    tpu.vector_store %arg8[%c0_243, %c0_244], %301 {strides = array<i32>} : memref<16x512xbf16, #tpu.memory_space<vmem>>, vector<16x128xbf16>,
    %303 = arith.addf %290, %40 : vector<16x8xf32>
    %304 = arith.addf %303, %81 : vector<16x8xf32>
    %305 = arith.truncf %304 : vector<16x8xf32> to vector<16x8xbf16>
    %c0_245 = arith.constant 0 : index
    %c0_246 = arith.constant 0 : index
    %306 = vector.load %arg2[%c0_245, %c0_246] : memref<8x128xbf16, #tpu.memory_space<vmem>>, vector<8x128xbf16>
    %cst_247 = arith.constant dense<0.000000e+00> : vector<16x128xf32>
    %307 = tpu.matmul %305, %306, %cst_247 {dimension_numbers = #tpu.dot_dimension_numbers<[1], [0], [0], [1], [0, 0, 1, 1], [], []>} : vector<16x8xbf16>, vector<8x128xbf16>, vector<16x128xf32> -> vector<16x128xf32>
    %c0_248 = arith.constant 0 : index
    %c0_249 = arith.constant 0 : index
    %308 = vector.load %arg3[%c0_248, %c0_249] : memref<1x128xf32, #tpu.memory_space<vmem>>, vector<1x128xf32>
    %309 = vector.broadcast %308 : vector<1x128xf32> to vector<16x128xf32>
    %310 = arith.addf %307, %309 : vector<16x128xf32>
    %cst_250 = arith.constant 0.000000e+00 : f32
    %311 = vector.broadcast %cst_250 : f32 to vector<16x128xf32>
    %312 = arith.maximumf %310, %311 : vector<16x128xf32>
    %313 = arith.truncf %312 : vector<16x128xf32> to vector<16x128xbf16>
    %c0_251 = arith.constant 0 : index
    %c128 = arith.constant 128 : index
    %314 = vector.load %arg8[%c0_251, %c128] : memref<16x512xbf16, #tpu.memory_space<vmem>>, vector<16x128xbf16>
    tpu.vector_store %arg8[%c0_251, %c128], %313 {strides = array<i32>} : memref<16x512xbf16, #tpu.memory_space<vmem>>, vector<16x128xbf16>,
    %315 = arith.addf %288, %243 : vector<16x8xf32>
    %316 = arith.addf %315, %284 : vector<16x8xf32>
    %317 = arith.truncf %316 : vector<16x8xf32> to vector<16x8xbf16>
    %c0_252 = arith.constant 0 : index
    %c0_253 = arith.constant 0 : index
    %318 = vector.load %arg2[%c0_252, %c0_253] : memref<8x128xbf16, #tpu.memory_space<vmem>>, vector<8x128xbf16>
    %cst_254 = arith.constant dense<0.000000e+00> : vector<16x128xf32>
    %319 = tpu.matmul %317, %318, %cst_254 {dimension_numbers = #tpu.dot_dimension_numbers<[1], [0], [0], [1], [0, 0, 1, 1], [], []>} : vector<16x8xbf16>, vector<8x128xbf16>, vector<16x128xf32> -> vector<16x128xf32>
    %c0_255 = arith.constant 0 : index
    %c0_256 = arith.constant 0 : index
    %320 = vector.load %arg3[%c0_255, %c0_256] : memref<1x128xf32, #tpu.memory_space<vmem>>, vector<1x128xf32>
    %321 = vector.broadcast %320 : vector<1x128xf32> to vector<16x128xf32>
    %322 = arith.addf %319, %321 : vector<16x128xf32>
    %cst_257 = arith.constant 0.000000e+00 : f32
    %323 = vector.broadcast %cst_257 : f32 to vector<16x128xf32>
    %324 = arith.maximumf %322, %323 : vector<16x128xf32>
    %325 = arith.truncf %324 : vector<16x128xf32> to vector<16x128xbf16>
    %c0_258 = arith.constant 0 : index
    %c256 = arith.constant 256 : index
    %326 = vector.load %arg8[%c0_258, %c256] : memref<16x512xbf16, #tpu.memory_space<vmem>>, vector<16x128xbf16>
    tpu.vector_store %arg8[%c0_258, %c256], %325 {strides = array<i32>} : memref<16x512xbf16, #tpu.memory_space<vmem>>, vector<16x128xbf16>,
    %327 = arith.addf %290, %245 : vector<16x8xf32>
    %328 = arith.addf %327, %286 : vector<16x8xf32>
    %329 = arith.truncf %328 : vector<16x8xf32> to vector<16x8xbf16>
    %c0_259 = arith.constant 0 : index
    %c0_260 = arith.constant 0 : index
    %330 = vector.load %arg2[%c0_259, %c0_260] : memref<8x128xbf16, #tpu.memory_space<vmem>>, vector<8x128xbf16>
    %cst_261 = arith.constant dense<0.000000e+00> : vector<16x128xf32>
    %331 = tpu.matmul %329, %330, %cst_261 {dimension_numbers = #tpu.dot_dimension_numbers<[1], [0], [0], [1], [0, 0, 1, 1], [], []>} : vector<16x8xbf16>, vector<8x128xbf16>, vector<16x128xf32> -> vector<16x128xf32>
    %c0_262 = arith.constant 0 : index
    %c0_263 = arith.constant 0 : index
    %332 = vector.load %arg3[%c0_262, %c0_263] : memref<1x128xf32, #tpu.memory_space<vmem>>, vector<1x128xf32>
    %333 = vector.broadcast %332 : vector<1x128xf32> to vector<16x128xf32>
    %334 = arith.addf %331, %333 : vector<16x128xf32>
    %cst_264 = arith.constant 0.000000e+00 : f32
    %335 = vector.broadcast %cst_264 : f32 to vector<16x128xf32>
    %336 = arith.maximumf %334, %335 : vector<16x128xf32>
    %337 = arith.truncf %336 : vector<16x128xf32> to vector<16x128xbf16>
    %c0_265 = arith.constant 0 : index
    %c384 = arith.constant 384 : index
    %338 = vector.load %arg8[%c0_265, %c384] : memref<16x512xbf16, #tpu.memory_space<vmem>>, vector<16x128xbf16>
    tpu.vector_store %arg8[%c0_265, %c384], %337 {strides = array<i32>} : memref<16x512xbf16, #tpu.memory_space<vmem>>, vector<16x128xbf16>,
    %c0_266 = arith.constant 0 : index
    %c0_267 = arith.constant 0 : index
    %339 = vector.load %arg8[%c0_266, %c0_267] : memref<16x512xbf16, #tpu.memory_space<vmem>>, vector<16x512xbf16>
    %c0_268 = arith.constant 0 : index
    %c0_269 = arith.constant 0 : index
    %340 = vector.load %arg4[%c0_268, %c0_269] : memref<512x768xbf16, #tpu.memory_space<vmem>>, vector<512x768xbf16>
    %cst_270 = arith.constant dense<0.000000e+00> : vector<16x768xf32>
    %341 = tpu.matmul %339, %340, %cst_270 {dimension_numbers = #tpu.dot_dimension_numbers<[1], [0], [0], [1], [0, 0, 1, 1], [], []>} : vector<16x512xbf16>, vector<512x768xbf16>, vector<16x768xf32> -> vector<16x768xf32>
    %cst_271 = arith.constant 0.000000e+00 : f32
    %342 = vector.broadcast %cst_271 : f32 to vector<16x768xf32>
    %343 = arith.maximumf %341, %342 : vector<16x768xf32>
    %344 = arith.truncf %343 : vector<16x768xf32> to vector<16x768xbf16>
    %c0_272 = arith.constant 0 : index
    %c0_273 = arith.constant 0 : index
    %345 = vector.load %arg5[%c0_272, %c0_273] : memref<768x128xbf16, #tpu.memory_space<vmem>>, vector<768x128xbf16>
    %cst_274 = arith.constant dense<0.000000e+00> : vector<16x128xf32>
    %346 = tpu.matmul %344, %345, %cst_274 {dimension_numbers = #tpu.dot_dimension_numbers<[1], [0], [0], [1], [0, 0, 1, 1], [], []>} : vector<16x768xbf16>, vector<768x128xbf16>, vector<16x128xf32> -> vector<16x128xf32>
    %c0_275 = arith.constant 0 : index
    %c0_276 = arith.constant 0 : index
    %347 = vector.load %arg6[%c0_275, %c0_276] : memref<1x128xf32, #tpu.memory_space<vmem>>, vector<1x128xf32>
    %348 = vector.broadcast %347 : vector<1x128xf32> to vector<16x128xf32>
    %349 = arith.addf %346, %348 : vector<16x128xf32>
    %c0_277 = arith.constant 0 : index
    %c0_278 = arith.constant 0 : index
    %350 = vector.load %arg7[%c0_277, %c0_278] : memref<16x128xf32, #tpu.memory_space<vmem>>, vector<16x128xf32>
    tpu.vector_store %arg7[%c0_277, %c0_278], %349 {strides = array<i32>} : memref<16x128xf32, #tpu.memory_space<vmem>>, vector<16x128xf32>,
    return
  }
  func.func @transform_0(%arg0: i32) -> (i32, i32, i32, i32) {
    %c0_i32 = arith.constant 0 : i32
    %c0_i32_0 = arith.constant 0 : i32
    %c0_i32_1 = arith.constant 0 : i32
    %c0_i32_2 = arith.constant 0 : i32
    return %c0_i32, %c0_i32_0, %arg0, %c0_i32_1 : i32, i32, i32, i32
  }
  func.func @transform_1(%arg0: i32) -> (i32, i32) {
    %c0_i32 = arith.constant 0 : i32
    %c0_i32_0 = arith.constant 0 : i32
    %c0_i32_1 = arith.constant 0 : i32
    return %c0_i32, %c0_i32_0 : i32, i32
  }
  func.func @transform_2(%arg0: i32) -> (i32, i32) {
    %c0_i32 = arith.constant 0 : i32
    %c0_i32_0 = arith.constant 0 : i32
    %c0_i32_1 = arith.constant 0 : i32
    return %c0_i32, %c0_i32_0 : i32, i32
  }
  func.func @transform_3(%arg0: i32) -> (i32, i32) {
    %c0_i32 = arith.constant 0 : i32
    %c0_i32_0 = arith.constant 0 : i32
    %c0_i32_1 = arith.constant 0 : i32
    return %c0_i32, %c0_i32_0 : i32, i32
  }
  func.func @transform_4(%arg0: i32) -> (i32, i32) {
    %c0_i32 = arith.constant 0 : i32
    %c0_i32_0 = arith.constant 0 : i32
    %c0_i32_1 = arith.constant 0 : i32
    return %c0_i32, %c0_i32_0 : i32, i32
  }
  func.func @transform_5(%arg0: i32) -> (i32, i32) {
    %c0_i32 = arith.constant 0 : i32
    %c0_i32_0 = arith.constant 0 : i32
    %c0_i32_1 = arith.constant 0 : i32
    return %c0_i32, %c0_i32_0 : i32, i32
  }
  func.func @transform_6(%arg0: i32) -> (i32, i32) {
    %c0_i32 = arith.constant 0 : i32
    %c0_i32_0 = arith.constant 0 : i32
    return %arg0, %c0_i32 : i32, i32
  }
}

</mosaic_0001>

<bundles_post_ra>
// kernel: tpu_custom_call.1
= control target key start
LH: loop header
LB: loop body
LE: loop exit
PB: predicated region body
PF: predicated region fallthrough
CT: control target
= control target key end

     0   :  { %11 = vsyncpa [#allocation4], 0  ;;  %s4987_s0 = inlined_call_operand.vmem [shape: bf16[7,7,16,8], index: 0, kind: input, shape index: {}]   ;;  %s4988_s1 = inlined_call_operand.vmem [shape: bf16[8,128], index: 1, kind: input, shape index: {}]   ;;  %s4989_s2 = inlined_call_operand.vmem [shape: f32[1,128], index: 2, kind: input, shape index: {}]   ;;  %s4990_s3 = inlined_call_operand.hbm [shape: bf16[512,768], index: 3, kind: input, shape index: {}]   ;;  %s4991_s4 = inlined_call_operand.vmem [shape: bf16[768,128], index: 4, kind: input, shape index: {}]   ;;  %s4992_s5 = inlined_call_operand.vmem [shape: f32[1,128], index: 5, kind: input, shape index: {}]   ;;  %s4993_s6 = inlined_call_operand.hbm [shape: f32[16,128], index: 6, kind: output, shape index: {}]  }
   0x1   :  { %12 = vsyncpa [#allocation5], 0  ;;  %s23_s23 = sshll.u32 %s4990_s3, 4  ;;  %s4467_s24 = smov [#allocation3]   ;;  %s24_s23 = int_to_ptr.hbm [resolvable:$true] %s23_s23 }
   0x2   :  { %s25_s25 = sshll.u32 %s4467_s24, 4  ;;  %s4468_s26 = smov 384   ;;  %s26_s25 = int_to_ptr.vmem [resolvable:$true] %s25_s25 }
   0x3   :  { %s4469_s27 = smov 24  }
   0x4   :  { %31 = dma.hbm_to_vmem [thread:$0]  %s24_s23, 24576, %s26_s25, [#allocation4], %s4468_s26, %s4468_s26, %s4469_s27  }
   0x5   :  { %4463 = dma.done.wait [#allocation4], 24576  }
   0x6   :  { %4464 = vsyncadd [#allocation4], 4294942720  ;;  %vm685_vm0 = vcmask 1043456   ;;  %v676_v0 = vld [vmem:[%s4988_s1] sm:$0xf]  ;;  %v4356_v7 = vld [vmem:[%s4987_s0 + $0x8] sm:$0xff]  }
   0x7   :  { %v714_v1 = vld [vmem:[%s4988_s1] sm:$0xf]  ;;  %v687_v3 = vsel %vm685_vm0, %v676_v0, 0  ;;  %v4357_v8 = vld [vmem:[%s4987_s0 + $0x10] sm:$0xff]   ;;  %v4358_v9 = vld [vmem:[%s4987_s0 + $0x18] sm:$0xff]   ;;  %v4166_v10 = vunpack.c.l.bf16 %v4356_v7  ;;  %v4167_v11 = vunpack.c.h.bf16 %v4356_v7  ;;  %vm681_vm1 = vcmask 64512  }
   0x8   :  { %v4161_v2 = vld [vmem:[%s4987_s0] sm:$0xff]   ;;  %v723_v4 = vsel %vm685_vm0, %v714_v1, 0  ;;  %696 = vmatpush.bf16.msra.mxu2 %v687_v3  ;;  %v4170_v12 = vunpack.c.l.bf16 %v4357_v8  ;;  %v4171_v13 = vunpack.c.h.bf16 %v4357_v8  ;;  %v4174_v16 = vunpack.c.l.bf16 %v4358_v9  ;;  %v4362_v30 = vld [vmem:[%s4987_s0 + $0x38] sm:$0xff]   ;;  %v4364_v48 = vld [vmem:[%s4987_s0 + $0x48] sm:$0xff]   ;;  %s2827_s29 = sshll.u32 %s4993_s6, 4  ;;  %s4471_s30 = smov 128   ;;  %s2828_s29 = int_to_ptr.hbm [resolvable:$true] %s2827_s29 }
   0x9   :  { %v4162_v5 = vunpack.c.l.bf16 %v4161_v2  ;;  %v4163_v6 = vunpack.c.h.bf16 %v4161_v2  ;;  %732 = vmatpush.bf16.msra.mxu3 %v723_v4  ;;  %v4175_v17 = vunpack.c.h.bf16 %v4358_v9  ;;  %v56_v18 = vmax.f32 %v4166_v10, 0.0  ;;  %v4359_v29 = vld [vmem:[%s4987_s0 + $0x20] sm:$0xff]   ;;  %s4472_s7 = smov 8  }
   0xa   :  { %v57_v19 = vmax.f32 %v4167_v11, 0.0  ;;  %v67_v20 = vmax.f32 %v4170_v12, 0.0  ;;  %v68_v21 = vmax.f32 %v4171_v13, 0.0  ;;  %v78_v24 = vmax.f32 %v4174_v16, 0.0  ;;  %v4363_v35 = vld [vmem:[%s4987_s0 + $0x40] sm:$0xff]  }
   0xb   :  { %v45_v14 = vmax.f32 %v4162_v5, 0.0  ;;  %v46_v15 = vmax.f32 %v4163_v6, 0.0  ;;  %v79_v25 = vmax.f32 %v4175_v17, 0.0  ;;  %v58_v26 = vpack.c.bf16 %v56_v18, %v56_v18  ;;  %v4365_v5 = vld [vmem:[%s4987_s0 + $0x50] sm:$0xff]   ;;  %v4366_v6 = vld [vmem:[%s4987_s0 + $0x58] sm:$0xff]  }
   0xc   :  { %v69_v27 = vpack.c.bf16 %v67_v20, %v67_v20  ;;  %v70_v28 = vpack.c.bf16 %v68_v21, %v68_v21  ;;  %v59_v32 = vpack.c.bf16 %v57_v19, %v57_v19  ;;  %v80_v33 = vpack.c.bf16 %v78_v24, %v78_v24  ;;  %v4369_v19 = vld [vmem:[%s4987_s0 + $0x70] sm:$0xff]  }
   0xd   :  { %v47_v22 = vpack.c.bf16 %v45_v14, %v45_v14  ;;  %v48_v23 = vpack.c.bf16 %v46_v15, %v46_v15  ;;  %v81_v34 = vpack.c.bf16 %v79_v25, %v79_v25  ;;  %v60_v37 = vunpack.c.l.bf16 %v58_v26 }
   0xe   :  { %v71_v38 = vunpack.c.l.bf16 %v69_v27  ;;  %v72_v39 = vunpack.c.l.bf16 %v70_v28  ;;  %v82_v40 = vunpack.c.l.bf16 %v80_v33  ;;  %v4178_v42 = vunpack.c.l.bf16 %v4359_v29  ;;  %v4370_v28 = vld [vmem:[%s4987_s0 + $0x78] sm:$0xff]  }
   0xf   :  { %v49_v31 = vunpack.c.l.bf16 %v47_v22  ;;  %v50_v36 = vunpack.c.l.bf16 %v48_v23  ;;  %v83_v41 = vunpack.c.l.bf16 %v81_v34  ;;  %v4179_v43 = vunpack.c.h.bf16 %v4359_v29 }
  0x10   :  { %v4190_v44 = vunpack.c.l.bf16 %v4362_v30  ;;  %v4191_v45 = vunpack.c.h.bf16 %v4362_v30  ;;  %v4194_v46 = vunpack.c.l.bf16 %v4363_v35  ;;  %v4195_v47 = vunpack.c.h.bf16 %v4363_v35 }
  0x11   :  { %v89_v49 = vmax.f32 %v4178_v42, 0.0  ;;  %v90_v50 = vmax.f32 %v4179_v43, 0.0  ;;  %v117_v51 = vadd.f32 %v82_v40, %v71_v38  ;;  %v118_v52 = vadd.f32 %v83_v41, %v72_v39  ;;  %v4371_v42 = vld [vmem:[%s4987_s0 + $0x80] sm:$0xff]  }
  0x12   :  { %v134_v53 = vmax.f32 %v4190_v44, 0.0  ;;  %v135_v54 = vmax.f32 %v4191_v45, 0.0  ;;  %v145_v55 = vmax.f32 %v4194_v46, 0.0  ;;  %v146_v56 = vmax.f32 %v4195_v47, 0.0 }
  0x13   :  { %v91_v57 = vpack.c.bf16 %v89_v49, %v89_v49  ;;  %v92_v58 = vpack.c.bf16 %v90_v50, %v90_v50  ;;  %v4198_v59 = vunpack.c.l.bf16 %v4364_v48  ;;  %v4199_v60 = vunpack.c.h.bf16 %v4364_v48 }
  0x14   :  { %v136_v61 = vpack.c.bf16 %v134_v53, %v134_v53  ;;  %v137_v62 = vpack.c.bf16 %v135_v54, %v135_v54  ;;  %v147_v63 = vpack.c.bf16 %v145_v55, %v145_v55  ;;  %v148_v0 = vpack.c.bf16 %v146_v56, %v146_v56  ;;  %v4372_v54 = vld [vmem:[%s4987_s0 + $0x88] sm:$0xff]  }
  0x15   :  { %v93_v1 = vunpack.c.l.bf16 %v91_v57  ;;  %v94_v2 = vunpack.c.l.bf16 %v92_v58  ;;  %v156_v3 = vmax.f32 %v4198_v59, 0.0  ;;  %v157_v4 = vmax.f32 %v4199_v60, 0.0 }
  0x16   :  { %v61_v7 = vunpack.c.l.bf16 %v59_v32  ;;  %v138_v8 = vunpack.c.l.bf16 %v136_v61  ;;  %v4549_v9 = vunpack.c.l.bf16 %v137_v62  ;;  %v4551_v10 = vunpack.c.l.bf16 %v147_v63  ;;  %v4373_v63 = vld [vmem:[%s4987_s0 + $0x90] sm:$0xff]  }
  0x17   :  { %v4553_v11 = vadd.f32 %v117_v51, %v93_v1  ;;  %v4555_v12 = vadd.f32 %v118_v52, %v94_v2  ;;  %v158_v13 = vpack.c.bf16 %v156_v3, %v156_v3  ;;  %v159_v14 = vpack.c.bf16 %v157_v4, %v157_v4 }
  0x18   :  { %v4202_v15 = vunpack.c.l.bf16 %v4365_v5  ;;  %v4203_v16 = vunpack.c.h.bf16 %v4365_v5  ;;  %v4206_v17 = vunpack.c.l.bf16 %v4366_v6  ;;  %v4207_v18 = vunpack.c.h.bf16 %v4366_v6 }
  0x19   :  { %v121_v20 = vadd.f32 %v4553_v11, %v49_v31  ;;  %v122_v21 = vadd.f32 %v4555_v12, %v50_v36  ;;  %v4562_v22 = vunpack.c.l.bf16 %v148_v0  ;;  %v160_v23 = vunpack.c.l.bf16 %v158_v13 }
  0x1a   :  { %v167_v24 = vmax.f32 %v4202_v15, 0.0  ;;  %v168_v25 = vmax.f32 %v4203_v16, 0.0  ;;  %v178_v26 = vmax.f32 %v4206_v17, 0.0  ;;  %v179_v27 = vmax.f32 %v4207_v18, 0.0  ;;  %v4376_v17 = vld [vmem:[%s4987_s0 + $0xa8] sm:$0xff]   ;;  %v4377_v18 = vld [vmem:[%s4987_s0 + $0xb0] sm:$0xff]  }
  0x1b   :  { %v4567_v29 = vadd.f32 %v121_v20, %v60_v37  ;;  %v161_v30 = vunpack.c.l.bf16 %v159_v14  ;;  %v4218_v32 = vunpack.c.l.bf16 %v4369_v19  ;;  %v4219_v33 = vunpack.c.h.bf16 %v4369_v19 }
  0x1c   :  { %v169_v34 = vpack.c.bf16 %v167_v24, %v167_v24  ;;  %v170_v31 = vpack.c.bf16 %v168_v25, %v168_v25  ;;  %v180_v35 = vpack.c.bf16 %v178_v26, %v178_v26  ;;  %v181_v36 = vpack.c.bf16 %v179_v27, %v179_v27 }
  0x1d   :  { %v223_v38 = vmax.f32 %v4218_v32, 0.0  ;;  %v224_v39 = vmax.f32 %v4219_v33, 0.0  ;;  %v4222_v40 = vunpack.c.l.bf16 %v4370_v28  ;;  %v4223_v41 = vunpack.c.h.bf16 %v4370_v28 }
  0x1e   :  { %v171_v43 = vunpack.c.l.bf16 %v169_v34  ;;  %v172_v44 = vunpack.c.l.bf16 %v170_v31  ;;  %v182_v45 = vunpack.c.l.bf16 %v180_v35  ;;  %v183_v37 = vunpack.c.l.bf16 %v181_v36 }
  0x1f   :  { %v225_v46 = vpack.c.bf16 %v223_v38, %v223_v38  ;;  %v226_v47 = vpack.c.bf16 %v224_v39, %v224_v39  ;;  %v234_v48 = vmax.f32 %v4222_v40, 0.0  ;;  %v235_v49 = vmax.f32 %v4223_v41, 0.0 }
  0x20   :  { %v206_v50 = vadd.f32 %v171_v43, %v160_v23  ;;  %v207_v51 = vadd.f32 %v172_v44, %v161_v30  ;;  %v4226_v52 = vunpack.c.l.bf16 %v4371_v42  ;;  %v4227_v53 = vunpack.c.h.bf16 %v4371_v42 }
  0x21   :  { %v4575_v55 = vadd.f32 %v122_v21, %v61_v7  ;;  %v227_v56 = vunpack.c.l.bf16 %v225_v46  ;;  %v236_v57 = vpack.c.bf16 %v234_v48, %v234_v48  ;;  %v237_v58 = vpack.c.bf16 %v235_v49, %v235_v49 }
  0x22   :  { %v4577_v59 = vadd.f32 %v206_v50, %v182_v45  ;;  %v4579_v60 = vadd.f32 %v207_v51, %v183_v37  ;;  %v245_v61 = vmax.f32 %v4226_v52, 0.0  ;;  %v246_v62 = vmax.f32 %v4227_v53, 0.0  ;;  %v4379_v51 = vld [vmem:[%s4987_s0 + $0xc0] sm:$0xff]   ;;  %v4380_v52 = vld [vmem:[%s4987_s0 + $0xc8] sm:$0xff]  }
  0x23   :  { %v228_v0 = vunpack.c.l.bf16 %v226_v47  ;;  %v238_v1 = vunpack.c.l.bf16 %v236_v57  ;;  %v4230_v2 = vunpack.c.l.bf16 %v4372_v54  ;;  %v4231_v3 = vunpack.c.h.bf16 %v4372_v54 }
  0x24   :  { %v210_v4 = vadd.f32 %v4577_v59, %v138_v8  ;;  %v4585_v5 = vunpack.c.l.bf16 %v237_v58  ;;  %v247_v6 = vpack.c.bf16 %v245_v61, %v245_v61  ;;  %v248_v7 = vpack.c.bf16 %v246_v62, %v246_v62 }
  0x25   :  { %v256_v13 = vmax.f32 %v4230_v2, 0.0  ;;  %v257_v14 = vmax.f32 %v4231_v3, 0.0  ;;  %v4234_v15 = vunpack.c.l.bf16 %v4373_v63  ;;  %v4235_v16 = vunpack.c.h.bf16 %v4373_v63 }
  0x26   :  { %v211_v19 = vadd.f32 %v4579_v60, %v4549_v9  ;;  %v4596_v8 = vadd.f32 %v210_v4, %v4551_v10  ;;  %v249_v20 = vunpack.c.l.bf16 %v247_v6  ;;  %v250_v21 = vunpack.c.l.bf16 %v248_v7  ;;  %v4378_v10 = vld [vmem:[%s4987_s0 + $0xb8] sm:$0xff]  }
  0x27   :  { %v258_v23 = vpack.c.bf16 %v256_v13, %v256_v13  ;;  %v259_v24 = vpack.c.bf16 %v257_v14, %v257_v14  ;;  %v267_v25 = vmax.f32 %v4234_v15, 0.0  ;;  %v268_v26 = vmax.f32 %v4235_v16, 0.0  ;;  %v4383_v13 = vld [vmem:[%s4987_s0 + $0xe0] sm:$0xff]  }
  0x28   :  { %v4246_v27 = vunpack.c.l.bf16 %v4376_v17  ;;  %v4247_v28 = vunpack.c.h.bf16 %v4376_v17  ;;  %v4250_v30 = vunpack.c.l.bf16 %v4377_v18  ;;  %v4251_v32 = vunpack.c.h.bf16 %v4377_v18 }
  0x29   :  { %v260_v33 = vunpack.c.l.bf16 %v258_v23  ;;  %v261_v34 = vunpack.c.l.bf16 %v259_v24  ;;  %v269_v31 = vpack.c.bf16 %v267_v25, %v267_v25  ;;  %v270_v35 = vpack.c.bf16 %v268_v26, %v268_v26 }
  0x2a   :  { %v312_v36 = vmax.f32 %v4246_v27, 0.0  ;;  %v313_v38 = vmax.f32 %v4247_v28, 0.0  ;;  %v323_v9 = vmax.f32 %v4250_v30, 0.0  ;;  %v324_v39 = vmax.f32 %v4251_v32, 0.0 }
  0x2b   :  { %v271_v40 = vunpack.c.l.bf16 %v269_v31  ;;  %v272_v41 = vunpack.c.l.bf16 %v270_v35  ;;  %v295_v42 = vadd.f32 %v260_v33, %v249_v20  ;;  %v296_v43 = vadd.f32 %v261_v34, %v250_v21  ;;  %v4384_v20 = vld [vmem:[%s4987_s0 + $0xe8] sm:$0xff]   ;;  %v4385_v34 = vld [vmem:[%s4987_s0 + $0xf0] sm:$0xff]  }
  0x2c   :  { %v314_v44 = vpack.c.bf16 %v312_v36, %v312_v36  ;;  %v315_v45 = vpack.c.bf16 %v313_v38, %v313_v38  ;;  %v325_v37 = vpack.c.bf16 %v323_v9, %v323_v9  ;;  %v326_v46 = vpack.c.bf16 %v324_v39, %v324_v39 }
  0x2d   :  { %v4601_v47 = vadd.f32 %v295_v42, %v271_v40  ;;  %v4603_v48 = vadd.f32 %v296_v43, %v272_v41  ;;  %v4254_v49 = vunpack.c.l.bf16 %v4378_v10  ;;  %v4255_v50 = vunpack.c.h.bf16 %v4378_v10 }
  0x2e   :  { %v4612_v53 = vadd.f32 %v211_v19, %v4562_v22  ;;  %v316_v54 = vunpack.c.l.bf16 %v314_v44  ;;  %v317_v57 = vunpack.c.l.bf16 %v315_v45  ;;  %v4614_v58 = vunpack.c.l.bf16 %v325_v37  ;;  %v4386_v45 = vld [vmem:[%s4987_s0 + $0xf8] sm:$0xff]  }
  0x2f   :  { %v299_v61 = vadd.f32 %v4601_v47, %v227_v56  ;;  %v4617_v62 = vunpack.c.l.bf16 %v326_v46  ;;  %v334_v63 = vmax.f32 %v4254_v49, 0.0  ;;  %v335_v2 = vmax.f32 %v4255_v50, 0.0 }
  0x30   :  { %v4258_v3 = vunpack.c.l.bf16 %v4379_v51  ;;  %v4259_v4 = vunpack.c.h.bf16 %v4379_v51  ;;  %v4262_v6 = vunpack.c.l.bf16 %v4380_v52  ;;  %v4263_v7 = vunpack.c.h.bf16 %v4380_v52 }
  0x31   :  { %v300_v22 = vadd.f32 %v4603_v48, %v228_v0  ;;  %v4623_v14 = vadd.f32 %v299_v61, %v238_v1  ;;  %v336_v15 = vpack.c.bf16 %v334_v63, %v334_v63  ;;  %v337_v16 = vpack.c.bf16 %v335_v2, %v335_v2  ;;  %v4387_v2 = vld [vmem:[%s4987_s0 + $0x100] sm:$0xff]  }
  0x32   :  { %v345_v17 = vmax.f32 %v4258_v3, 0.0  ;;  %v346_v56 = vmax.f32 %v4259_v4, 0.0  ;;  %v356_v18 = vmax.f32 %v4262_v6, 0.0  ;;  %v357_v19 = vmax.f32 %v4263_v7, 0.0 }
  0x33   :  { %v338_v21 = vunpack.c.l.bf16 %v336_v15  ;;  %v339_v23 = vunpack.c.l.bf16 %v337_v16  ;;  %v4274_v24 = vunpack.c.l.bf16 %v4383_v13  ;;  %v4275_v25 = vunpack.c.h.bf16 %v4383_v13 }
  0x34   :  { %v347_v26 = vpack.c.bf16 %v345_v17, %v345_v17  ;;  %v348_v27 = vpack.c.bf16 %v346_v56, %v346_v56  ;;  %v358_v28 = vpack.c.bf16 %v356_v18, %v356_v18  ;;  %v359_v0 = vpack.c.bf16 %v357_v19, %v357_v19  ;;  %v4360_v19 = vld [vmem:[%s4987_s0 + $0x28] sm:$0xff]  }
  0x35   :  { %v401_v1 = vmax.f32 %v4274_v24, 0.0  ;;  %v402_v30 = vmax.f32 %v4275_v25, 0.0  ;;  %v4278_v32 = vunpack.c.l.bf16 %v4384_v20  ;;  %v4279_v33 = vunpack.c.h.bf16 %v4384_v20 }
  0x36   :  { %v349_v31 = vunpack.c.l.bf16 %v347_v26  ;;  %v350_v35 = vunpack.c.l.bf16 %v348_v27  ;;  %v360_v36 = vunpack.c.l.bf16 %v358_v28  ;;  %v361_v38 = vunpack.c.l.bf16 %v359_v0  ;;  %v4361_v27 = vld [vmem:[%s4987_s0 + $0x30] sm:$0xff]  }
  0x37   :  { %v403_v9 = vpack.c.bf16 %v401_v1, %v401_v1  ;;  %v404_v39 = vpack.c.bf16 %v402_v30, %v402_v30  ;;  %v412_v10 = vmax.f32 %v4278_v32, 0.0  ;;  %v413_v40 = vmax.f32 %v4279_v33, 0.0 }
  0x38   :  { %v384_v41 = vadd.f32 %v349_v31, %v338_v21  ;;  %v385_v42 = vadd.f32 %v350_v35, %v339_v23  ;;  %v4282_v43 = vunpack.c.l.bf16 %v4385_v34  ;;  %v4283_v44 = vunpack.c.h.bf16 %v4385_v34 }
  0x39   :  { %v302_v37 = vadd.f32 %v300_v22, %v4585_v5  ;;  %v405_v46 = vunpack.c.l.bf16 %v403_v9  ;;  %v406_v49 = vunpack.c.l.bf16 %v404_v39  ;;  %v414_v50 = vpack.c.bf16 %v412_v10, %v412_v10 }
  0x3a   :  { %v4635_v51 = vadd.f32 %v384_v41, %v360_v36  ;;  %v4637_v52 = vadd.f32 %v385_v42, %v361_v38  ;;  %v423_v61 = vmax.f32 %v4282_v43, 0.0  ;;  %v424_v63 = vmax.f32 %v4283_v44, 0.0  ;;  %v4367_v38 = vld [vmem:[%s4987_s0 + $0x60] sm:$0xff]  }
  0x3b   :  { %v415_v3 = vpack.c.bf16 %v413_v40, %v413_v40  ;;  %v416_v4 = vunpack.c.l.bf16 %v414_v50  ;;  %v4286_v6 = vunpack.c.l.bf16 %v4386_v45  ;;  %v4287_v7 = vunpack.c.h.bf16 %v4386_v45 }
  0x3c   :  { %v388_v13 = vadd.f32 %v4635_v51, %v316_v54  ;;  %v389_v5 = vadd.f32 %v4637_v52, %v317_v57  ;;  %v425_v22 = vpack.c.bf16 %v423_v61, %v423_v61  ;;  %v426_v15 = vpack.c.bf16 %v424_v63, %v424_v63 }
  0x3d   :  { %v434_v16 = vmax.f32 %v4286_v6, 0.0  ;;  %v435_v17 = vmax.f32 %v4287_v7, 0.0  ;;  %v4290_v56 = vunpack.c.l.bf16 %v4387_v2  ;;  %v4291_v18 = vunpack.c.h.bf16 %v4387_v2 }
  0x3e   :  { %v390_v20 = vadd.f32 %v388_v13, %v4614_v58  ;;  %v391_v21 = vadd.f32 %v389_v5, %v4617_v62  ;;  %v427_v23 = vunpack.c.l.bf16 %v425_v22  ;;  %v428_v24 = vunpack.c.l.bf16 %v426_v15  ;;  %v4368_v22 = vld [vmem:[%s4987_s0 + $0x68] sm:$0xff]  }
  0x3f   :  { %v436_v25 = vpack.c.bf16 %v434_v16, %v434_v16  ;;  %v437_v54 = vpack.c.bf16 %v435_v17, %v435_v17  ;;  %v445_v26 = vmax.f32 %v4290_v56, 0.0  ;;  %v446_v57 = vmax.f32 %v4291_v18, 0.0 }
  0x40   :  { %v417_v28 = vunpack.c.l.bf16 %v415_v3  ;;  %v663_v0 = vadd.f32 %v390_v20, %v4623_v14  ;;  %v664_v1 = vadd.f32 %v391_v21, %v302_v37  ;;  %v4182_v30 = vunpack.c.l.bf16 %v4360_v19 }
  0x41   :  { %v438_v32 = vunpack.c.l.bf16 %v436_v25  ;;  %v439_v33 = vunpack.c.l.bf16 %v437_v54  ;;  %v447_v58 = vpack.c.bf16 %v445_v26, %v445_v26  ;;  %v448_v34 = vpack.c.bf16 %v446_v57, %v446_v57 }
  0x42   :  { %v4183_v62 = vunpack.c.h.bf16 %v4360_v19  ;;  %v100_v31 = vmax.f32 %v4182_v30, 0.0  ;;  %v4186_v35 = vunpack.c.l.bf16 %v4361_v27  ;;  %v4187_v36 = vunpack.c.h.bf16 %v4361_v27 }
  0x43   :  { %v449_v9 = vunpack.c.l.bf16 %v447_v58  ;;  %v450_v39 = vunpack.c.l.bf16 %v448_v34  ;;  %v473_v10 = vadd.f32 %v438_v32, %v427_v23  ;;  %v474_v40 = vadd.f32 %v439_v33, %v428_v24  ;;  %v4375_v32 = vld [vmem:[%s4987_s0 + $0xa0] sm:$0xff]  }
  0x44   :  { %v101_v41 = vmax.f32 %v4183_v62, 0.0  ;;  %v102_v14 = vpack.c.bf16 %v100_v31, %v100_v31  ;;  %v111_v42 = vmax.f32 %v4186_v35, 0.0  ;;  %v112_v43 = vmax.f32 %v4187_v36, 0.0  ;;  %v4381_v35 = vld [vmem:[%s4987_s0 + $0xd0] sm:$0xff]  }
  0x45   :  { %v4656_v44 = vadd.f32 %v473_v10, %v449_v9  ;;  %v4658_v45 = vadd.f32 %v474_v40, %v450_v39  ;;  %v4210_v37 = vunpack.c.l.bf16 %v4367_v38  ;;  %v4211_v50 = vunpack.c.h.bf16 %v4367_v38 }
  0x46   :  { %v103_v61 = vpack.c.bf16 %v101_v41, %v101_v41  ;;  %v104_v63 = vunpack.c.l.bf16 %v102_v14  ;;  %v113_v2 = vpack.c.bf16 %v111_v42, %v111_v42  ;;  %v114_v3 = vpack.c.bf16 %v112_v43, %v112_v43  ;;  %v4382_v42 = vld [vmem:[%s4987_s0 + $0xd8] sm:$0xff]  }
  0x47   :  { %v477_v6 = vadd.f32 %v4656_v44, %v405_v46  ;;  %v478_v7 = vadd.f32 %v4658_v45, %v406_v49  ;;  %v189_v13 = vmax.f32 %v4210_v37, 0.0  ;;  %v190_v5 = vmax.f32 %v4211_v50, 0.0  ;;  %v4374_v46 = vld [vmem:[%s4987_s0 + $0x98] sm:$0xff]  }
  0x48   :  { %v105_v15 = vunpack.c.l.bf16 %v103_v61  ;;  %v115_v16 = vunpack.c.l.bf16 %v113_v2  ;;  %v116_v17 = vunpack.c.l.bf16 %v114_v3  ;;  %v125_v56 = vadd.f32 %v4553_v11, %v104_v63  ;;  %v4388_v3 = vld [vmem:[%s4987_s0 + $0x108] sm:$0xff]  }
  0x49   :  { %v479_v18 = vadd.f32 %v477_v6, %v416_v4  ;;  %v480_v19 = vadd.f32 %v478_v7, %v417_v28  ;;  %v191_v20 = vpack.c.bf16 %v189_v13, %v189_v13  ;;  %v192_v21 = vpack.c.bf16 %v190_v5, %v190_v5 }
  0x4a   :  { %v126_v49 = vadd.f32 %v4555_v12, %v105_v15  ;;  %v4670_v23 = vadd.f32 %v125_v56, %v115_v16  ;;  %v4214_v24 = vunpack.c.l.bf16 %v4368_v22  ;;  %v4215_v25 = vunpack.c.h.bf16 %v4368_v22 }
  0x4b   :  { %v4672_v54 = vadd.f32 %v663_v0, %v479_v18  ;;  %v4674_v26 = vadd.f32 %v664_v1, %v480_v19  ;;  %v193_v57 = vunpack.c.l.bf16 %v191_v20  ;;  %v194_v11 = vunpack.c.l.bf16 %v192_v21  ;;  %v4389_v21 = vld [vmem:[%s4987_s0 + $0x110] sm:$0xff]  }
  0x4c   :  { %v4676_v4 = vadd.f32 %v126_v49, %v116_v17  ;;  %v200_v27 = vmax.f32 %v4214_v24, 0.0  ;;  %v201_v28 = vmax.f32 %v4215_v25, 0.0  ;;  %v4238_v30 = vunpack.c.l.bf16 %v4374_v46 }
  0x4d   :  { %v671_v12 = vadd.f32 %v4672_v54, %v4567_v29  ;;  %v672_v0 = vadd.f32 %v4674_v26, %v4575_v55  ;;  %v214_v1 = vadd.f32 %v4577_v59, %v193_v57  ;;  %v215_v33 = vadd.f32 %v4579_v60, %v194_v11 }
  0x4e   :  { %v202_v58 = vpack.c.bf16 %v200_v27, %v200_v27  ;;  %v203_v34 = vpack.c.bf16 %v201_v28, %v201_v28  ;;  %v4239_v62 = vunpack.c.h.bf16 %v4374_v46  ;;  %v278_v31 = vmax.f32 %v4238_v30, 0.0  ;;  %v750_v28 = vld [vmem:[%s4988_s1] sm:$0xf] }
  0x4f   :  { %v673_v36 = vadd.f32 %v671_v12, %v4596_v8  ;;  %v674_v38 = vadd.f32 %v672_v0, %v4612_v53  ;;  %v4242_v29 = vunpack.c.l.bf16 %v4375_v32  ;;  %v4243_v9 = vunpack.c.h.bf16 %v4375_v32  ;;  %v786_v0 = vld [vmem:[%s4988_s1] sm:$0xf] }
  0x50   :  { %v204_v39 = vunpack.c.l.bf16 %v202_v58  ;;  %v205_v55 = vunpack.c.l.bf16 %v203_v34  ;;  %v279_v10 = vmax.f32 %v4239_v62, 0.0  ;;  %v280_v59 = vpack.c.bf16 %v278_v31, %v278_v31  ;;  %v4390_v62 = vld [vmem:[%s4987_s0 + $0x118] sm:$0xff]  }
  0x51   :  { %v675_v40 = vpack.c.bf16 %v674_v38, %v673_v36  ;;  %v289_v60 = vmax.f32 %v4242_v29, 0.0  ;;  %v290_v41 = vmax.f32 %v4243_v9, 0.0  ;;  %v4266_v14 = vunpack.c.l.bf16 %v4381_v35 }
  0x52   :  { %v4695_v43 = vadd.f32 %v214_v1, %v204_v39  ;;  %v4697_v37 = vadd.f32 %v215_v33, %v205_v55  ;;  %v281_v8 = vpack.c.bf16 %v279_v10, %v279_v10  ;;  %v282_v53 = vunpack.c.l.bf16 %v280_v59 }
  0x53   :  { %2936 = vmatmul.msk.bf16.vlgmr.msra.gmra.mxu2 %vm681_vm1, %v675_v40  ;;  %v291_v50 = vpack.c.bf16 %v289_v60, %v289_v60  ;;  %v292_v61 = vpack.c.bf16 %v290_v41, %v290_v41  ;;  %v4267_v63 = vunpack.c.h.bf16 %v4381_v35  ;;  %v367_v2 = vmax.f32 %v4266_v14, 0.0  ;;  %v4391_v60 = vld [vmem:[%s4987_s0 + $0x120] sm:$0xff]  }
  0x54   :  { %v283_v6 = vunpack.c.l.bf16 %v281_v8  ;;  %v303_v7 = vadd.f32 %v4601_v47, %v282_v53  ;;  %v4270_v13 = vunpack.c.l.bf16 %v4382_v42  ;;  %v4271_v5 = vunpack.c.h.bf16 %v4382_v42  ;;  %v4392_v8 = vld [vmem:[%s4987_s0 + $0x128] sm:$0xff]  }
  0x55   :  { %v293_v22 = vunpack.c.l.bf16 %v291_v50  ;;  %v294_v15 = vunpack.c.l.bf16 %v292_v61  ;;  %v368_v16 = vmax.f32 %v4267_v63, 0.0  ;;  %v369_v17 = vpack.c.bf16 %v367_v2, %v367_v2 }
  0x56   :  { %v304_v56 = vadd.f32 %v4603_v48, %v283_v6  ;;  %v378_v18 = vmax.f32 %v4270_v13, 0.0  ;;  %v379_v19 = vmax.f32 %v4271_v5, 0.0  ;;  %v4294_v20 = vunpack.c.l.bf16 %v4388_v3 }
  0x57   :  { %v305_v46 = vadd.f32 %v303_v7, %v293_v22  ;;  %v370_v49 = vpack.c.bf16 %v368_v16, %v368_v16  ;;  %v371_v24 = vunpack.c.l.bf16 %v369_v17  ;;  %v4295_v25 = vunpack.c.h.bf16 %v4388_v3 }
  0x58   :  { %v306_v47 = vadd.f32 %v304_v56, %v294_v15  ;;  %v380_v57 = vpack.c.bf16 %v378_v18, %v378_v18  ;;  %v381_v11 = vpack.c.bf16 %v379_v19, %v379_v19  ;;  %v456_v27 = vmax.f32 %v4294_v20, 0.0  ;;  %v4393_v18 = vld [vmem:[%s4987_s0 + $0x130] sm:$0xff]  }
  0x59   :  { %v372_v48 = vunpack.c.l.bf16 %v370_v49  ;;  %v392_v30 = vadd.f32 %v4635_v51, %v371_v24  ;;  %v457_v32 = vmax.f32 %v4295_v25, 0.0  ;;  %v4298_v12 = vunpack.c.l.bf16 %v4389_v21 }
  0x5a   :  { %v382_v1 = vunpack.c.l.bf16 %v380_v57  ;;  %v383_v33 = vunpack.c.l.bf16 %v381_v11  ;;  %v458_v58 = vpack.c.bf16 %v456_v27, %v456_v27  ;;  %v4299_v34 = vunpack.c.h.bf16 %v4389_v21 }
  0x5b   :  { %v393_v31 = vadd.f32 %v4637_v52, %v372_v48  ;;  %v459_v35 = vpack.c.bf16 %v457_v32, %v457_v32  ;;  %v467_v36 = vmax.f32 %v4298_v12, 0.0  ;;  %v759_v51 = vsel %vm685_vm0, %v750_v28, 0  ;;  %v4394_v28 = vld [vmem:[%s4987_s0 + $0x138] sm:$0xff]  }
  0x5c   :  { %v394_v38 = vadd.f32 %v392_v30, %v382_v1  ;;  %v460_v29 = vunpack.c.l.bf16 %v458_v58  ;;  %v468_v9 = vmax.f32 %v4299_v34, 0.0  ;;  %768 = vmatpush.bf16.msrb.mxu2 %v759_v51  ;;  %v795_v39 = vsel %vm685_vm0, %v786_v0, 0  ;;  %v4397_v0 = vld [vmem:[%s4987_s0 + $0x150] sm:$0xff]  }
  0x5d   :  { %v395_v55 = vadd.f32 %v393_v31, %v383_v33  ;;  %v461_v10 = vunpack.c.l.bf16 %v459_v35  ;;  %v469_v59 = vpack.c.bf16 %v467_v36, %v467_v36  ;;  %804 = vmatpush.bf16.msrb.mxu3 %v795_v39  ;;  %v4302_v40 = vunpack.c.l.bf16 %v4390_v62 }
  0x5e   :  { %v470_v52 = vpack.c.bf16 %v468_v9, %v468_v9  ;;  %v481_v41 = vadd.f32 %v4656_v44, %v460_v29  ;;  %v667_v14 = vadd.f32 %v394_v38, %v305_v46  ;;  %v4303_v42 = vunpack.c.h.bf16 %v4390_v62 }
  0x5f   :  { %v471_v53 = vunpack.c.l.bf16 %v469_v59  ;;  %v482_v50 = vadd.f32 %v4658_v45, %v461_v10  ;;  %v668_v61 = vadd.f32 %v395_v55, %v306_v47  ;;  %v490_v63 = vmax.f32 %v4302_v40, 0.0 }
  0x60   :  { %v472_v2 = vunpack.c.l.bf16 %v470_v52  ;;  %v491_v3 = vmax.f32 %v4303_v42, 0.0  ;;  %v4306_v6 = vunpack.c.l.bf16 %v4391_v60  ;;  %v4307_v7 = vunpack.c.h.bf16 %v4391_v60  ;;  %v4399_v42 = vld [vmem:[%s4987_s0 + $0x160] sm:$0xff]  }
  0x61   :  { %v483_v13 = vadd.f32 %v481_v41, %v471_v53  ;;  %v492_v5 = vpack.c.bf16 %v490_v63, %v490_v63  ;;  %v4310_v22 = vunpack.c.l.bf16 %v4392_v8  ;;  %v4311_v15 = vunpack.c.h.bf16 %v4392_v8 }
  0x62   :  { %v484_v44 = vadd.f32 %v482_v50, %v472_v2  ;;  %v493_v16 = vpack.c.bf16 %v491_v3, %v491_v3  ;;  %v501_v17 = vmax.f32 %v4306_v6, 0.0  ;;  %v502_v56 = vmax.f32 %v4307_v7, 0.0  ;;  %v4400_v7 = vld [vmem:[%s4987_s0 + $0x168] sm:$0xff]  }
  0x63   :  { %v4732_v19 = vadd.f32 %v667_v14, %v483_v13  ;;  %v4734_v45 = vunpack.c.l.bf16 %v492_v5  ;;  %v512_v20 = vmax.f32 %v4310_v22, 0.0  ;;  %v513_v21 = vmax.f32 %v4311_v15, 0.0 }
  0x64   :  { %v4736_v46 = vadd.f32 %v668_v61, %v484_v44  ;;  %v4738_v49 = vunpack.c.l.bf16 %v493_v16  ;;  %v503_v24 = vpack.c.bf16 %v501_v17, %v501_v17  ;;  %v504_v25 = vpack.c.bf16 %v502_v56, %v502_v56  ;;  %v4401_v44 = vld [vmem:[%s4987_s0 + $0x170] sm:$0xff]  }
  0x65   :  { %v709_v47 = vadd.f32 %v4732_v19, %v4670_v23  ;;  %v514_v57 = vpack.c.bf16 %v512_v20, %v512_v20  ;;  %v515_v11 = vpack.c.bf16 %v513_v21, %v513_v21  ;;  %v4314_v27 = vunpack.c.l.bf16 %v4393_v18  ;;  %v4398_v23 = vld [vmem:[%s4987_s0 + $0x158] sm:$0xff]  }
  0x66   :  { %v710_v48 = vadd.f32 %v4736_v46, %v4676_v4  ;;  %v505_v30 = vunpack.c.l.bf16 %v503_v24  ;;  %v506_v32 = vunpack.c.l.bf16 %v504_v25  ;;  %v4315_v12 = vunpack.c.h.bf16 %v4393_v18 }
  0x67   :  { %v711_v1 = vadd.f32 %v709_v47, %v4695_v43  ;;  %v516_v33 = vunpack.c.l.bf16 %v514_v57  ;;  %v517_v58 = vunpack.c.l.bf16 %v515_v11  ;;  %v523_v34 = vmax.f32 %v4314_v27, 0.0 }
  0x68   :  { %v712_v62 = vadd.f32 %v710_v48, %v4697_v37  ;;  %v524_v31 = vmax.f32 %v4315_v12, 0.0  ;;  %v4318_v4 = vunpack.c.l.bf16 %v4394_v28  ;;  %v4319_v35 = vunpack.c.h.bf16 %v4394_v28 }
  0x69   :  { %v525_v36 = vpack.c.bf16 %v523_v34, %v523_v34  ;;  %v4330_v51 = vunpack.c.l.bf16 %v4397_v0  ;;  %v4331_v38 = vunpack.c.h.bf16 %v4397_v0  ;;  %v4334_v29 = vunpack.c.l.bf16 %v4398_v23  ;;  %v4395_v34 = vld [vmem:[%s4987_s0 + $0x140] sm:$0xff]  }
  0x6a   :  { %v713_v9 = vpack.c.bf16 %v712_v62, %v711_v1  ;;  %v526_v39 = vpack.c.bf16 %v524_v31, %v524_v31  ;;  %v534_v55 = vmax.f32 %v4318_v4, 0.0  ;;  %v535_v10 = vmax.f32 %v4319_v35, 0.0 }
  0x6b   :  { %v527_v59 = vunpack.c.l.bf16 %v525_v36  ;;  %v579_v40 = vmax.f32 %v4330_v51, 0.0  ;;  %v580_v60 = vmax.f32 %v4331_v38, 0.0  ;;  %v4335_v43 = vunpack.c.h.bf16 %v4398_v23 }
  0x6c   :  { %2937 = vmatmul.msk.bf16.vlgmr.msra.gmra.mxu3 %vm681_vm1, %v713_v9  ;;  %v528_v52 = vunpack.c.l.bf16 %v526_v39  ;;  %v536_v41 = vpack.c.bf16 %v534_v55, %v534_v55  ;;  %v537_v37 = vpack.c.bf16 %v535_v10, %v535_v10  ;;  %v590_v14 = vmax.f32 %v4334_v29, 0.0  ;;  %v4402_v39 = vld [vmem:[%s4987_s0 + $0x178] sm:$0xff]  }
  0x6d   :  { %v562_v8 = vadd.f32 %v527_v59, %v516_v33  ;;  %v581_v53 = vpack.c.bf16 %v579_v40, %v579_v40  ;;  %v582_v50 = vpack.c.bf16 %v580_v60, %v580_v60  ;;  %v591_v61 = vmax.f32 %v4335_v43, 0.0 }
  0x6e   :  { %v538_v63 = vunpack.c.l.bf16 %v536_v41  ;;  %v539_v2 = vunpack.c.l.bf16 %v537_v37  ;;  %v563_v3 = vadd.f32 %v528_v52, %v517_v58  ;;  %v592_v6 = vpack.c.bf16 %v590_v14, %v590_v14 }
  0x6f   :  { %v583_v13 = vunpack.c.l.bf16 %v581_v53  ;;  %v584_v5 = vunpack.c.l.bf16 %v582_v50  ;;  %v593_v22 = vpack.c.bf16 %v591_v61, %v591_v61  ;;  %v4338_v15 = vunpack.c.l.bf16 %v4399_v42 }
  0x70   :  { %v4765_v16 = vadd.f32 %v562_v8, %v538_v63  ;;  %v4767_v17 = vadd.f32 %v563_v3, %v539_v2  ;;  %v594_v56 = vunpack.c.l.bf16 %v592_v6  ;;  %v4339_v18 = vunpack.c.h.bf16 %v4399_v42 }
  0x71   :  { %v595_v20 = vunpack.c.l.bf16 %v593_v22  ;;  %v601_v21 = vmax.f32 %v4338_v15, 0.0  ;;  %v4342_v24 = vunpack.c.l.bf16 %v4400_v7  ;;  %v4343_v25 = vunpack.c.h.bf16 %v4400_v7 }
  0x72   :  { %v566_v47 = vadd.f32 %v4765_v16, %v4734_v45  ;;  %v567_v57 = vadd.f32 %v4767_v17, %v4738_v49  ;;  %v602_v11 = vmax.f32 %v4339_v18, 0.0  ;;  %v4346_v27 = vunpack.c.l.bf16 %v4401_v44  ;;  %v4396_v49 = vld [vmem:[%s4987_s0 + $0x148] sm:$0xff]  }
  0x73   :  { %v603_v28 = vpack.c.bf16 %v601_v21, %v601_v21  ;;  %v612_v48 = vmax.f32 %v4342_v24, 0.0  ;;  %v613_v12 = vmax.f32 %v4343_v25, 0.0  ;;  %v4347_v0 = vunpack.c.h.bf16 %v4401_v44  ;;  %v4403_v44 = vld [vmem:[%s4987_s0 + $0x180] sm:$0xff]  }
  0x74   :  { %v568_v23 = vadd.f32 %v566_v47, %v505_v30  ;;  %v569_v1 = vadd.f32 %v567_v57, %v506_v32  ;;  %v604_v33 = vpack.c.bf16 %v602_v11, %v602_v11  ;;  %v623_v58 = vmax.f32 %v4346_v27, 0.0 }
  0x75   :  { %v605_v62 = vunpack.c.l.bf16 %v603_v28  ;;  %v614_v31 = vpack.c.bf16 %v612_v48, %v612_v48  ;;  %v615_v45 = vpack.c.bf16 %v613_v12, %v613_v12  ;;  %v624_v4 = vmax.f32 %v4347_v0, 0.0  ;;  %v3126_v12 = vld [vmem:[#allocation3 + $0x150] sm:$0xf]  ;;  %v3965_v0 = vld [vmem:[#allocation3 + $0x164] sm:$0xf0] }
  0x76   :  { %v606_v35 = vunpack.c.l.bf16 %v604_v33  ;;  %v625_v36 = vpack.c.bf16 %v623_v58, %v623_v58  ;;  %v745_v51 = vadd.f32 %v4672_v54, %v568_v23  ;;  %v746_v30 = vadd.f32 %v4674_v26, %v569_v1 }
  0x77   :  { %v616_v32 = vunpack.c.l.bf16 %v614_v31  ;;  %v617_v38 = vunpack.c.l.bf16 %v615_v45  ;;  %v626_v29 = vpack.c.bf16 %v624_v4, %v624_v4  ;;  %v4322_v9 = vunpack.c.l.bf16 %v4395_v34  ;;  %v3959_v4 = vld [vmem:[#allocation3 + $0x134] sm:$0xf0] }
  0x78   :  { %v627_v55 = vunpack.c.l.bf16 %v625_v36  ;;  %v4323_v10 = vunpack.c.h.bf16 %v4395_v34  ;;  %v4326_v59 = vunpack.c.l.bf16 %v4396_v49  ;;  %v4327_v40 = vunpack.c.h.bf16 %v4396_v49  ;;  %v3318_v34 = vld [vmem:[#allocation3 + $0x2d0] sm:$0xf]  ;;  %v4007_v36 = vld [vmem:[#allocation3 + $0x2b4] sm:$0xf0] }
  0x79   :  { %v628_v60 = vunpack.c.l.bf16 %v626_v29  ;;  %v651_v43 = vadd.f32 %v616_v32, %v605_v62  ;;  %v652_v52 = vadd.f32 %v617_v38, %v606_v35  ;;  %v545_v41 = vmax.f32 %v4322_v9, 0.0  ;;  %v4013_v62 = vld [vmem:[#allocation3 + $0x2e4] sm:$0xf0] }
  0x7a   :  { %v546_v37 = vmax.f32 %v4323_v10, 0.0  ;;  %v556_v54 = vmax.f32 %v4326_v59, 0.0  ;;  %v557_v14 = vmax.f32 %v4327_v40, 0.0  ;;  %v4350_v26 = vunpack.c.l.bf16 %v4402_v39  ;;  %v3078_v10 = vld [vmem:[#allocation3 + $0xf0] sm:$0xf] }
  0x7b   :  { %v653_v42 = vadd.f32 %v651_v43, %v627_v55  ;;  %v654_v8 = vadd.f32 %v652_v52, %v628_v60  ;;  %v547_v53 = vpack.c.bf16 %v545_v41, %v545_v41  ;;  %v4351_v50 = vunpack.c.h.bf16 %v4402_v39  ;;  %v3702_v59 = vld [vmem:[#allocation3 + $0x5d0] sm:$0xf]  ;;  %v4109_v40 = vld [vmem:[#allocation3 + $0x5e4] sm:$0xf0] }
  0x7c   :  { %v548_v61 = vpack.c.bf16 %v546_v37, %v546_v37  ;;  %v558_v63 = vpack.c.bf16 %v556_v54, %v556_v54  ;;  %v559_v2 = vpack.c.bf16 %v557_v14, %v557_v14  ;;  %v634_v3 = vmax.f32 %v4350_v26, 0.0  ;;  %v3953_v37 = vld [vmem:[#allocation3 + $0x104] sm:$0xf0]  ;;  %v3486_v54 = vld [vmem:[#allocation3 + $0x420] sm:$0xf] }
  0x7d   :  { %v655_v6 = vadd.f32 %v653_v42, %v583_v13  ;;  %v656_v7 = vadd.f32 %v654_v8, %v584_v5  ;;  %v549_v22 = vunpack.c.l.bf16 %v547_v53  ;;  %v635_v15 = vmax.f32 %v4351_v50, 0.0  ;;  %v4055_v14 = vld [vmem:[#allocation3 + $0x434] sm:$0xf0]  ;;  %v3270_v26 = vld [vmem:[#allocation3 + $0x270] sm:$0xf] }
  0x7e   :  { %v550_v18 = vunpack.c.l.bf16 %v548_v61  ;;  %v560_v21 = vunpack.c.l.bf16 %v558_v63  ;;  %v561_v24 = vunpack.c.l.bf16 %v559_v2  ;;  %v636_v25 = vpack.c.bf16 %v634_v3, %v634_v3  ;;  %v3678_v61 = vld [vmem:[#allocation3 + $0x5a0] sm:$0xf]  ;;  %v4103_v63 = vld [vmem:[#allocation3 + $0x5b4] sm:$0xf0] }
  0x7f   :  { %v657_v47 = vadd.f32 %v655_v6, %v594_v56  ;;  %v658_v57 = vadd.f32 %v656_v7, %v595_v20  ;;  %v570_v11 = vadd.f32 %v4765_v16, %v549_v22  ;;  %v637_v27 = vpack.c.bf16 %v635_v15, %v635_v15  ;;  %v3102_v20 = vld [vmem:[#allocation3 + $0x120] sm:$0xf]  ;;  %v3947_v15 = vld [vmem:[#allocation3 + $0xd4] sm:$0xf0] }
  0x80   :  { %v571_v28 = vadd.f32 %v4767_v17, %v550_v18  ;;  %v638_v48 = vunpack.c.l.bf16 %v636_v25  ;;  %v4354_v13 = vunpack.c.l.bf16 %v4403_v44  ;;  %v4355_v5 = vunpack.c.h.bf16 %v4403_v44  ;;  %v3294_v17 = vld [vmem:[#allocation3 + $0x2a0] sm:$0xf]  ;;  %v3462_v44 = vld [vmem:[#allocation3 + $0x3f0] sm:$0xf]  ;;  %v4049_v18 = vld [vmem:[#allocation3 + $0x404] sm:$0xf0] }
  0x81   :  { %v747_v23 = vadd.f32 %v745_v51, %v657_v47  ;;  %v748_v1 = vadd.f32 %v746_v30, %v658_v57  ;;  %v572_v33 = vadd.f32 %v570_v11, %v560_v21  ;;  %v639_v58 = vunpack.c.l.bf16 %v637_v27  ;;  %v3510_v51 = vld [vmem:[#allocation3 + $0x450] sm:$0xf]  ;;  %v4061_v30 = vld [vmem:[#allocation3 + $0x464] sm:$0xf0]  ;;  %v3054_v3 = vld [vmem:[#allocation3 + $0xc0] sm:$0xf] }
  0x82   :  { %v573_v31 = vadd.f32 %v571_v28, %v561_v24  ;;  %v645_v45 = vmax.f32 %v4354_v13, 0.0  ;;  %v646_v56 = vmax.f32 %v4355_v5, 0.0  ;;  %v659_v49 = vadd.f32 %v653_v42, %v638_v48  ;;  %v4001_v42 = vld [vmem:[#allocation3 + $0x284] sm:$0xf0]  ;;  %v3246_v21 = vld [vmem:[#allocation3 + $0x240] sm:$0xf] }
  0x83   :  { %v749_v16 = vpack.c.bf16 %v748_v1, %v747_v23  ;;  %v3127_v35 = vor.u32 %v3965_v0, %v3126_v12  ;;  %v660_v29 = vadd.f32 %v654_v8, %v639_v58  ;;  %v3319_v9 = vor.u32 %v4013_v62, %v3318_v34  ;;  %v3995_v24 = vld [vmem:[#allocation3 + $0x254] sm:$0xf0]  ;;  %v3654_v57 = vld [vmem:[#allocation3 + $0x570] sm:$0xf]  ;;  %v4097_v11 = vld [vmem:[#allocation3 + $0x584] sm:$0xf0] }
  0x84   :  { %v647_v32 = vpack.c.bf16 %v645_v45, %v645_v45  ;;  %v648_v38 = vpack.c.bf16 %v646_v56, %v646_v56  ;;  %v781_v39 = vadd.f32 %v4732_v19, %v572_v33  ;;  %v3103_v55 = vor.u32 %v3959_v4, %v3102_v20  ;;  %v3030_v28 = vld [vmem:[#allocation3 + $0x90] sm:$0xf]  ;;  %v3941_v5 = vld [vmem:[#allocation3 + $0xa4] sm:$0xf0]  ;;  %v3438_v12 = vld [vmem:[#allocation3 + $0x3c0] sm:$0xf] }
  0x85   :  { %2938 = vmatmul.msk.bf16.vlgmr.msrb.gmra.mxu2 %vm681_vm1, %v749_v16  ;;  %1993 = vmatpush.bf16.msra.mxu0 %v3127_v35  ;;  %v782_v52 = vadd.f32 %v4736_v46, %v573_v31  ;;  %v3295_v41 = vor.u32 %v4007_v36, %v3294_v17  ;;  %v3511_v8 = vor.u32 %v4061_v30, %v3510_v51  ;;  %v4043_v0 = vld [vmem:[#allocation3 + $0x3d4] sm:$0xf0]  ;;  %v3222_v23 = vld [vmem:[#allocation3 + $0x210] sm:$0xf]  ;;  %v3989_v1 = vld [vmem:[#allocation3 + $0x224] sm:$0xf0] }
  0x86   :  { %v649_v60 = vunpack.c.l.bf16 %v647_v32  ;;  %v650_v43 = vunpack.c.l.bf16 %v648_v38  ;;  %2007 = vmatpush.bf16.msra.mxu1 %v3319_v9  ;;  %v3703_v19 = vor.u32 %v4109_v40, %v3702_v59  ;;  %v3079_v2 = vor.u32 %v3953_v37, %v3078_v10  ;;  %v3630_v58 = vld [vmem:[#allocation3 + $0x540] sm:$0xf]  ;;  %v4091_v34 = vld [vmem:[#allocation3 + $0x554] sm:$0xf0]  ;;  %v3414_v4 = vld [vmem:[#allocation3 + $0x390] sm:$0xf] }
  0x87   :  { %2021 = vmatpush.bf16.msra.mxu2 %v3511_v8  ;;  %v3487_v6 = vor.u32 %v4055_v14, %v3486_v54  ;;  %v3271_v22 = vor.u32 %v4001_v42, %v3270_v26  ;;  %v3679_v25 = vor.u32 %v4103_v63, %v3678_v61  ;;  %v3055_v27 = vor.u32 %v3947_v15, %v3054_v3  ;;  %v3006_v31 = vld [vmem:[#allocation3 + $0x60] sm:$0xf]  ;;  %v3935_v20 = vld [vmem:[#allocation3 + $0x74] sm:$0xf0]  ;;  %v4037_v16 = vld [vmem:[#allocation3 + $0x3a4] sm:$0xf0] }
  0x88   :  { %v661_v53 = vadd.f32 %v659_v49, %v649_v60  ;;  %v662_v50 = vadd.f32 %v660_v29, %v650_v43  ;;  %2035 = vmatpush.bf16.msra.mxu3 %v3703_v19  ;;  %v3463_v48 = vor.u32 %v4049_v18, %v3462_v44  ;;  %v3247_v13 = vor.u32 %v3995_v24, %v3246_v21  ;;  %v3198_v49 = vld [vmem:[#allocation3 + $0x1e0] sm:$0xf]  ;;  %v3983_v35 = vld [vmem:[#allocation3 + $0x1f4] sm:$0xf0]  ;;  %v3606_v36 = vld [vmem:[#allocation3 + $0x510] sm:$0xf] }
  0x89   :  { %1994 = vmatpush.bf16.msra.mxu0 %v3103_v55  ;;  %v3655_v33 = vor.u32 %v4097_v11, %v3654_v57  ;;  %v3031_v62 = vor.u32 %v3941_v5, %v3030_v28  ;;  %v3439_v45 = vor.u32 %v4043_v0, %v3438_v12  ;;  %v3223_v56 = vor.u32 %v3989_v1, %v3222_v23  ;;  %v4085_v32 = vld [vmem:[#allocation3 + $0x524] sm:$0xf0]  ;;  %v2982_v51 = vld [vmem:[#allocation3 + $0x30] sm:$0xf]  ;;  %v2958_v60 = vld [vmem:[#allocation3] sm:$0xf] }
  0x8a   :  { %v783_v7 = vadd.f32 %v781_v39, %v661_v53  ;;  %v784_v46 = vadd.f32 %v782_v52, %v662_v50  ;;  %2008 = vmatpush.bf16.msra.mxu1 %v3295_v41  ;;  %v3631_v17 = vor.u32 %v4091_v34, %v3630_v58  ;;  %v3007_v38 = vor.u32 %v3935_v20, %v3006_v31  ;;  %v3929_v30 = vld [vmem:[#allocation3 + $0x44] sm:$0xf0]  ;;  %v3174_v39 = vld [vmem:[#allocation3 + $0x1b0] sm:$0xf]  ;;  %v3923_v43 = vld [vmem:[#allocation3 + $0x14] sm:$0xf0] }
  0x8b   :  { %2022 = vmatpush.bf16.msra.mxu2 %v3487_v6  ;;  %v3415_v29 = vor.u32 %v4037_v16, %v3414_v4  ;;  %v3199_v9 = vor.u32 %v3983_v35, %v3198_v49  ;;  %v3977_v55 = vld [vmem:[#allocation3 + $0x1c4] sm:$0xf0]  ;;  %v3607_v10 = vor.u32 %v4085_v32, %v3606_v36  ;;  %v2983_v59 = vor.u32 %v3929_v30, %v2982_v51  ;;  %v3150_v52 = vld [vmem:[#allocation3 + $0x180] sm:$0xf]  ;;  %v3971_v41 = vld [vmem:[#allocation3 + $0x194] sm:$0xf0] }
  0x8c   :  { %v785_v47 = vpack.c.bf16 %v784_v46, %v783_v7  ;;  %2036 = vmatpush.bf16.msra.mxu3 %v3679_v25  ;;  %v3175_v40 = vor.u32 %v3977_v55, %v3174_v39  ;;  %v3962_v37 = vld [vmem:[#allocation3 + $0x154] sm:$0xf]  ;;  %v3128_v54 = vld [vmem:[#allocation3 + $0x168] sm:$0xf0]  ;;  %v2959_v42 = vor.u32 %v3923_v43, %v2958_v60  ;;  %v3151_v8 = vor.u32 %v3971_v41, %v3150_v52  ;;  %v4410_v19 = vld [vmem:[%s4989_s2] ss:$0 sm:$0xff] }
  0x8d   :  { %1995 = vmatpush.bf16.msra.mxu0 %v3079_v2  ;;  %v4010_v14 = vld [vmem:[#allocation3 + $0x2d4] sm:$0xf]  ;;  %v3320_v26 = vld [vmem:[#allocation3 + $0x2e8] sm:$0xf0]  ;;  %v3131_v53 = vor.u32 %v3962_v37, %v3128_v54  ;;  %v3956_v63 = vld [vmem:[#allocation3 + $0x124] sm:$0xf] }
  0x8e   :  { %2939 = vmatmul.msk.bf16.vlgmr.msrb.gmra.mxu3 %vm681_vm1, %v785_v47  ;;  %2009 = vmatpush.bf16.msra.mxu1 %v3271_v22  ;;  %v3323_v50 = vor.u32 %v4010_v14, %v3320_v26  ;;  %v3104_v2 = vld [vmem:[#allocation3 + $0x138] sm:$0xf0]  ;;  %v4004_v3 = vld [vmem:[#allocation3 + $0x2a4] sm:$0xf]  ;;  %v3390_v22 = vld [vmem:[#allocation3 + $0x360] sm:$0xf] }
  0x8f   :  { %2023 = vmatpush.bf16.msra.mxu2 %v3463_v48  ;;  %v3107_v7 = vor.u32 %v3956_v63, %v3104_v2  ;;  %v3296_v46 = vld [vmem:[#allocation3 + $0x2b8] sm:$0xf0]  ;;  %v4031_v15 = vld [vmem:[#allocation3 + $0x374] sm:$0xf0]  ;;  %v3582_v21 = vld [vmem:[#allocation3 + $0x4e0] sm:$0xf] }
  0x90   :  { %2037 = vmatpush.bf16.msra.mxu3 %v3655_v33  ;;  %v3299_v44 = vor.u32 %v4004_v3, %v3296_v46  ;;  %v3391_v18 = vor.u32 %v4031_v15, %v3390_v22  ;;  %v4079_v24 = vld [vmem:[#allocation3 + $0x4f4] sm:$0xf0]  ;;  %v3950_v25 = vld [vmem:[#allocation3 + $0xf4] sm:$0xf]  ;;  %v3080_v11 = vld [vmem:[#allocation3 + $0x108] sm:$0xf0] }
  0x91   :  { %1996 = vmatpush.bf16.msra.mxu0 %v3055_v27  ;;  %v3583_v57 = vor.u32 %v4079_v24, %v3582_v21  ;;  %v3998_v27 = vld [vmem:[#allocation3 + $0x274] sm:$0xf]  ;;  %v3083_v28 = vor.u32 %v3950_v25, %v3080_v11  ;;  %v3272_v48 = vld [vmem:[#allocation3 + $0x288] sm:$0xf0]  ;;  %v4025_v5 = vld [vmem:[#allocation3 + $0x344] sm:$0xf0] }
  0x92   :  { %2010 = vmatpush.bf16.msra.mxu1 %v3247_v13  ;;  %v3366_v13 = vld [vmem:[#allocation3 + $0x330] sm:$0xf]  ;;  %v3275_v0 = vor.u32 %v3998_v27, %v3272_v48  ;;  %v4073_v33 = vld [vmem:[#allocation3 + $0x4c4] sm:$0xf0]  ;;  %v3056_v31 = vld [vmem:[#allocation3 + $0xd8] sm:$0xf0] }
  0x93   :  { %2024 = vmatpush.bf16.msra.mxu2 %v3439_v45  ;;  %v3367_v23 = vor.u32 %v4025_v5, %v3366_v13  ;;  %v3558_v1 = vld [vmem:[#allocation3 + $0x4b0] sm:$0xf]  ;;  %v3992_v45 = vld [vmem:[#allocation3 + $0x244] sm:$0xf]  ;;  %v3248_v4 = vld [vmem:[#allocation3 + $0x258] sm:$0xf0] }
  0x94   :  { %2038 = vmatpush.bf16.msra.mxu3 %v3631_v17  ;;  %v3559_v58 = vor.u32 %v4073_v33, %v3558_v1  ;;  %v3342_v16 = vld [vmem:[#allocation3 + $0x300] sm:$0xf]  ;;  %v4019_v49 = vld [vmem:[#allocation3 + $0x314] sm:$0xf0]  ;;  %v3251_v35 = vor.u32 %v3992_v45, %v3248_v4  ;;  %v3032_v51 = vld [vmem:[#allocation3 + $0xa8] sm:$0xf0] }
  0x95   :  { %1997 = vmatpush.bf16.msra.mxu0 %v3031_v62  ;;  %v3944_v62 = vld [vmem:[#allocation3 + $0xc4] sm:$0xf]  ;;  %v3343_v17 = vor.u32 %v4019_v49, %v3342_v16  ;;  %v3534_v36 = vld [vmem:[#allocation3 + $0x480] sm:$0xf]  ;;  %v4067_v32 = vld [vmem:[#allocation3 + $0x494] sm:$0xf0] }
  0x96   :  { %2011 = vmatpush.bf16.msra.mxu1 %v3223_v56  ;;  %v3059_v20 = vor.u32 %v3944_v62, %v3056_v31  ;;  %v3986_v30 = vld [vmem:[#allocation3 + $0x214] sm:$0xf]  ;;  %v3224_v55 = vld [vmem:[#allocation3 + $0x228] sm:$0xf0]  ;;  %v4411_v54 = vld [vmem:[%s4989_s2] ss:$0 sm:$0xff] }
  0x97   :  { %2025 = vmatpush.bf16.msra.mxu2 %v3415_v29  ;;  %v3227_v60 = vor.u32 %v3986_v30, %v3224_v55  ;;  %v4106_v52 = vld [vmem:[#allocation3 + $0x5d4] sm:$0xf]  ;;  %v3704_v41 = vld [vmem:[#allocation3 + $0x5e8] sm:$0xf0]  ;;  %v3932_v14 = vld [vmem:[#allocation3 + $0x64] sm:$0xf] }
  0x98   :  { %2039 = vmatpush.bf16.msra.mxu3 %v3607_v10  ;;  %v4058_v10 = vld [vmem:[#allocation3 + $0x454] sm:$0xf]  ;;  %v3707_v37 = vor.u32 %v4106_v52, %v3704_v41  ;;  %v3008_v26 = vld [vmem:[#allocation3 + $0x78] sm:$0xf0]  ;;  %v4100_v3 = vld [vmem:[#allocation3 + $0x5a4] sm:$0xf] }
  0x99   :  { %1998 = vmatpush.bf16.msra.mxu0 %v3007_v38  ;;  %v3938_v38 = vld [vmem:[#allocation3 + $0x94] sm:$0xf]  ;;  %v3488_v2 = vld [vmem:[#allocation3 + $0x438] sm:$0xf0]  ;;  %v3176_v24 = vld [vmem:[#allocation3 + $0x1c8] sm:$0xf0] }
  0x9a   :  { %2012 = vmatpush.bf16.msra.mxu1 %v3199_v9  ;;  %v3535_v9 = vor.u32 %v4067_v32, %v3534_v36  ;;  %v3035_v39 = vor.u32 %v3938_v38, %v3032_v51  ;;  %v3926_v15 = vld [vmem:[#allocation3 + $0x34] sm:$0xf]  ;;  %v3464_v11 = vld [vmem:[#allocation3 + $0x408] sm:$0xf0]  ;;  %v3920_v5 = vld [vmem:[#allocation3 + $0x4] sm:$0xf] }
  0x9b   :  { %2026 = vmatpush.bf16.msra.mxu2 %v3391_v18  ;;  %v3974_v21 = vld [vmem:[#allocation3 + $0x1b4] sm:$0xf]  ;;  %v3968_v1 = vld [vmem:[#allocation3 + $0x184] sm:$0xf]  ;;  %v3152_v33 = vld [vmem:[#allocation3 + $0x198] sm:$0xf0] }
  0x9c   :  { %2040 = vmatpush.bf16.msra.mxu3 %v3583_v57  ;;  %v4046_v25 = vld [vmem:[#allocation3 + $0x3f4] sm:$0xf]  ;;  %v3179_v57 = vor.u32 %v3974_v21, %v3176_v24  ;;  %v3155_v31 = vor.u32 %v3968_v1, %v3152_v33  ;;  %v3440_v45 = vld [vmem:[#allocation3 + $0x3d8] sm:$0xf0]  ;;  %v3608_v55 = vld [vmem:[#allocation3 + $0x528] sm:$0xf0] }
  0x9d   :  { %1999 = vmatpush.bf16.msra.mxu0 %v2983_v59  ;;  %v3512_v59 = vld [vmem:[#allocation3 + $0x468] sm:$0xf0]  ;;  %v4094_v27 = vld [vmem:[#allocation3 + $0x574] sm:$0xf]  ;;  %v3467_v48 = vor.u32 %v4046_v25, %v3464_v11  ;;  %v3392_v52 = vld [vmem:[#allocation3 + $0x378] sm:$0xf0] }
  0x9e   :  { %2013 = vmatpush.bf16.msra.mxu1 %v3175_v40  ;;  %v3515_v43 = vor.u32 %v4058_v10, %v3512_v59  ;;  %v4082_v51 = vld [vmem:[#allocation3 + $0x514] sm:$0xf]  ;;  %v3110_v10 = vld [vmem:[#allocation3 + $0x128] sm:$0xf]  ;;  %v3960_v59 = vld [vmem:[#allocation3 + $0x13c] sm:$0xf0] }
  0x9f   :  { %2027 = vmatpush.bf16.msra.mxu2 %v3367_v23  ;;  %v4412_v21 = vld [vmem:[%s4989_s2] ss:$0 sm:$0xff] }
  0xa0   :  { %2041 = vmatpush.bf16.msra.mxu3 %v3559_v58  ;;  %v4040_v58 = vld [vmem:[#allocation3 + $0x3c4] sm:$0xf] }
  0xa1   :  { %2000 = vmatpush.bf16.msra.mxu0 %v2959_v42  ;;  %v3980_v42 = vld [vmem:[#allocation3 + $0x1e4] sm:$0xf]  ;;  %v3443_v4 = vor.u32 %v4040_v58, %v3440_v45  ;;  %v3278_v58 = vld [vmem:[#allocation3 + $0x278] sm:$0xf]  ;;  %v3936_v45 = vld [vmem:[#allocation3 + $0x7c] sm:$0xf0] }
  0xa2   :  { %2014 = vmatpush.bf16.msra.mxu1 %v3151_v8 }
  0xa3   :  { %2028 = vmatpush.bf16.msra.mxu2 %v3343_v17  ;;  %v3966_v17 = vld [vmem:[#allocation3 + $0x16c] sm:$0xf0] }
  0xa4   :  { %2042 = vmatpush.bf16.msra.mxu3 %v3535_v9  ;;  %v3416_v9 = vld [vmem:[#allocation3 + $0x3a8] sm:$0xf0] }
  0xa5   :  { %2049 = vmatpush.bf16.msrb.mxu0 %v3131_v53  ;;  %v3011_v53 = vor.u32 %v3932_v14, %v3008_v26  ;;  %v3086_v14 = vld [vmem:[#allocation3 + $0xf8] sm:$0xf] }
  0xa6   :  { %2063 = vmatpush.bf16.msrb.mxu1 %v3323_v50  ;;  %v3200_v50 = vld [vmem:[#allocation3 + $0x1f8] sm:$0xf0]  ;;  %v3326_v26 = vld [vmem:[#allocation3 + $0x2d8] sm:$0xf] }
  0xa7   :  { %2077 = vmatpush.bf16.msrb.mxu2 %v3515_v43  ;;  %v3203_v63 = vor.u32 %v3980_v42, %v3200_v50  ;;  %v4028_v43 = vld [vmem:[#allocation3 + $0x364] sm:$0xf]  ;;  %v4014_v42 = vld [vmem:[#allocation3 + $0x2ec] sm:$0xf0] }
  0xa8   :  { %2091 = vmatpush.bf16.msrb.mxu3 %v3707_v37  ;;  %v3395_v41 = vor.u32 %v4028_v43, %v3392_v52  ;;  %v4076_v37 = vld [vmem:[#allocation3 + $0x4e4] sm:$0xf] }
  0xa9   :  { %2050 = vmatpush.bf16.msrb.mxu0 %v3107_v7 }
  0xaa   :  { %2064 = vmatpush.bf16.msrb.mxu1 %v3299_v44  ;;  %v2984_v44 = vld [vmem:[#allocation3 + $0x48] sm:$0xf0] }
  0xab   :  { %v2987_v18 = vor.u32 %v3926_v15, %v2984_v44  ;;  %v3344_v15 = vld [vmem:[#allocation3 + $0x318] sm:$0xf0]  ;;  %v4064_v44 = vld [vmem:[#allocation3 + $0x484] sm:$0xf] }
  0xad   :  { %2051 = vmatpush.bf16.msrb.mxu0 %v3083_v28  ;;  %v3656_v28 = vld [vmem:[#allocation3 + $0x588] sm:$0xf0] }
  0xae   :  { %2065 = vmatpush.bf16.msrb.mxu1 %v3275_v0  ;;  %v3659_v13 = vor.u32 %v4094_v27, %v3656_v28  ;;  %v3302_v27 = vld [vmem:[#allocation3 + $0x2a8] sm:$0xf]  ;;  %v4008_v28 = vld [vmem:[#allocation3 + $0x2bc] sm:$0xf0] }
  0xaf   :  { %v3303_v1 = vor.u32 %v4008_v28, %v3302_v27 }
  0xb1   :  { %2052 = vmatpush.bf16.msrb.mxu0 %v3059_v20  ;;  %v3632_v20 = vld [vmem:[#allocation3 + $0x558] sm:$0xf0] }
  0xb2   :  { %2066 = vmatpush.bf16.msrb.mxu1 %v3251_v35  ;;  %v3134_v35 = vld [vmem:[#allocation3 + $0x158] sm:$0xf] }
  0xb3   :  { %v3135_v38 = vor.u32 %v3966_v17, %v3134_v35  ;;  %v3996_v35 = vld [vmem:[#allocation3 + $0x25c] sm:$0xf0]  ;;  %v2990_v17 = vld [vmem:[#allocation3 + $0x38] sm:$0xf] }
  0xb5   :  { %2053 = vmatpush.bf16.msrb.mxu0 %v3035_v39 }
  0xb6   :  { %2067 = vmatpush.bf16.msrb.mxu1 %v3227_v60  ;;  %v3111_v60 = vor.u32 %v3960_v59, %v3110_v10  ;;  %v3990_v10 = vld [vmem:[#allocation3 + $0x22c] sm:$0xf0] }
  0xb9   :  { %2054 = vmatpush.bf16.msrb.mxu0 %v3011_v53  ;;  %v3954_v53 = vld [vmem:[#allocation3 + $0x10c] sm:$0xf0] }
  0xba   :  { %2068 = vmatpush.bf16.msrb.mxu1 %v3203_v63  ;;  %v3087_v50 = vor.u32 %v3954_v53, %v3086_v14  ;;  %v4070_v63 = vld [vmem:[#allocation3 + $0x4b4] sm:$0xf]  ;;  %v3206_v14 = vld [vmem:[#allocation3 + $0x1e8] sm:$0xf] }
  0xbd   :  { %2055 = vmatpush.bf16.msrb.mxu0 %v2987_v18  ;;  %v3536_v18 = vld [vmem:[#allocation3 + $0x498] sm:$0xf0] }
  0xbe   :  { %2069 = vmatpush.bf16.msrb.mxu1 %v3179_v57 }
  0xc2   :  { %2070 = vmatpush.bf16.msrb.mxu1 %v3155_v31  ;;  %v3014_v31 = vld [vmem:[#allocation3 + $0x68] sm:$0xf] }
  0xd6   :  { %v698_v61 = vpop.f32.mrf.mxu2 }
  0xd7   :  { %v699_v6 = vadd.f32 %v4410_v19, %v698_v61 }
  0xd9   :  { %v703_v47 = vmax.f32 %v699_v6, 0.0  ;;  %v3680_v6 = vld [vmem:[#allocation3 + $0x5b8] sm:$0xf0] }
  0xda   :  { %v3683_v46 = vor.u32 %v4100_v3, %v3680_v6  ;;  %v3062_v3 = vld [vmem:[#allocation3 + $0xc8] sm:$0xf]  ;;  %v3948_v6 = vld [vmem:[#allocation3 + $0xdc] sm:$0xf0] }
  0xdb   :  { %v705_v12 = vpack.c.bf16 %v703_v47, %v703_v47  ;;  %v3063_v57 = vor.u32 %v3948_v6, %v3062_v3  ;;  %v3957_v3 = vld [vmem:[#allocation3 + $0x12c] sm:$0xf]  ;;  %v3112_v6 = vld [vmem:[#allocation3 + $0x140] sm:$0xf0] }
  0xdc   :  { %2092 = vmatpush.bf16.msrb.mxu3 %v3683_v46 }
  0xdd   :  { %707 = vst [vmem:[#allocation2] sm:$0xf] %v705_v12  ;;  %v2960_v12 = vld [vmem:[#allocation3 + $0x18] sm:$0xf0] }
  0xde   :  { %v700_v34 = vpop.f32.mrf.mxu2  ;;  %v2963_v23 = vor.u32 %v3920_v5, %v2960_v12  ;;  %v3038_v5 = vld [vmem:[#allocation3 + $0x98] sm:$0xf]  ;;  %v3942_v12 = vld [vmem:[#allocation3 + $0xac] sm:$0xf0] }
  0xdf   :  { %v701_v56 = vadd.f32 %v4410_v19, %v700_v34  ;;  %v4052_v19 = vld [vmem:[#allocation3 + $0x424] sm:$0xf]  ;;  %v3039_v33 = vor.u32 %v3942_v12, %v3038_v5  ;;  %v4056_v12 = vld [vmem:[#allocation3 + $0x43c] sm:$0xf0] }
  0xe0   :  { %v3491_v7 = vor.u32 %v4052_v19, %v3488_v2  ;;  %2093 = vmatpush.bf16.msrb.mxu3 %v3659_v13  ;;  %2056 = vmatpush.bf16.msrb.mxu0 %v2963_v23  ;;  %v4022_v19 = vld [vmem:[#allocation3 + $0x334] sm:$0xf]  ;;  %v3560_v2 = vld [vmem:[#allocation3 + $0x4c8] sm:$0xf0]  ;;  %v3539_v13 = vor.u32 %v4064_v44, %v3536_v18  ;;  %v3494_v44 = vld [vmem:[#allocation3 + $0x428] sm:$0xf] }
  0xe1   :  { %v704_v29 = vmax.f32 %v701_v56, 0.0  ;;  %v4088_v56 = vld [vmem:[#allocation3 + $0x544] sm:$0xf]  ;;  %v3563_v46 = vor.u32 %v4070_v63, %v3560_v2  ;;  %v3978_v2 = vld [vmem:[#allocation3 + $0x1cc] sm:$0xf0] }
  0xe2   :  { %2078 = vmatpush.bf16.msrb.mxu2 %v3491_v7  ;;  %v3635_v16 = vor.u32 %v4088_v56, %v3632_v20 }
  0xe3   :  { %v706_v40 = vpack.c.bf16 %v704_v29, %v704_v29  ;;  %v4034_v29 = vld [vmem:[#allocation3 + $0x394] sm:$0xf] }
  0xe4   :  { %v2942_v34 = vld [vmem:[#allocation2] sm:$0xf]  ;;  %2094 = vmatpush.bf16.msrb.mxu3 %v3635_v16  ;;  %v3419_v39 = vor.u32 %v4034_v29, %v3416_v9 }
  0xe5   :  { %708 = vst [vmem:[#allocation2 + $0x10] sm:$0xf] %v706_v40  ;;  %v3611_v40 = vor.u32 %v4082_v51, %v3608_v55  ;;  %v4413_v16 = vld [vmem:[%s4989_s2] ss:$0 sm:$0xff]  ;;  %v3230_v55 = vld [vmem:[#allocation3 + $0x218] sm:$0xf] }
  0xe6   :  { %2079 = vmatpush.bf16.msrb.mxu2 %v3467_v48 }
  0xe8   :  { %2095 = vmatpush.bf16.msrb.mxu3 %v3611_v40  ;;  %v2966_v40 = vld [vmem:[#allocation3 + $0x8] sm:$0xf] }
  0xea   :  { %2080 = vmatpush.bf16.msrb.mxu2 %v3443_v4  ;;  %v3015_v4 = vor.u32 %v3936_v45, %v3014_v31  ;;  %v3710_v31 = vld [vmem:[#allocation3 + $0x5d8] sm:$0xf] }
  0xeb   :  { %v3470_v45 = vld [vmem:[#allocation3 + $0x3f8] sm:$0xf] }
  0xec   :  { %v3918_v49 = vld [vmem:[#allocation2 + $0xc] sm:$0xf0] }
  0xed   :  { %v4799_v32 = vor.u32 %v3918_v49, %v2942_v34  ;;  %v4002_v34 = vld [vmem:[#allocation3 + $0x28c] sm:$0xf0]  ;;  %v3254_v49 = vld [vmem:[#allocation3 + $0x248] sm:$0xf] }
  0xee   :  { %2081 = vmatpush.bf16.msrb.mxu2 %v3419_v39  ;;  %v3279_v20 = vor.u32 %v4002_v34, %v3278_v58  ;;  %v3255_v51 = vor.u32 %v3996_v35, %v3254_v49  ;;  %v3064_v58 = vld [vmem:[#allocation3 + $0xe0] sm:$0xf0]  ;;  %v3495_v34 = vor.u32 %v4056_v12, %v3494_v44  ;;  %v3939_v35 = vld [vmem:[#allocation3 + $0x9c] sm:$0xf]  ;;  %v4092_v44 = vld [vmem:[#allocation3 + $0x55c] sm:$0xf0] }
  0xef   :  { %v734_v8 = vpop.f32.mrf.mxu3  ;;  %2001 = vmatmul.bf16.vlgmr.msra.gmra.mxu0 %v4799_v32  ;;  %v3304_v49 = vld [vmem:[#allocation3 + $0x2c0] sm:$0xf0]  ;;  %v4026_v12 = vld [vmem:[#allocation3 + $0x34c] sm:$0xf0] }
  0xf0   :  { %v735_v61 = vadd.f32 %v4411_v54, %v734_v8  ;;  %2105 = vmatpush.bf16.msra.mxu0 %v3135_v38 }
  0xf2   :  { %v739_v22 = vmax.f32 %v735_v61, 0.0  ;;  %v3368_v61 = vld [vmem:[#allocation3 + $0x348] sm:$0xf0]  ;;  %2082 = vmatpush.bf16.msrb.mxu2 %v3395_v41  ;;  %v3231_v41 = vor.u32 %v3990_v10, %v3230_v55 }
  0xf3   :  { %v3371_v7 = vor.u32 %v4022_v19, %v3368_v61  ;;  %v3182_v61 = vld [vmem:[#allocation3 + $0x1b8] sm:$0xf] }
  0xf4   :  { %v741_v47 = vpack.c.bf16 %v739_v22, %v739_v22  ;;  %2106 = vmatpush.bf16.msra.mxu0 %v3111_v60  ;;  %v4016_v22 = vld [vmem:[#allocation3 + $0x304] sm:$0xf]  ;;  %v3924_v60 = vld [vmem:[#allocation3 + $0x1c] sm:$0xf0]  ;;  %v3183_v18 = vor.u32 %v3978_v2, %v3182_v61  ;;  %v2992_v2 = vld [vmem:[#allocation3 + $0x50] sm:$0xf0] }
  0xf5   :  { %v3347_v48 = vor.u32 %v4016_v22, %v3344_v15  ;;  %v3115_v22 = vor.u32 %v3957_v3, %v3112_v6 }
  0xf6   :  { %743 = vst [vmem:[#allocation2 + $0x4] sm:$0xf] %v741_v47  ;;  %v3327_v47 = vor.u32 %v4014_v42, %v3326_v26  ;;  %2083 = vmatpush.bf16.msrb.mxu2 %v3371_v7  ;;  %v3984_v26 = vld [vmem:[#allocation3 + $0x1fc] sm:$0xf0]  ;;  %v3963_v42 = vld [vmem:[#allocation3 + $0x15c] sm:$0xf] }
  0xf7   :  { %v736_v0 = vpop.f32.mrf.mxu3  ;;  %v3207_v19 = vor.u32 %v3984_v26, %v3206_v14  ;;  %v3518_v7 = vld [vmem:[#allocation3 + $0x458] sm:$0xf] }
  0xf8   :  { %v737_v62 = vadd.f32 %v4411_v54, %v736_v0  ;;  %v3584_v54 = vld [vmem:[#allocation3 + $0x4f8] sm:$0xf0]  ;;  %2107 = vmatpush.bf16.msra.mxu0 %v3087_v50  ;;  %v3662_v14 = vld [vmem:[#allocation3 + $0x578] sm:$0xf] }
  0xf9   :  { %v3587_v8 = vor.u32 %v4076_v37, %v3584_v54  ;;  %v2967_v37 = vor.u32 %v3924_v60, %v2966_v40  ;;  %v3999_v40 = vld [vmem:[#allocation3 + $0x27c] sm:$0xf]  ;;  %v3280_v60 = vld [vmem:[#allocation3 + $0x290] sm:$0xf0]  ;;  %v3422_v26 = vld [vmem:[#allocation3 + $0x398] sm:$0xf] }
  0xfa   :  { %v740_v36 = vmax.f32 %v737_v62, 0.0  ;;  %2084 = vmatpush.bf16.msrb.mxu2 %v3347_v48  ;;  %v3972_v48 = vld [vmem:[#allocation3 + $0x19c] sm:$0xf0] }
  0xfb   :  { %2096 = vmatpush.bf16.msrb.mxu3 %v3587_v8  ;;  %v3136_v8 = vld [vmem:[#allocation3 + $0x170] sm:$0xf0] }
  0xfc   :  { %v742_v30 = vpack.c.bf16 %v740_v36, %v740_v36  ;;  %2108 = vmatpush.bf16.msra.mxu0 %v3063_v57  ;;  %v3930_v36 = vld [vmem:[#allocation3 + $0x4c] sm:$0xf0]  ;;  %v3139_v53 = vor.u32 %v3963_v42, %v3136_v8  ;;  %v3283_v8 = vor.u32 %v3999_v40, %v3280_v60  ;;  %v3566_v40 = vld [vmem:[#allocation3 + $0x4b8] sm:$0xf] }
  0xfd   :  { %v3916_v24 = vld [vmem:[#allocation2 + $0x4] sm:$0xf]  ;;  %v4038_v42 = vld [vmem:[#allocation3 + $0x3ac] sm:$0xf0] }
  0xfe   :  { %744 = vst [vmem:[#allocation2 + $0x14] sm:$0xf] %v742_v30  ;;  %v2991_v30 = vor.u32 %v3930_v36, %v2990_v17  ;;  %v3040_v17 = vld [vmem:[#allocation3 + $0xb0] sm:$0xf0]  ;;  %v3686_v36 = vld [vmem:[#allocation3 + $0x5a8] sm:$0xf]  ;;  %v3423_v3 = vor.u32 %v4038_v42, %v3422_v26 }
  0xff   :  { %2097 = vmatpush.bf16.msrb.mxu3 %v3563_v46  ;;  %2057 = vmatmul.bf16.vlgmr.msrb.gmra.mxu0 %v4799_v32  ;;  %v4062_v46 = vld [vmem:[#allocation3 + $0x46c] sm:$0xf0]  ;;  %v3334_v26 = vld [vmem:[#allocation3 + $0x2e0] sm:$0xf] }
 0x100   :  { %2109 = vmatpush.bf16.msra.mxu0 %v3039_v33  ;;  %v3519_v28 = vor.u32 %v4062_v46, %v3518_v7  ;;  %v3945_v33 = vld [vmem:[#allocation3 + $0xcc] sm:$0xf]  ;;  %v3638_v7 = vld [vmem:[#allocation3 + $0x548] sm:$0xf] }
 0x101   :  { %v3398_v46 = vld [vmem:[#allocation3 + $0x368] sm:$0xf] }
 0x103   :  { %2098 = vmatpush.bf16.msrb.mxu3 %v3539_v13 }
 0x104   :  { %2110 = vmatpush.bf16.msra.mxu0 %v3015_v4  ;;  %v4110_v4 = vld [vmem:[#allocation3 + $0x5ec] sm:$0xf0] }
 0x105   :  { %v2944_v25 = vld [vmem:[#allocation2 + $0x10] sm:$0xf0] }
 0x106   :  { %v4805_v11 = vor.u32 %v3916_v24, %v2944_v25  ;;  %v3951_v24 = vld [vmem:[#allocation3 + $0xfc] sm:$0xf]  ;;  %v3088_v25 = vld [vmem:[#allocation3 + $0x110] sm:$0xf0] }
 0x107   :  { %v3091_v13 = vor.u32 %v3951_v24, %v3088_v25  ;;  %v3921_v25 = vld [vmem:[#allocation3 + $0xc] sm:$0xf] }
 0x108   :  { %v770_v0 = vpop.f32.mrf.mxu2  ;;  %2015 = vmatmul.bf16.vlgmr.msra.gmra.mxu1 %v4805_v11  ;;  %2111 = vmatpush.bf16.msra.mxu0 %v2991_v30  ;;  %v3711_v30 = vor.u32 %v4110_v4, %v3710_v31  ;;  %v3590_v4 = vld [vmem:[#allocation3 + $0x4e8] sm:$0xf] }
 0x109   :  { %v771_v23 = vadd.f32 %v4412_v21, %v770_v0  ;;  %2119 = vmatpush.bf16.msra.mxu1 %v3327_v47  ;;  %v4011_v0 = vld [vmem:[#allocation3 + $0x2dc] sm:$0xf] }
 0x10b   :  { %v775_v62 = vmax.f32 %v771_v23, 0.0  ;;  %v3328_v23 = vld [vmem:[#allocation3 + $0x2f0] sm:$0xf0] }
 0x10c   :  { %2112 = vmatpush.bf16.msra.mxu0 %v2967_v37 }
 0x10d   :  { %v777_v56 = vpack.c.bf16 %v775_v62, %v775_v62  ;;  %2120 = vmatpush.bf16.msra.mxu1 %v3303_v1  ;;  %v3331_v62 = vor.u32 %v4011_v0, %v3328_v23  ;;  %v3967_v23 = vld [vmem:[#allocation3 + $0x174] sm:$0xf0] }
 0x10f   :  { %779 = vst [vmem:[#allocation2 + $0x8] sm:$0xf] %v777_v56  ;;  %2113 = vmatmul.bf16.vlgmr.msra.gmra.mxu0 %v4799_v32  ;;  %v4050_v56 = vld [vmem:[#allocation3 + $0x40c] sm:$0xf0] }
 0x110   :  { %v772_v38 = vpop.f32.mrf.mxu2  ;;  %2161 = vmatpush.bf16.msrb.mxu0 %v3139_v53  ;;  %v4098_v53 = vld [vmem:[#allocation3 + $0x58c] sm:$0xf0] }
 0x111   :  { %v806_v29 = vpop.f32.mrf.mxu3  ;;  %v773_v9 = vadd.f32 %v4412_v21, %v772_v38  ;;  %2121 = vmatpush.bf16.msra.mxu1 %v3279_v20  ;;  %v3158_v21 = vld [vmem:[#allocation3 + $0x188] sm:$0xf]  ;;  %v3067_v20 = vor.u32 %v3945_v33, %v3064_v58  ;;  %v3471_v38 = vor.u32 %v4050_v56, %v3470_v45  ;;  %v3663_v6 = vor.u32 %v4098_v53, %v3662_v14  ;;  %v3981_v33 = vld [vmem:[#allocation3 + $0x1ec] sm:$0xf]  ;;  %v3208_v58 = vld [vmem:[#allocation3 + $0x200] sm:$0xf0] }
 0x112   :  { %v807_v39 = vadd.f32 %v4413_v16, %v806_v29  ;;  %v3159_v1 = vor.u32 %v3972_v48, %v3158_v21  ;;  %v3446_v29 = vld [vmem:[#allocation3 + $0x3c8] sm:$0xf]  ;;  %v3232_v21 = vld [vmem:[#allocation3 + $0x230] sm:$0xf0]  ;;  %v3639_v48 = vor.u32 %v4092_v44, %v3638_v7  ;;  %v3118_v45 = vld [vmem:[#allocation3 + $0x130] sm:$0xf] }
 0x113   :  { %v776_v59 = vmax.f32 %v773_v9, 0.0  ;;  %v3961_v56 = vld [vmem:[#allocation3 + $0x144] sm:$0xf0]  ;;  %v3160_v14 = vld [vmem:[#allocation3 + $0x1a0] sm:$0xf0] }
 0x114   :  { %v811_v43 = vmax.f32 %v807_v39, 0.0  ;;  %2162 = vmatpush.bf16.msrb.mxu0 %v3115_v22  ;;  %v4044_v39 = vld [vmem:[#allocation3 + $0x3dc] sm:$0xf0]  ;;  %v3070_v53 = vld [vmem:[#allocation3 + $0xd0] sm:$0xf] }
 0x115   :  { %v778_v52 = vpack.c.bf16 %v776_v59, %v776_v59  ;;  %2122 = vmatpush.bf16.msra.mxu1 %v3255_v51  ;;  %v4104_v59 = vld [vmem:[#allocation3 + $0x5bc] sm:$0xf0]  ;;  %v3447_v37 = vor.u32 %v4044_v39, %v3446_v29  ;;  %v3975_v29 = vld [vmem:[#allocation3 + $0x1bc] sm:$0xf]  ;;  %v3310_v44 = vld [vmem:[#allocation3 + $0x2b0] sm:$0xf] }
 0x116   :  { %v813_v54 = vpack.c.bf16 %v811_v43, %v811_v43  ;;  %v2950_v57 = vld [vmem:[#allocation2 + $0x8] sm:$0xf]  ;;  %v3043_v43 = vor.u32 %v3939_v35, %v3040_v17  ;;  %v4032_v22 = vld [vmem:[#allocation3 + $0x37c] sm:$0xf0]  ;;  %v3211_v35 = vor.u32 %v3981_v33, %v3208_v58  ;;  %v4003_v33 = vld [vmem:[#allocation3 + $0x294] sm:$0xf0] }
 0x117   :  { %780 = vst [vmem:[#allocation2 + $0x18] sm:$0xf] %v778_v52  ;;  %v3933_v52 = vld [vmem:[#allocation3 + $0x6c] sm:$0xf]  ;;  %v4080_v17 = vld [vmem:[#allocation3 + $0x4fc] sm:$0xf0] }
 0x118   :  { %815 = vst [vmem:[#allocation2 + $0xc] sm:$0xf] %v813_v54  ;;  %2071 = vmatmul.bf16.vlgmr.msrb.gmra.mxu1 %v4805_v11  ;;  %2163 = vmatpush.bf16.msrb.mxu0 %v3091_v13  ;;  %v3687_v54 = vor.u32 %v4104_v59, %v3686_v36  ;;  %v3374_v13 = vld [vmem:[#allocation3 + $0x338] sm:$0xf]  ;;  %v4059_v36 = vld [vmem:[#allocation3 + $0x45c] sm:$0xf]  ;;  %v3591_v59 = vor.u32 %v4080_v17, %v3590_v4 }
 0x119   :  { %v808_v50 = vpop.f32.mrf.mxu3  ;;  %2123 = vmatpush.bf16.msra.mxu1 %v3231_v41  ;;  %v3016_v41 = vld [vmem:[#allocation3 + $0x80] sm:$0xf0]  ;;  %v3375_v31 = vor.u32 %v4026_v12, %v3374_v13  ;;  %v3094_v39 = vld [vmem:[#allocation3 + $0x100] sm:$0xf]  ;;  %v4101_v13 = vld [vmem:[#allocation3 + $0x5ac] sm:$0xf] }
 0x11a   :  { %v809_v63 = vadd.f32 %v4413_v16, %v808_v50  ;;  %v4005_v16 = vld [vmem:[#allocation3 + $0x2ac] sm:$0xf]  ;;  %v3019_v61 = vor.u32 %v3933_v52, %v3016_v41  ;;  %v3496_v41 = vld [vmem:[#allocation3 + $0x440] sm:$0xf0]  ;;  %v3022_v58 = vld [vmem:[#allocation3 + $0x70] sm:$0xf] }
 0x11b   :  { %v3307_v55 = vor.u32 %v4005_v16, %v3304_v49  ;;  %v3993_v50 = vld [vmem:[#allocation3 + $0x24c] sm:$0xf]  ;;  %v3350_v16 = vld [vmem:[#allocation3 + $0x308] sm:$0xf]  ;;  %v4020_v49 = vld [vmem:[#allocation3 + $0x31c] sm:$0xf0] }
 0x11c   :  { %v812_v15 = vmax.f32 %v809_v63, 0.0  ;;  %2164 = vmatpush.bf16.msrb.mxu0 %v3067_v20  ;;  %v3927_v63 = vld [vmem:[#allocation3 + $0x3c] sm:$0xf]  ;;  %v4053_v52 = vld [vmem:[#allocation3 + $0x42c] sm:$0xf] }
 0x11d   :  { %2124 = vmatpush.bf16.msra.mxu1 %v3207_v19  ;;  %v3256_v19 = vld [vmem:[#allocation3 + $0x260] sm:$0xf0]  ;;  %v2995_v24 = vor.u32 %v3927_v63, %v2992_v2  ;;  %v3499_v63 = vor.u32 %v4053_v52, %v3496_v41  ;;  %v4068_v2 = vld [vmem:[#allocation3 + $0x49c] sm:$0xf0]  ;;  %v3664_v4 = vld [vmem:[#allocation3 + $0x590] sm:$0xf0] }
 0x11e   :  { %v814_v47 = vpack.c.bf16 %v812_v15, %v812_v15  ;;  %v3919_v27 = vld [vmem:[#allocation2 + $0x14] sm:$0xf0]  ;;  %v3259_v15 = vor.u32 %v3993_v50, %v3256_v19  ;;  %v3949_v50 = vld [vmem:[#allocation3 + $0xe4] sm:$0xf0]  ;;  %v3688_v12 = vld [vmem:[#allocation3 + $0x5c0] sm:$0xf0] }
 0x11f   :  { %v4814_v5 = vor.u32 %v3919_v27, %v2950_v57  ;;  %v3917_v9 = vld [vmem:[#allocation2 + $0xc] sm:$0xf]  ;;  %v3614_v57 = vld [vmem:[#allocation3 + $0x518] sm:$0xf]  ;;  %v3399_v27 = vor.u32 %v4032_v22, %v3398_v46  ;;  %v4107_v46 = vld [vmem:[#allocation3 + $0x5dc] sm:$0xf] }
 0x120   :  { %816 = vst [vmem:[#allocation2 + $0x1c] sm:$0xf] %v814_v47  ;;  %2165 = vmatpush.bf16.msrb.mxu0 %v3043_v43  ;;  %v2968_v47 = vld [vmem:[#allocation3 + $0x20] sm:$0xf0]  ;;  %v4074_v43 = vld [vmem:[#allocation3 + $0x4cc] sm:$0xf0] }
 0x121   :  { %2029 = vmatmul.bf16.vlgmr.msra.gmra.mxu2 %v4814_v5  ;;  %2125 = vmatpush.bf16.msra.mxu1 %v3183_v18  ;;  %v3987_v18 = vld [vmem:[#allocation3 + $0x21c] sm:$0xf]  ;;  %v3567_v19 = vor.u32 %v4074_v43, %v3566_v40  ;;  %v3712_v22 = vld [vmem:[#allocation3 + $0x5f0] sm:$0xf0]  ;;  %v3997_v17 = vld [vmem:[#allocation3 + $0x264] sm:$0xf0] }
 0x122   :  { %2133 = vmatpush.bf16.msra.mxu2 %v3519_v28  ;;  %v3142_v28 = vld [vmem:[#allocation3 + $0x160] sm:$0xf]  ;;  %v3235_v0 = vor.u32 %v3987_v18, %v3232_v21  ;;  %v3071_v18 = vor.u32 %v3949_v50, %v3070_v53  ;;  %v4009_v21 = vld [vmem:[#allocation3 + $0x2c4] sm:$0xf0]  ;;  %v3991_v43 = vld [vmem:[#allocation3 + $0x234] sm:$0xf0] }
 0x123   :  { %v3238_v40 = vld [vmem:[#allocation3 + $0x220] sm:$0xf]  ;;  %v2974_v52 = vld [vmem:[#allocation3 + $0x10] sm:$0xf]  ;;  %v3925_v41 = vld [vmem:[#allocation3 + $0x24] sm:$0xf0] }
 0x124   :  { %2166 = vmatpush.bf16.msrb.mxu0 %v3019_v61  ;;  %v3542_v61 = vld [vmem:[#allocation3 + $0x488] sm:$0xf]  ;;  %v4083_v53 = vld [vmem:[#allocation3 + $0x51c] sm:$0xf]  ;;  %v3616_v50 = vld [vmem:[#allocation3 + $0x530] sm:$0xf0] }
 0x125   :  { %2126 = vmatpush.bf16.msra.mxu1 %v3159_v1  ;;  %v4086_v1 = vld [vmem:[#allocation3 + $0x52c] sm:$0xf0] }
 0x126   :  { %2134 = vmatpush.bf16.msra.mxu2 %v3495_v34  ;;  %v2971_v34 = vor.u32 %v3921_v25, %v2968_v47  ;;  %v3615_v20 = vor.u32 %v4086_v1, %v3614_v57  ;;  %v3943_v25 = vld [vmem:[#allocation3 + $0xb4] sm:$0xf0]  ;;  %v3543_v47 = vor.u32 %v4068_v2, %v3542_v61  ;;  %v2975_v61 = vor.u32 %v3925_v41, %v2974_v52  ;;  %v3985_v2 = vld [vmem:[#allocation3 + $0x204] sm:$0xf0]  ;;  %v3048_v52 = vld [vmem:[#allocation3 + $0xb8] sm:$0xf0] }
 0x127   :  { %v2952_v51 = vld [vmem:[#allocation2 + $0x18] sm:$0xf0] }
 0x128   :  { %v4817_v10 = vor.u32 %v3917_v9, %v2952_v51  ;;  %2127 = vmatmul.bf16.vlgmr.msra.gmra.mxu1 %v4805_v11  ;;  %2167 = vmatpush.bf16.msrb.mxu0 %v2995_v24  ;;  %v3184_v9 = vld [vmem:[#allocation3 + $0x1d0] sm:$0xf0]  ;;  %v3119_v51 = vor.u32 %v3961_v56, %v3118_v45  ;;  %v3046_v24 = vld [vmem:[#allocation3 + $0xa0] sm:$0xf]  ;;  %v4035_v45 = vld [vmem:[#allocation3 + $0x39c] sm:$0xf] }
 0x129   :  { %2175 = vmatpush.bf16.msrb.mxu1 %v3331_v62  ;;  %v3143_v62 = vor.u32 %v3967_v23, %v3142_v28  ;;  %v4041_v28 = vld [vmem:[#allocation3 + $0x3cc] sm:$0xf]  ;;  %v3286_v23 = vld [vmem:[#allocation3 + $0x280] sm:$0xf]  ;;  %v3047_v1 = vor.u32 %v3943_v25, %v3046_v24  ;;  %v3424_v56 = vld [vmem:[#allocation3 + $0x3b0] sm:$0xf0] }
 0x12a   :  { %2043 = vmatmul.bf16.vlgmr.msra.gmra.mxu3 %v4817_v10  ;;  %2135 = vmatpush.bf16.msra.mxu2 %v3471_v38  ;;  %v3520_v38 = vld [vmem:[#allocation3 + $0x470] sm:$0xf0]  ;;  %v3526_v24 = vld [vmem:[#allocation3 + $0x460] sm:$0xf]  ;;  %v4063_v25 = vld [vmem:[#allocation3 + $0x474] sm:$0xf0] }
 0x12b   :  { %2147 = vmatpush.bf16.msra.mxu3 %v3711_v30  ;;  %v3351_v30 = vor.u32 %v4020_v49, %v3350_v16  ;;  %v3523_v60 = vor.u32 %v4059_v36, %v3520_v38  ;;  %v3287_v16 = vor.u32 %v4003_v33, %v3286_v23  ;;  %v3262_v49 = vld [vmem:[#allocation3 + $0x250] sm:$0xf]  ;;  %v2998_v36 = vld [vmem:[#allocation3 + $0x40] sm:$0xf]  ;;  %v3931_v38 = vld [vmem:[#allocation3 + $0x54] sm:$0xf0] }
 0x12c   :  { %2168 = vmatpush.bf16.msrb.mxu0 %v2971_v34  ;;  %v3937_v34 = vld [vmem:[#allocation3 + $0x84] sm:$0xf0]  ;;  %v4071_v23 = vld [vmem:[#allocation3 + $0x4bc] sm:$0xf]  ;;  %v3568_v33 = vld [vmem:[#allocation3 + $0x4d0] sm:$0xf0] }
 0x12d   :  { %2176 = vmatpush.bf16.msrb.mxu1 %v3307_v55  ;;  %v3955_v55 = vld [vmem:[#allocation3 + $0x114] sm:$0xf0] }
 0x12e   :  { %2136 = vmatpush.bf16.msra.mxu2 %v3447_v37  ;;  %v3187_v37 = vor.u32 %v3975_v29, %v3184_v9  ;;  %v3095_v42 = vor.u32 %v3955_v55, %v3094_v39  ;;  %v3427_v29 = vor.u32 %v4035_v45, %v3424_v56  ;;  %v4089_v39 = vld [vmem:[#allocation3 + $0x54c] sm:$0xf]  ;;  %v3640_v55 = vld [vmem:[#allocation3 + $0x560] sm:$0xf0]  ;;  %v3973_v45 = vld [vmem:[#allocation3 + $0x1a4] sm:$0xf0] }
 0x12f   :  { %2148 = vmatpush.bf16.msra.mxu3 %v3687_v54  ;;  %2169 = vmatmul.bf16.vlgmr.msrb.gmra.mxu0 %v4799_v32  ;;  %v3969_v54 = vld [vmem:[#allocation3 + $0x18c] sm:$0xf]  ;;  %v4012_v56 = vld [vmem:[#allocation3 + $0x2e4] sm:$0xf] }
 0x130   :  { %2217 = vmatpush.bf16.msra.mxu0 %v3143_v62  ;;  %v3163_v7 = vor.u32 %v3969_v54, %v3160_v14  ;;  %v3964_v54 = vld [vmem:[#allocation3 + $0x164] sm:$0xf]  ;;  %v3643_v14 = vor.u32 %v4089_v39, %v3640_v55  ;;  %v4111_v39 = vld [vmem:[#allocation3 + $0x5f4] sm:$0xf0] }
 0x131   :  { %2177 = vmatpush.bf16.msrb.mxu1 %v3283_v8  ;;  %2085 = vmatmul.bf16.vlgmr.msrb.gmra.mxu2 %v4814_v5  ;;  %v4015_v8 = vld [vmem:[#allocation3 + $0x2f4] sm:$0xf0] }
 0x132   :  { %2137 = vmatpush.bf16.msra.mxu2 %v3423_v3  ;;  %v4047_v3 = vld [vmem:[#allocation3 + $0x3fc] sm:$0xf] }
 0x133   :  { %2149 = vmatpush.bf16.msra.mxu3 %v3663_v6  ;;  %v3472_v6 = vld [vmem:[#allocation3 + $0x410] sm:$0xf0] }
 0x134   :  { %2218 = vmatpush.bf16.msra.mxu0 %v3119_v51  ;;  %v3475_v57 = vor.u32 %v4047_v3, %v3472_v6  ;;  %v4029_v51 = vld [vmem:[#allocation3 + $0x36c] sm:$0xf] }
 0x135   :  { %2178 = vmatpush.bf16.msrb.mxu1 %v3259_v15  ;;  %v3335_v15 = vor.u32 %v4015_v8, %v3334_v26  ;;  %v4023_v26 = vld [vmem:[#allocation3 + $0x33c] sm:$0xf] }
 0x136   :  { %2138 = vmatpush.bf16.msra.mxu2 %v3399_v27  ;;  %v3715_v27 = vor.u32 %v4107_v46, %v3712_v22  ;;  %v3144_v8 = vld [vmem:[#allocation3 + $0x178] sm:$0xf0]  ;;  %v3120_v46 = vld [vmem:[#allocation3 + $0x148] sm:$0xf0]  ;;  %v3619_v22 = vor.u32 %v4083_v53, %v3616_v50  ;;  %v4000_v50 = vld [vmem:[#allocation3 + $0x284] sm:$0xf] }
 0x137   :  { %2150 = vmatpush.bf16.msra.mxu3 %v3639_v48  ;;  %v3448_v48 = vld [vmem:[#allocation3 + $0x3e0] sm:$0xf0]  ;;  %v3147_v3 = vor.u32 %v3964_v54, %v3144_v8  ;;  %v4105_v8 = vld [vmem:[#allocation3 + $0x5c4] sm:$0xf0] }
 0x138   :  { %2219 = vmatpush.bf16.msra.mxu0 %v3095_v42  ;;  %v3451_v62 = vor.u32 %v4041_v28, %v3448_v48  ;;  %v3376_v42 = vld [vmem:[#allocation3 + $0x350] sm:$0xf0] }
 0x139   :  { %2179 = vmatpush.bf16.msrb.mxu1 %v3235_v0  ;;  %v3311_v0 = vor.u32 %v4009_v21, %v3310_v44  ;;  %v3379_v6 = vor.u32 %v4023_v26, %v3376_v42  ;;  %v4017_v44 = vld [vmem:[#allocation3 + $0x30c] sm:$0xf]  ;;  %v3592_v21 = vld [vmem:[#allocation3 + $0x500] sm:$0xf0]  ;;  %v4045_v26 = vld [vmem:[#allocation3 + $0x3e4] sm:$0xf0] }
 0x13a   :  { %2099 = vmatmul.bf16.vlgmr.msrb.gmra.mxu3 %v4817_v10  ;;  %2139 = vmatpush.bf16.msra.mxu2 %v3375_v31  ;;  %v3691_v31 = vor.u32 %v4101_v13, %v3688_v12  ;;  %v3952_v13 = vld [vmem:[#allocation3 + $0x104] sm:$0xf]  ;;  %v3096_v12 = vld [vmem:[#allocation3 + $0x118] sm:$0xf0]  ;;  %v3694_v42 = vld [vmem:[#allocation3 + $0x5b0] sm:$0xf] }
 0x13b   :  { %2151 = vmatpush.bf16.msra.mxu3 %v3615_v20  ;;  %v4095_v20 = vld [vmem:[#allocation3 + $0x57c] sm:$0xf] }
 0x13c   :  { %2220 = vmatpush.bf16.msra.mxu0 %v3071_v18  ;;  %v3667_v9 = vor.u32 %v4095_v20, %v3664_v4  ;;  %v3352_v18 = vld [vmem:[#allocation3 + $0x320] sm:$0xf0]  ;;  %v3099_v20 = vor.u32 %v3952_v13, %v3096_v12  ;;  %v3336_v4 = vld [vmem:[#allocation3 + $0x2f8] sm:$0xf0]  ;;  %v3646_v13 = vld [vmem:[#allocation3 + $0x550] sm:$0xf] }
 0x13d   :  { %2180 = vmatpush.bf16.msrb.mxu1 %v3211_v35  ;;  %v3023_v35 = vor.u32 %v3937_v34, %v3022_v58  ;;  %v3355_v48 = vor.u32 %v4017_v44, %v3352_v18  ;;  %v3502_v58 = vld [vmem:[#allocation3 + $0x430] sm:$0xf]  ;;  %v4057_v34 = vld [vmem:[#allocation3 + $0x444] sm:$0xf0]  ;;  %v3339_v55 = vor.u32 %v4012_v56, %v3336_v4  ;;  %v3994_v18 = vld [vmem:[#allocation3 + $0x254] sm:$0xf] }
 0x13e   :  { %2140 = vmatpush.bf16.msra.mxu2 %v3351_v30  ;;  %v3400_v30 = vld [vmem:[#allocation3 + $0x380] sm:$0xf0]  ;;  %v4093_v12 = vld [vmem:[#allocation3 + $0x564] sm:$0xf0]  ;;  %v4027_v56 = vld [vmem:[#allocation3 + $0x354] sm:$0xf0] }
 0x13f   :  { %2152 = vmatpush.bf16.msra.mxu3 %v3591_v59  ;;  %v3263_v59 = vor.u32 %v3997_v17, %v3262_v49  ;;  %v3072_v49 = vld [vmem:[#allocation3 + $0xe8] sm:$0xf0]  ;;  %v4087_v4 = vld [vmem:[#allocation3 + $0x534] sm:$0xf0] }
 0x140   :  { %2221 = vmatpush.bf16.msra.mxu0 %v3047_v1  ;;  %v3527_v1 = vor.u32 %v4063_v25, %v3526_v24  ;;  %v4065_v17 = vld [vmem:[#allocation3 + $0x48c] sm:$0xf]  ;;  %v3928_v25 = vld [vmem:[#allocation3 + $0x44] sm:$0xf] }
 0x141   :  { %2181 = vmatpush.bf16.msrb.mxu1 %v3187_v37  ;;  %2141 = vmatmul.bf16.vlgmr.msra.gmra.mxu2 %v4814_v5  ;;  %v3403_v37 = vor.u32 %v4029_v51, %v3400_v30  ;;  %v3718_v30 = vld [vmem:[#allocation3 + $0x5e0] sm:$0xf]  ;;  %v3264_v24 = vld [vmem:[#allocation3 + $0x268] sm:$0xf0] }
 0x142   :  { %2189 = vmatpush.bf16.msrb.mxu2 %v3523_v60  ;;  %v2999_v60 = vor.u32 %v3931_v38, %v2998_v36  ;;  %v3503_v36 = vor.u32 %v4057_v34, %v3502_v58  ;;  %v3544_v38 = vld [vmem:[#allocation3 + $0x4a0] sm:$0xf0]  ;;  %v3719_v54 = vor.u32 %v4111_v39, %v3718_v30  ;;  %v3922_v58 = vld [vmem:[#allocation3 + $0x14] sm:$0xf]  ;;  %v2976_v34 = vld [vmem:[#allocation3 + $0x28] sm:$0xf0] }
 0x143   :  { %2153 = vmatpush.bf16.msra.mxu3 %v3567_v19  ;;  %v3239_v19 = vor.u32 %v3991_v43, %v3238_v40  ;;  %v3940_v43 = vld [vmem:[#allocation3 + $0xa4] sm:$0xf]  ;;  %v3547_v41 = vor.u32 %v4065_v17, %v3544_v38  ;;  %v3216_v17 = vld [vmem:[#allocation3 + $0x208] sm:$0xf0]  ;;  %v4081_v30 = vld [vmem:[#allocation3 + $0x504] sm:$0xf0] }
 0x144   :  { %2222 = vmatpush.bf16.msra.mxu0 %v3023_v35  ;;  %v3571_v35 = vor.u32 %v4071_v23, %v3568_v33  ;;  %v3988_v23 = vld [vmem:[#allocation3 + $0x224] sm:$0xf]  ;;  %v3240_v33 = vld [vmem:[#allocation3 + $0x238] sm:$0xf0] }
 0x145   :  { %2182 = vmatpush.bf16.msrb.mxu1 %v3163_v7  ;;  %v3958_v7 = vld [vmem:[#allocation3 + $0x134] sm:$0xf]  ;;  %v4060_v39 = vld [vmem:[#allocation3 + $0x464] sm:$0xf] }
 0x146   :  { %2190 = vmatpush.bf16.msrb.mxu2 %v3499_v63  ;;  %v3214_v63 = vld [vmem:[#allocation3 + $0x1f0] sm:$0xf]  ;;  %v3123_v28 = vor.u32 %v3958_v7, %v3120_v46  ;;  %v3430_v7 = vld [vmem:[#allocation3 + $0x3a0] sm:$0xf]  ;;  %v4039_v46 = vld [vmem:[#allocation3 + $0x3b4] sm:$0xf0] }
 0x147   :  { %2154 = vmatpush.bf16.msra.mxu3 %v3543_v47  ;;  %v3215_v47 = vor.u32 %v3985_v2, %v3214_v63  ;;  %v3934_v63 = vld [vmem:[#allocation3 + $0x74] sm:$0xf]  ;;  %v3024_v2 = vld [vmem:[#allocation3 + $0x88] sm:$0xf0] }
 0x148   :  { %2183 = vmatmul.bf16.vlgmr.msrb.gmra.mxu1 %v4805_v11  ;;  %2223 = vmatpush.bf16.msra.mxu0 %v2999_v60  ;;  %v3312_v60 = vld [vmem:[#allocation3 + $0x2c8] sm:$0xf0] }
 0x149   :  { %2231 = vmatpush.bf16.msra.mxu1 %v3335_v15  ;;  %v4077_v15 = vld [vmem:[#allocation3 + $0x4ec] sm:$0xf] }
 0x14a   :  { %2191 = vmatpush.bf16.msrb.mxu2 %v3475_v57  ;;  %2155 = vmatmul.bf16.vlgmr.msra.gmra.mxu3 %v4817_v10  ;;  %v3190_v57 = vld [vmem:[#allocation3 + $0x1c0] sm:$0xf] }
 0x14b   :  { %2203 = vmatpush.bf16.msrb.mxu3 %v3715_v27  ;;  %v3979_v27 = vld [vmem:[#allocation3 + $0x1d4] sm:$0xf0] }
 0x14c   :  { %2224 = vmatpush.bf16.msra.mxu0 %v2975_v61  ;;  %v3288_v61 = vld [vmem:[#allocation3 + $0x298] sm:$0xf0] }
 0x14d   :  { %2232 = vmatpush.bf16.msra.mxu1 %v3311_v0  ;;  %v3595_v0 = vor.u32 %v4077_v15, %v3592_v21  ;;  %v4099_v15 = vld [vmem:[#allocation3 + $0x594] sm:$0xf0]  ;;  %v3291_v44 = vor.u32 %v4000_v50, %v3288_v61  ;;  %v3027_v21 = vor.u32 %v3934_v63, %v3024_v2  ;;  %v4069_v63 = vld [vmem:[#allocation3 + $0x4a4] sm:$0xf0]  ;;  %v4048_v2 = vld [vmem:[#allocation3 + $0x404] sm:$0xf] }
 0x14e   :  { %2192 = vmatpush.bf16.msrb.mxu2 %v3451_v62  ;;  %v3191_v62 = vor.u32 %v3979_v27, %v3190_v57  ;;  %v3431_v57 = vor.u32 %v4039_v46, %v3430_v7  ;;  %v4108_v7 = vld [vmem:[#allocation3 + $0x5e4] sm:$0xf] }
 0x14f   :  { %2204 = vmatpush.bf16.msrb.mxu3 %v3691_v31  ;;  %2225 = vmatmul.bf16.vlgmr.msra.gmra.mxu0 %v4799_v32  ;;  %v3166_v31 = vld [vmem:[#allocation3 + $0x190] sm:$0xf] }
 0x150   :  { %2273 = vmatpush.bf16.msrb.mxu0 %v3147_v3  ;;  %v3167_v51 = vor.u32 %v3973_v45, %v3166_v31  ;;  %v3647_v31 = vor.u32 %v4093_v12, %v3646_v13  ;;  %v3382_v45 = vld [vmem:[#allocation3 + $0x340] sm:$0xf]  ;;  %v4096_v13 = vld [vmem:[#allocation3 + $0x584] sm:$0xf]  ;;  %v3672_v12 = vld [vmem:[#allocation3 + $0x598] sm:$0xf0] }
 0x151   :  { %2233 = vmatpush.bf16.msra.mxu1 %v3287_v16  ;;  %v3946_v16 = vld [vmem:[#allocation3 + $0xd4] sm:$0xf] }
 0x152   :  { %2193 = vmatpush.bf16.msrb.mxu2 %v3427_v29  ;;  %v3478_v29 = vld [vmem:[#allocation3 + $0x400] sm:$0xf]  ;;  %v3075_v40 = vor.u32 %v3946_v16, %v3072_v49  ;;  %v3243_v16 = vor.u32 %v3988_v23, %v3240_v33  ;;  %v2979_v49 = vor.u32 %v3922_v58, %v2976_v34  ;;  %v4030_v33 = vld [vmem:[#allocation3 + $0x374] sm:$0xf]  ;;  %v3408_v58 = vld [vmem:[#allocation3 + $0x388] sm:$0xf0] }
 0x153   :  { %2205 = vmatpush.bf16.msrb.mxu3 %v3667_v9  ;;  %v4051_v9 = vld [vmem:[#allocation3 + $0x414] sm:$0xf0]  ;;  %v4090_v34 = vld [vmem:[#allocation3 + $0x554] sm:$0xf] }
 0x154   :  { %2274 = vmatpush.bf16.msrb.mxu0 %v3123_v28  ;;  %v3406_v28 = vld [vmem:[#allocation3 + $0x370] sm:$0xf] }
 0x155   :  { %2234 = vmatpush.bf16.msra.mxu1 %v3263_v59  ;;  %v4006_v59 = vld [vmem:[#allocation3 + $0x2b4] sm:$0xf] }
 0x156   :  { %2194 = vmatpush.bf16.msrb.mxu2 %v3403_v37  ;;  %v3479_v37 = vor.u32 %v4051_v9, %v3478_v29  ;;  %v3315_v53 = vor.u32 %v4006_v59, %v3312_v60  ;;  %v3598_v29 = vld [vmem:[#allocation3 + $0x4f0] sm:$0xf]  ;;  %v3192_v60 = vld [vmem:[#allocation3 + $0x1d8] sm:$0xf0] }
 0x157   :  { %2206 = vmatpush.bf16.msrb.mxu3 %v3643_v14  ;;  %v3454_v14 = vld [vmem:[#allocation3 + $0x3d0] sm:$0xf] }
 0x158   :  { %2275 = vmatpush.bf16.msrb.mxu0 %v3099_v20  ;;  %v3455_v3 = vor.u32 %v4045_v26, %v3454_v14  ;;  %v3622_v20 = vld [vmem:[#allocation3 + $0x520] sm:$0xf]  ;;  %v3358_v9 = vld [vmem:[#allocation3 + $0x310] sm:$0xf]  ;;  %v4054_v14 = vld [vmem:[#allocation3 + $0x434] sm:$0xf] }
 0x159   :  { %2235 = vmatpush.bf16.msra.mxu1 %v3239_v19  ;;  %v3051_v19 = vor.u32 %v3940_v43, %v3048_v52  ;;  %v3623_v38 = vor.u32 %v4087_v4, %v3622_v20  ;;  %v3599_v52 = vor.u32 %v4081_v30, %v3598_v29  ;;  %v3504_v26 = vld [vmem:[#allocation3 + $0x448] sm:$0xf0]  ;;  %v3384_v20 = vld [vmem:[#allocation3 + $0x358] sm:$0xf0]  ;;  %v4084_v4 = vld [vmem:[#allocation3 + $0x524] sm:$0xf] }
 0x15a   :  { %2195 = vmatpush.bf16.msrb.mxu2 %v3379_v6  ;;  %v3695_v6 = vor.u32 %v4105_v8, %v3694_v42  ;;  %v3970_v8 = vld [vmem:[#allocation3 + $0x194] sm:$0xf]  ;;  %v3507_v61 = vor.u32 %v4054_v14, %v3504_v26  ;;  %v4127_v29 = vld [vmem:[%s4991_s4 + $0x78] sm:$0xff] }
 0x15b   :  { %2207 = vmatpush.bf16.msrb.mxu3 %v3619_v22  ;;  %v3670_v22 = vld [vmem:[#allocation3 + $0x580] sm:$0xf]  ;;  %v4114_v30 = vld [vmem:[%s4991_s4 + $0x10] sm:$0xff] }
 0x15c   :  { %2276 = vmatpush.bf16.msrb.mxu0 %v3075_v40  ;;  %v3671_v27 = vor.u32 %v4099_v15, %v3670_v22  ;;  %v3976_v40 = vld [vmem:[#allocation3 + $0x1c4] sm:$0xf] }
 0x15d   :  { %2236 = vmatpush.bf16.msra.mxu1 %v3215_v47  ;;  %v3000_v47 = vld [vmem:[#allocation3 + $0x58] sm:$0xf0]  ;;  %v3195_v42 = vor.u32 %v3976_v40, %v3192_v60  ;;  %v4072_v40 = vld [vmem:[#allocation3 + $0x4c4] sm:$0xf] }
 0x15e   :  { %2196 = vmatpush.bf16.msrb.mxu2 %v3355_v48  ;;  %v4033_v48 = vld [vmem:[#allocation3 + $0x384] sm:$0xf0]  ;;  %v3576_v60 = vld [vmem:[#allocation3 + $0x4d8] sm:$0xf0] }
 0x15f   :  { %2208 = vmatpush.bf16.msrb.mxu3 %v3595_v0  ;;  %v3267_v0 = vor.u32 %v3994_v18, %v3264_v24  ;;  %v3456_v18 = vld [vmem:[#allocation3 + $0x3e8] sm:$0xf0]  ;;  %v4102_v24 = vld [vmem:[#allocation3 + $0x5b4] sm:$0xf] }
 0x160   :  { %2277 = vmatpush.bf16.msrb.mxu0 %v3051_v19  ;;  %v3550_v19 = vld [vmem:[#allocation3 + $0x490] sm:$0xf] }
 0x161   :  { %2237 = vmatpush.bf16.msra.mxu1 %v3191_v62  ;;  %2197 = vmatmul.bf16.vlgmr.msrb.gmra.mxu2 %v4814_v5  ;;  %v3407_v62 = vor.u32 %v4033_v48, %v3406_v28  ;;  %v3551_v46 = vor.u32 %v4069_v63, %v3550_v19  ;;  %v4036_v28 = vld [vmem:[#allocation3 + $0x3a4] sm:$0xf]  ;;  %v3432_v48 = vld [vmem:[#allocation3 + $0x3b8] sm:$0xf0]  ;;  %v4134_v19 = vld [vmem:[%s4991_s4 + $0xb0] sm:$0xff] }
 0x162   :  { %2245 = vmatpush.bf16.msra.mxu2 %v3527_v1  ;;  %v3003_v1 = vor.u32 %v3928_v25, %v3000_v47  ;;  %v3696_v25 = vld [vmem:[#allocation3 + $0x5c8] sm:$0xf0]  ;;  %v3435_v23 = vor.u32 %v4036_v28, %v3432_v48 }
 0x163   :  { %2209 = vmatpush.bf16.msrb.mxu3 %v3571_v35  ;;  %v3982_v35 = vld [vmem:[#allocation3 + $0x1f4] sm:$0xf] }
 0x164   :  { %2278 = vmatpush.bf16.msrb.mxu0 %v3027_v21  ;;  %v3219_v59 = vor.u32 %v3982_v35, %v3216_v17  ;;  %v4119_v21 = vld [vmem:[%s4991_s4 + $0x38] sm:$0xff]  ;;  %v4018_v35 = vld [vmem:[#allocation3 + $0x314] sm:$0xf] }
 0x165   :  { %2238 = vmatpush.bf16.msra.mxu1 %v3167_v51  ;;  %v4021_v51 = vld [vmem:[#allocation3 + $0x324] sm:$0xf0] }
 0x166   :  { %2246 = vmatpush.bf16.msra.mxu2 %v3503_v36  ;;  %v3383_v36 = vor.u32 %v4027_v56, %v3382_v45  ;;  %v3359_v43 = vor.u32 %v4021_v51, %v3358_v9  ;;  %v4024_v56 = vld [vmem:[#allocation3 + $0x344] sm:$0xf]  ;;  %v4078_v9 = vld [vmem:[#allocation3 + $0x4f4] sm:$0xf]  ;;  %v3600_v51 = vld [vmem:[#allocation3 + $0x508] sm:$0xf0] }
 0x167   :  { %2210 = vmatpush.bf16.msrb.mxu3 %v3547_v41  ;;  %v3574_v41 = vld [vmem:[#allocation3 + $0x4c0] sm:$0xf] }
 0x168   :  { %2239 = vmatmul.bf16.vlgmr.msra.gmra.mxu1 %v4805_v11  ;;  %2279 = vmatpush.bf16.msrb.mxu0 %v3003_v1  ;;  %v3675_v1 = vor.u32 %v4096_v13, %v3672_v12  ;;  %v4129_v12 = vld [vmem:[%s4991_s4 + $0x88] sm:$0xff] }
 0x169   :  { %2287 = vmatpush.bf16.msrb.mxu1 %v3339_v55  ;;  %v3528_v55 = vld [vmem:[#allocation3 + $0x478] sm:$0xf0] }
 0x16a   :  { %2247 = vmatpush.bf16.msra.mxu2 %v3479_v37  ;;  %2211 = vmatmul.bf16.vlgmr.msrb.gmra.mxu3 %v4817_v10  ;;  %v3531_v37 = vor.u32 %v4060_v39, %v3528_v55  ;;  %v4126_v39 = vld [vmem:[%s4991_s4 + $0x70] sm:$0xff] }
 0x16b   :  { %2259 = vmatpush.bf16.msra.mxu3 %v3719_v54  ;;  %v4075_v54 = vld [vmem:[#allocation3 + $0x4d4] sm:$0xf0] }
 0x16c   :  { %2280 = vmatpush.bf16.msrb.mxu0 %v2979_v49  ;;  %v3575_v50 = vor.u32 %v4075_v54, %v3574_v41  ;;  %v3387_v49 = vor.u32 %v4024_v56, %v3384_v20  ;;  %v4125_v41 = vld [vmem:[%s4991_s4 + $0x68] sm:$0xff]  ;;  %v2002_v14 = vpop.f32.mrf.mxu0 }
 0x16d   :  { %2288 = vmatpush.bf16.msrb.mxu1 %v3315_v53  ;;  %v3168_v53 = vld [vmem:[#allocation3 + $0x1a8] sm:$0xf0] }
 0x16e   :  { %2248 = vmatpush.bf16.msra.mxu2 %v3455_v3  ;;  %v3480_v3 = vld [vmem:[#allocation3 + $0x418] sm:$0xf0]  ;;  %v3552_v54 = vld [vmem:[#allocation3 + $0x4a8] sm:$0xf0] }
 0x16f   :  { %2260 = vmatpush.bf16.msra.mxu3 %v3695_v6  ;;  %2281 = vmatmul.bf16.vlgmr.msrb.gmra.mxu0 %v4799_v32  ;;  %v3171_v6 = vor.u32 %v3970_v8, %v3168_v53  ;;  %v3720_v32 = vld [vmem:[#allocation3 + $0x5f8] sm:$0xf0]  ;;  %v3483_v22 = vor.u32 %v4048_v2, %v3480_v3  ;;  %v4124_v8 = vld [vmem:[%s4991_s4 + $0x60] sm:$0xff] }
 0x170   :  { %v3723_v15 = vor.u32 %v4108_v7, %v3720_v32  ;;  %2735 = vmatpush.bf16.msra.mxu0 %v4119_v21  ;;  %v4133_v7 = vld [vmem:[%s4991_s4 + $0xa8] sm:$0xff]  ;;  %v4132_v32 = vld [vmem:[%s4991_s4 + $0xa0] sm:$0xff] }
 0x171   :  { %2289 = vmatpush.bf16.msrb.mxu1 %v3291_v44  ;;  %v4042_v44 = vld [vmem:[#allocation3 + $0x3d4] sm:$0xf] }
 0x172   :  { %2249 = vmatpush.bf16.msra.mxu2 %v3431_v57  ;;  %v3459_v47 = vor.u32 %v4042_v44, %v3456_v18  ;;  %v4118_v57 = vld [vmem:[%s4991_s4 + $0x30] sm:$0xff]  ;;  %v4131_v18 = vld [vmem:[%s4991_s4 + $0x98] sm:$0xff] }
 0x173   :  { %2261 = vmatpush.bf16.msra.mxu3 %v3671_v27  ;;  %v3699_v27 = vor.u32 %v4102_v24, %v3696_v25 }
 0x174   :  { %2736 = vmatpush.bf16.msra.mxu0 %v4118_v57  ;;  %v2004_v63 = vpop.f32.mrf.mxu0 }
 0x175   :  { %2290 = vmatpush.bf16.msrb.mxu1 %v3267_v0  ;;  %v4117_v0 = vld [vmem:[%s4991_s4 + $0x28] sm:$0xff] }
 0x176   :  { %2250 = vmatpush.bf16.msra.mxu2 %v3407_v62  ;;  %v3648_v62 = vld [vmem:[#allocation3 + $0x568] sm:$0xf0] }
 0x177   :  { %2262 = vmatpush.bf16.msra.mxu3 %v3647_v31  ;;  %v3411_v31 = vor.u32 %v4030_v33, %v3408_v58  ;;  %v3651_v45 = vor.u32 %v4090_v34, %v3648_v62  ;;  %v4128_v34 = vld [vmem:[%s4991_s4 + $0x80] sm:$0xff]  ;;  %v4143_v62 = vld [vmem:[%s4991_s4 + $0xf8] sm:$0xff] }
 0x178   :  { %2737 = vmatpush.bf16.msra.mxu0 %v4117_v0 }
 0x179   :  { %2291 = vmatpush.bf16.msrb.mxu1 %v3243_v16  ;;  %v3624_v16 = vld [vmem:[#allocation3 + $0x538] sm:$0xf0] }
 0x17a   :  { %2251 = vmatpush.bf16.msra.mxu2 %v3383_v36  ;;  %v3627_v17 = vor.u32 %v4084_v4, %v3624_v16  ;;  %v3360_v36 = vld [vmem:[#allocation3 + $0x328] sm:$0xf0] }
 0x17b   :  { %2263 = vmatpush.bf16.msra.mxu3 %v3623_v38  ;;  %v4115_v38 = vld [vmem:[%s4991_s4 + $0x18] sm:$0xff]  ;;  %v3363_v55 = vor.u32 %v4018_v35, %v3360_v36  ;;  %v4141_v16 = vld [vmem:[%s4991_s4 + $0xe8] sm:$0xff] }
 0x17c   :  { %v2058_v44 = vpop.f32.mrf.mxu0 }
 0x17d   :  { %2292 = vmatpush.bf16.msrb.mxu1 %v3219_v59  ;;  %v3603_v59 = vor.u32 %v4078_v9, %v3600_v51  ;;  %v4140_v9 = vld [vmem:[%s4991_s4 + $0xe0] sm:$0xff] }
 0x17e   :  { %2252 = vmatpush.bf16.msra.mxu2 %v3359_v43  ;;  %v3579_v43 = vor.u32 %v4072_v40, %v3576_v60 }
 0x17f   :  { %2264 = vmatpush.bf16.msra.mxu3 %v3599_v52  ;;  %v4113_v52 = vld [vmem:[%s4991_s4 + $0x8] sm:$0xff] }
 0x181   :  { %2293 = vmatpush.bf16.msrb.mxu1 %v3195_v42  ;;  %2253 = vmatmul.bf16.vlgmr.msra.gmra.mxu2 %v4814_v5  ;;  %v4112_v42 = vld [vmem:[%s4991_s4] sm:$0xff] }
 0x182   :  { %2301 = vmatpush.bf16.msrb.mxu2 %v3531_v37  ;;  %v4066_v37 = vld [vmem:[#allocation3 + $0x494] sm:$0xf] }
 0x183   :  { %2265 = vmatpush.bf16.msra.mxu3 %v3575_v50  ;;  %v3555_v26 = vor.u32 %v4066_v37, %v3552_v54  ;;  %v4135_v50 = vld [vmem:[%s4991_s4 + $0xb8] sm:$0xff] }
 0x185   :  { %2294 = vmatpush.bf16.msrb.mxu1 %v3171_v6  ;;  %v2016_v53 = vpop.f32.mrf.mxu1  ;;  %v4121_v6 = vld [vmem:[%s4991_s4 + $0x48] sm:$0xff] }
 0x186   :  { %2302 = vmatpush.bf16.msrb.mxu2 %v3507_v61  ;;  %v4122_v61 = vld [vmem:[%s4991_s4 + $0x50] sm:$0xff] }
 0x187   :  { %2266 = vmatpush.bf16.msra.mxu3 %v3551_v46 }
 0x188   :  { %2295 = vmatmul.bf16.vlgmr.msrb.gmra.mxu1 %v4805_v11  ;;  %v4116_v11 = vld [vmem:[%s4991_s4 + $0x20] sm:$0xff] }
 0x189   :  { %2738 = vmatpush.bf16.msra.mxu0 %v4116_v11  ;;  %2749 = vmatpush.bf16.msra.mxu1 %v4127_v29 }
 0x18a   :  { %2303 = vmatpush.bf16.msrb.mxu2 %v3483_v22  ;;  %2267 = vmatmul.bf16.vlgmr.msra.gmra.mxu3 %v4817_v10 }
 0x18b   :  { %2315 = vmatpush.bf16.msrb.mxu3 %v3723_v15  ;;  %v2017_v15 = vadd.f32 %v2016_v53, %v2002_v14 }
 0x18d   :  { %2739 = vmatpush.bf16.msra.mxu0 %v4115_v38  ;;  %2750 = vmatpush.bf16.msra.mxu1 %v4126_v39  ;;  %v2018_v3 = vpop.f32.mrf.mxu1 }
 0x18e   :  { %2304 = vmatpush.bf16.msrb.mxu2 %v3459_v47  ;;  %v2019_v24 = vadd.f32 %v2018_v3, %v2004_v63  ;;  %v4130_v47 = vld [vmem:[%s4991_s4 + $0x90] sm:$0xff] }
 0x18f   :  { %2316 = vmatpush.bf16.msrb.mxu3 %v3699_v27 }
 0x191   :  { %2740 = vmatpush.bf16.msra.mxu0 %v4114_v30  ;;  %2751 = vmatpush.bf16.msra.mxu1 %v4125_v41 }
 0x192   :  { %2305 = vmatpush.bf16.msrb.mxu2 %v3435_v23  ;;  %v2060_v23 = vpop.f32.mrf.mxu0 }
 0x193   :  { %2317 = vmatpush.bf16.msrb.mxu3 %v3675_v1 }
 0x195   :  { %2741 = vmatpush.bf16.msra.mxu0 %v4113_v52  ;;  %2752 = vmatpush.bf16.msra.mxu1 %v4124_v8  ;;  %v2072_v21 = vpop.f32.mrf.mxu1  ;;  %v4138_v52 = vld [vmem:[%s4991_s4 + $0xd0] sm:$0xff] }
 0x196   :  { %2306 = vmatpush.bf16.msrb.mxu2 %v3411_v31  ;;  %v2073_v56 = vadd.f32 %v2072_v21, %v2058_v44  ;;  %v4146_v21 = vld [vmem:[%s4991_s4 + $0x110] sm:$0xff] }
 0x197   :  { %2318 = vmatpush.bf16.msrb.mxu3 %v3651_v45  ;;  %v4142_v45 = vld [vmem:[%s4991_s4 + $0xf0] sm:$0xff] }
 0x199   :  { %2742 = vmatpush.bf16.msra.mxu0 %v4112_v42  ;;  %v4137_v42 = vld [vmem:[%s4991_s4 + $0xc8] sm:$0xff] }
 0x19a   :  { %2307 = vmatpush.bf16.msrb.mxu2 %v3387_v49  ;;  %v2114_v49 = vpop.f32.mrf.mxu0 }
 0x19b   :  { %2319 = vmatpush.bf16.msrb.mxu3 %v3627_v17 }
 0x19d   :  { %v2074_v33 = vpop.f32.mrf.mxu1 }
 0x19e   :  { %2308 = vmatpush.bf16.msrb.mxu2 %v3363_v55  ;;  %v2075_v20 = vadd.f32 %v2074_v33, %v2060_v23  ;;  %v4159_v23 = vld [vmem:[%s4991_s4 + $0x178] sm:$0xff] }
 0x19f   :  { %2320 = vmatpush.bf16.msrb.mxu3 %v3603_v59  ;;  %v4139_v59 = vld [vmem:[%s4991_s4 + $0xd8] sm:$0xff] }
 0x1a1   :  { %2309 = vmatmul.bf16.vlgmr.msrb.gmra.mxu2 %v4814_v5  ;;  %v4123_v5 = vld [vmem:[%s4991_s4 + $0x58] sm:$0xff] }
 0x1a2   :  { %2763 = vmatpush.bf16.msra.mxu2 %v4135_v50  ;;  %2753 = vmatpush.bf16.msra.mxu1 %v4123_v5  ;;  %v2116_v40 = vpop.f32.mrf.mxu0  ;;  %v4136_v50 = vld [vmem:[%s4991_s4 + $0xc0] sm:$0xff] }
 0x1a3   :  { %2321 = vmatpush.bf16.msrb.mxu3 %v3579_v43 }
 0x1a4   :  { %v2030_v2 = vpop.f32.mrf.mxu2 }
 0x1a5   :  { %v2031_v25 = vadd.f32 %v2030_v2, %v2017_v15  ;;  %v2128_v17 = vpop.f32.mrf.mxu1  ;;  %v4150_v2 = vld [vmem:[%s4991_s4 + $0x130] sm:$0xff] }
 0x1a6   :  { %2764 = vmatpush.bf16.msra.mxu2 %v4134_v19  ;;  %2754 = vmatpush.bf16.msra.mxu1 %v4122_v61  ;;  %v2129_v41 = vadd.f32 %v2128_v17, %v2114_v49  ;;  %v4151_v19 = vld [vmem:[%s4991_s4 + $0x138] sm:$0xff] }
 0x1a7   :  { %2322 = vmatpush.bf16.msrb.mxu3 %v3555_v26  ;;  %2791 = vmatpush.bf16.msrb.mxu0 %v4151_v19 }
 0x1aa   :  { %2323 = vmatmul.bf16.vlgmr.msrb.gmra.mxu3 %v4817_v10  ;;  %2765 = vmatpush.bf16.msra.mxu2 %v4133_v7  ;;  %v4120_v10 = vld [vmem:[%s4991_s4 + $0x40] sm:$0xff] }
 0x1ab   :  { %2755 = vmatpush.bf16.msra.mxu1 %v4121_v6  ;;  %2777 = vmatpush.bf16.msra.mxu3 %v4143_v62  ;;  %v4149_v6 = vld [vmem:[%s4991_s4 + $0x128] sm:$0xff] }
 0x1ac   :  { %v2032_v46 = vpop.f32.mrf.mxu2  ;;  %2792 = vmatpush.bf16.msrb.mxu0 %v4150_v2  ;;  %v2170_v7 = vpop.f32.mrf.mxu0  ;;  %v4157_v62 = vld [vmem:[%s4991_s4 + $0x168] sm:$0xff] }
 0x1ad   :  { %v2044_v22 = vpop.f32.mrf.mxu3  ;;  %v2033_v57 = vadd.f32 %v2032_v46, %v2019_v24  ;;  %v2130_v60 = vpop.f32.mrf.mxu1 }
 0x1ae   :  { %2766 = vmatpush.bf16.msra.mxu2 %v4132_v32  ;;  %v2045_v27 = vadd.f32 %v2044_v22, %v2031_v25  ;;  %v2131_v54 = vadd.f32 %v2130_v60, %v2116_v40  ;;  %v4148_v32 = vld [vmem:[%s4991_s4 + $0x120] sm:$0xff]  ;;  %v4147_v22 = vld [vmem:[%s4991_s4 + $0x118] sm:$0xff] }
 0x1af   :  { %2756 = vmatpush.bf16.msra.mxu1 %v4120_v10  ;;  %2778 = vmatpush.bf16.msra.mxu3 %v4142_v45  ;;  %v4156_v45 = vld [vmem:[%s4991_s4 + $0x160] sm:$0xff] }
 0x1b0   :  { %v2329_v0 = vmax.f32 %v2045_v27, 0.0  ;;  %2793 = vmatpush.bf16.msrb.mxu0 %v4149_v6 }
 0x1b2   :  { %2767 = vmatpush.bf16.msra.mxu2 %v4131_v18 }
 0x1b3   :  { %2779 = vmatpush.bf16.msra.mxu3 %v4141_v16  ;;  %2805 = vmatpush.bf16.msrb.mxu1 %v4159_v23 }
 0x1b4   :  { %v2086_v28 = vpop.f32.mrf.mxu2  ;;  %2794 = vmatpush.bf16.msrb.mxu0 %v4148_v32  ;;  %v2172_v15 = vpop.f32.mrf.mxu0 }
 0x1b5   :  { %v2046_v48 = vpop.f32.mrf.mxu3  ;;  %v2087_v4 = vadd.f32 %v2086_v28, %v2073_v56  ;;  %v4145_v28 = vld [vmem:[%s4991_s4 + $0x108] sm:$0xff] }
 0x1b6   :  { %2768 = vmatpush.bf16.msra.mxu2 %v4130_v47  ;;  %v2047_v13 = vadd.f32 %v2046_v48, %v2033_v57 }
 0x1b7   :  { %2780 = vmatpush.bf16.msra.mxu3 %v4140_v9 }
 0x1b8   :  { %v2335_v1 = vmax.f32 %v2047_v13, 0.0  ;;  %2795 = vmatpush.bf16.msrb.mxu0 %v4147_v22 }
 0x1ba   :  { %2769 = vmatpush.bf16.msra.mxu2 %v4129_v12  ;;  %v2341_v58 = vpack.c.bf16 %v2335_v1, %v2329_v0  ;;  %v4144_v0 = vld [vmem:[%s4991_s4 + $0x100] sm:$0xff] }
 0x1bb   :  { %2781 = vmatpush.bf16.msra.mxu3 %v4139_v59  ;;  %v4152_v59 = vld [vmem:[%s4991_s4 + $0x140] sm:$0xff] }
 0x1bc   :  { %2743 = vmatmul.bf16.vlgmr.msra.gmra.mxu0 %v2341_v58  ;;  %v2088_v11 = vpop.f32.mrf.mxu2  ;;  %v4158_v58 = vld [vmem:[%s4991_s4 + $0x170] sm:$0xff] }
 0x1bd   :  { %v2100_v31 = vpop.f32.mrf.mxu3  ;;  %v2089_v35 = vadd.f32 %v2088_v11, %v2075_v20  ;;  %2796 = vmatpush.bf16.msrb.mxu0 %v4146_v21  ;;  %2806 = vmatpush.bf16.msrb.mxu1 %v4158_v58  ;;  %v4155_v20 = vld [vmem:[%s4991_s4 + $0x158] sm:$0xff] }
 0x1be   :  { %2770 = vmatpush.bf16.msra.mxu2 %v4128_v34  ;;  %v2101_v36 = vadd.f32 %v2100_v31, %v2087_v4 }
 0x1bf   :  { %2782 = vmatpush.bf16.msra.mxu3 %v4138_v52 }
 0x1c0   :  { %v2330_v30 = vmax.f32 %v2101_v36, 0.0 }
 0x1c1   :  { %2797 = vmatpush.bf16.msrb.mxu0 %v4145_v28  ;;  %2807 = vmatpush.bf16.msrb.mxu1 %v4157_v62 }
 0x1c3   :  { %2783 = vmatpush.bf16.msra.mxu3 %v4137_v42 }
 0x1c4   :  { %v2142_v29 = vpop.f32.mrf.mxu2 }
 0x1c5   :  { %v2102_v38 = vpop.f32.mrf.mxu3  ;;  %v2143_v14 = vadd.f32 %v2142_v29, %v2129_v41  ;;  %v2184_v10 = vpop.f32.mrf.mxu1  ;;  %2798 = vmatpush.bf16.msrb.mxu0 %v4144_v0  ;;  %2808 = vmatpush.bf16.msrb.mxu1 %v4156_v45 }
 0x1c6   :  { %v2103_v51 = vadd.f32 %v2102_v38, %v2089_v35  ;;  %v2185_v24 = vadd.f32 %v2184_v10, %v2170_v7  ;;  %v4154_v35 = vld [vmem:[%s4991_s4 + $0x150] sm:$0xff] }
 0x1c7   :  { %2784 = vmatpush.bf16.msra.mxu3 %v4136_v50 }
 0x1c8   :  { %v2336_v39 = vmax.f32 %v2103_v51, 0.0  ;;  %v4153_v51 = vld [vmem:[%s4991_s4 + $0x148] sm:$0xff] }
 0x1c9   :  { %2809 = vmatpush.bf16.msrb.mxu1 %v4155_v20 }
 0x1ca   :  { %v2342_v55 = vpack.c.bf16 %v2336_v39, %v2330_v30 }
 0x1cc   :  { %2757 = vmatmul.bf16.vlgmr.msra.gmra.mxu1 %v2342_v55  ;;  %v2144_v37 = vpop.f32.mrf.mxu2  ;;  %v2226_v11 = vpop.f32.mrf.mxu0 }
 0x1cd   :  { %v2156_v43 = vpop.f32.mrf.mxu3  ;;  %v2145_v26 = vadd.f32 %v2144_v37, %v2131_v54  ;;  %v2186_v44 = vpop.f32.mrf.mxu1  ;;  %2810 = vmatpush.bf16.msrb.mxu1 %v4154_v35 }
 0x1ce   :  { %v2157_v8 = vadd.f32 %v2156_v43, %v2143_v14  ;;  %v2187_v47 = vadd.f32 %v2186_v44, %v2172_v15 }
 0x1d0   :  { %v2331_v61 = vmax.f32 %v2157_v8, 0.0 }
 0x1d1   :  { %2811 = vmatpush.bf16.msrb.mxu1 %v4153_v51 }
 0x1d4   :  { %v2228_v4 = vpop.f32.mrf.mxu0 }
 0x1d5   :  { %v2158_v53 = vpop.f32.mrf.mxu3  ;;  %2812 = vmatpush.bf16.msrb.mxu1 %v4152_v59 }
 0x1d6   :  { %v2159_v5 = vadd.f32 %v2158_v53, %v2145_v26 }
 0x1d8   :  { %v2337_v63 = vmax.f32 %v2159_v5, 0.0 }
 0x1da   :  { %v2343_v3 = vpack.c.bf16 %v2337_v63, %v2331_v61 }
 0x1dc   :  { %2771 = vmatmul.bf16.vlgmr.msra.gmra.mxu2 %v2343_v3 }
 0x1e4   :  { %v2198_v46 = vpop.f32.mrf.mxu2 }
 0x1e5   :  { %v2199_v57 = vadd.f32 %v2198_v46, %v2185_v24  ;;  %v2240_v31 = vpop.f32.mrf.mxu1  ;;  %v4414_v46 = vld [vmem:[%s4992_s5] ss:$0 sm:$0xff]  ;;  %s4470_s5 = smov [#allocation6]  }
 0x1e6   :  { %v2241_v17 = vadd.f32 %v2240_v31, %v2226_v11  ;;  %s2825_s26 = sshll.u32 %s4470_s5, 4  ;;  %s2826_s26 = int_to_ptr.vmem [resolvable:$true] %s2825_s26 }
 0x1ec   :  { %v2200_v25 = vpop.f32.mrf.mxu2  ;;  %v2282_v52 = vpop.f32.mrf.mxu0 }
 0x1ed   :  { %v2212_v18 = vpop.f32.mrf.mxu3  ;;  %v2201_v27 = vadd.f32 %v2200_v25, %v2187_v47  ;;  %v2242_v16 = vpop.f32.mrf.mxu1 }
 0x1ee   :  { %v2213_v48 = vadd.f32 %v2212_v18, %v2199_v57  ;;  %v2243_v38 = vadd.f32 %v2242_v16, %v2228_v4 }
 0x1f0   :  { %v2332_v1 = vmax.f32 %v2213_v48, 0.0 }
 0x1f4   :  { %v2284_v54 = vpop.f32.mrf.mxu0 }
 0x1f5   :  { %v2214_v13 = vpop.f32.mrf.mxu3 }
 0x1f6   :  { %v2215_v12 = vadd.f32 %v2214_v13, %v2201_v27 }
 0x1f8   :  { %v2338_v33 = vmax.f32 %v2215_v12, 0.0 }
 0x1fa   :  { %v2344_v34 = vpack.c.bf16 %v2338_v33, %v2332_v1 }
 0x1fc   :  { %2785 = vmatmul.bf16.vlgmr.msra.gmra.mxu3 %v2344_v34 }
 0x204   :  { %v2254_v56 = vpop.f32.mrf.mxu2 }
 0x205   :  { %v2255_v29 = vadd.f32 %v2254_v56, %v2241_v17  ;;  %v2296_v41 = vpop.f32.mrf.mxu1 }
 0x206   :  { %v2297_v42 = vadd.f32 %v2296_v41, %v2282_v52 }
 0x20c   :  { %v2256_v36 = vpop.f32.mrf.mxu2 }
 0x20d   :  { %v2268_v49 = vpop.f32.mrf.mxu3  ;;  %v2257_v9 = vadd.f32 %v2256_v36, %v2243_v38  ;;  %v2298_v14 = vpop.f32.mrf.mxu1 }
 0x20e   :  { %v2269_v30 = vadd.f32 %v2268_v49, %v2255_v29  ;;  %v2299_v53 = vadd.f32 %v2298_v14, %v2284_v54 }
 0x210   :  { %v2333_v40 = vmax.f32 %v2269_v30, 0.0 }
 0x215   :  { %v2270_v39 = vpop.f32.mrf.mxu3 }
 0x216   :  { %v2271_v55 = vadd.f32 %v2270_v39, %v2257_v9 }
 0x218   :  { %v2339_v60 = vmax.f32 %v2271_v55, 0.0 }
 0x21a   :  { %v2345_v43 = vpack.c.bf16 %v2339_v60, %v2333_v40 }
 0x21c   :  { %2799 = vmatmul.bf16.vlgmr.msrb.gmra.mxu0 %v2345_v43 }
 0x224   :  { %v2310_v37 = vpop.f32.mrf.mxu2 }
 0x225   :  { %v2311_v5 = vadd.f32 %v2310_v37, %v2297_v42 }
 0x22c   :  { %v2312_v8 = vpop.f32.mrf.mxu2 }
 0x22d   :  { %v2324_v26 = vpop.f32.mrf.mxu3  ;;  %v2313_v50 = vadd.f32 %v2312_v8, %v2299_v53 }
 0x22e   :  { %v2325_v19 = vadd.f32 %v2324_v26, %v2311_v5 }
 0x230   :  { %v2334_v2 = vmax.f32 %v2325_v19, 0.0 }
 0x235   :  { %v2326_v61 = vpop.f32.mrf.mxu3 }
 0x236   :  { %v2327_v63 = vadd.f32 %v2326_v61, %v2313_v50 }
 0x238   :  { %v2340_v3 = vmax.f32 %v2327_v63, 0.0 }
 0x239   :  { %v2744_v7 = vpop.f32.mrf.mxu0 }
 0x23a   :  { %v2346_v6 = vpack.c.bf16 %v2340_v3, %v2334_v2  ;;  %v2745_v15 = vadd.f32 %v4414_v46, %v2744_v7 }
 0x23c   :  { %2813 = vmatmul.bf16.vlgmr.msrb.gmra.mxu1 %v2346_v6 }
 0x241   :  { %v2746_v32 = vpop.f32.mrf.mxu0 }
 0x242   :  { %v2747_v57 = vadd.f32 %v4414_v46, %v2746_v32 }
 0x249   :  { %v2758_v10 = vpop.f32.mrf.mxu1 }
 0x24a   :  { %v2759_v21 = vadd.f32 %v2758_v10, %v2745_v15 }
 0x251   :  { %v2760_v44 = vpop.f32.mrf.mxu1 }
 0x252   :  { %v2761_v13 = vadd.f32 %v2760_v44, %v2747_v57 }
 0x25f   :  { %v2772_v22 = vpop.f32.mrf.mxu2 }
 0x260   :  { %v2773_v25 = vadd.f32 %v2772_v22, %v2759_v21 }
 0x267   :  { %v2774_v28 = vpop.f32.mrf.mxu2 }
 0x268   :  { %v2775_v23 = vadd.f32 %v2774_v28, %v2761_v13 }
 0x27f   :  { %v2786_v18 = vpop.f32.mrf.mxu3 }
 0x280   :  { %v2787_v47 = vadd.f32 %v2786_v18, %v2773_v25 }
 0x287   :  { %v2788_v0 = vpop.f32.mrf.mxu3 }
 0x288   :  { %v2789_v33 = vadd.f32 %v2788_v0, %v2775_v23 }
 0x299   :  { %v2800_v24 = vpop.f32.mrf.mxu0 }
 0x29a   :  { %v2801_v27 = vadd.f32 %v2800_v24, %v2787_v47 }
 0x2a1   :  { %v2802_v1 = vpop.f32.mrf.mxu0 }
 0x2a2   :  { %v2803_v58 = vadd.f32 %v2802_v1, %v2789_v33 }
 0x2b9   :  { %v2814_v48 = vpop.f32.mrf.mxu1 }
 0x2ba   :  { %v2815_v12 = vadd.f32 %v2814_v48, %v2801_v27 }
 0x2bc   :  { %2819 = vst [vmem:[#allocation6] sm:$0xff] %v2815_v12 }
 0x2c1   :  { %v2816_v34 = vpop.f32.mrf.mxu1 }
 0x2c2   :  { %v2817_v62 = vadd.f32 %v2816_v34, %v2803_v58 }
 0x2c4   :  { %2820 = vst [vmem:[#allocation6 + $0x8] sm:$0xff] %v2817_v62 }
 0x2c5   :  { %2833 = dma.vmem_to_hbm [thread:$0]  %s2826_s26, 256, %s2828_s29, [#allocation5], %s4471_s30, %s4471_s30, %s4472_s7  }
 0x2c6   :  { %4465 = dma.done.wait [#allocation5], 256  }
 0x2c7   :  { %4466 = vsyncadd [#allocation5], 4294967040 }
 0x2c8   :  { %2838 = vsyncpa [#allocation4], 1 }
 0x2c9   :  { %2839 = vsyncpa [#allocation5], 1 }

</bundles_post_ra>
